<compile_context>
chip_gen: v6e
topology: v6e:2x2x1
jax: 0.10.0
libtpu: 0.0.40
codegen_flags: <defaults>
</compile_context>

<pallas_src>
import numpy as np
import jax
import jax.numpy as jnp
from jax import lax
from jax.experimental import pallas as pl
from jax.experimental.pallas import tpu as pltpu


def _round_up(x, m):
    return ((x + m - 1) // m) * m


# ---------------------------------------------------------------------------
# Pallas kernel (one grid step = one block of B images)
# ---------------------------------------------------------------------------
def lenet5_kernel(x_ref, w1_ref, b1_ref, w2_ref, b2_ref,
                  wf1_ref, bf1_ref, wf2_ref, bf2_ref, wf3_ref, bf3_ref,
                  out_ref):
    f32 = jnp.float32
    bf16 = jnp.bfloat16
    B = out_ref.shape[0]                                  # images in this block

    # --- x = F.max_pool2d(x, (2, 2)) : 64x64 -> 32x32 ---------------------
    # Input slab (lane-dense): row = (h//2)*B + b, lane = (h%2)*64 + (w%2)*32 + w//2
    x = x_ref[0]                                          # (32*B, 128) bf16
    m = jnp.maximum(x[:, :64], x[:, 64:])                 # row pairs   -> (32*B, 64)
    p0 = jnp.maximum(m[:, :32], m[:, 32:])                # col pairs   -> (32*B, 32) compact

    # --- conv1 (1->6, k=5) + relu : single wide-K matmul (K = 5*32) -------
    lhs1 = jnp.concatenate(
        [p0[kh * B:(kh + 28) * B, :] for kh in range(5)], axis=1)      # (28*B, 160)
    o1 = jnp.maximum(jnp.dot(lhs1, w1_ref[...], preferred_element_type=f32)
                     + b1_ref[...], 0.0).astype(bf16)                  # (28*B, 168)
    # o1 col = (wo%2)*84 + (wo//2)*6 + cout  (even/odd split chosen by packing)

    # --- max_pool2d 2x2 : 28x28 -> 14x14 ----------------------------------
    o1r = o1.reshape(14, 2 * B, 168)
    m1 = jnp.maximum(o1r[:, :B, :], o1r[:, B:, :]).reshape(14 * B, 168)
    f1 = jnp.maximum(m1[:, :84], m1[:, 84:])              # (14*B, 84): col = wp*6 + c

    # --- conv2 (6->16, k=5) + relu : single wide-K matmul (K = 5*84) ------
    lhs2 = jnp.concatenate(
        [f1[kh * B:(kh + 10) * B, :] for kh in range(5)], axis=1)      # (10*B, 420)
    o2 = jnp.maximum(jnp.dot(lhs2, w2_ref[...], preferred_element_type=f32)
                     + b2_ref[...], 0.0).astype(bf16)                  # (10*B, 160)
    # o2 col = (wo%2)*80 + (wo//2)*16 + cout

    # --- max_pool2d 2x2 : 10x10 -> 5x5 ------------------------------------
    o2r = o2.reshape(5, 2 * B, 160)
    m2 = jnp.maximum(o2r[:, :B, :], o2r[:, B:, :]).reshape(5 * B, 160)
    feat = jnp.maximum(m2[:, :80], m2[:, 80:])            # (5*B, 80): col = wp*16 + c

    # --- fc1 (400 -> 120, lane-padded to 128) : one dot, K = 400 ----------
    lf = jnp.concatenate(
        [feat[h * B:(h + 1) * B, :] for h in range(5)], axis=1)        # (B, 400)
    h1 = jnp.maximum(jnp.dot(lf, wf1_ref[...], preferred_element_type=f32)
                     + bf1_ref[...], 0.0).astype(bf16)                 # (B, 128)

    # --- fc2 (120->84) + relu, fc3 (84->15) + relu, all 128-lane padded ---
    h2 = jnp.maximum(jnp.dot(h1, wf2_ref[...], preferred_element_type=f32)
                     + bf2_ref[...], 0.0).astype(bf16)
    out_ref[...] = jnp.maximum(jnp.dot(h2, wf3_ref[...], preferred_element_type=f32)
                               + bf3_ref[...], 0.0)                    # (B, 128) f32


# ---------------------------------------------------------------------------
# Parameter repacking (pure layout plumbing; no forward-pass FLOPs)
# ---------------------------------------------------------------------------
def _pack_conv1(w):
    """(6,1,5,5) -> (160, 168).  Input lane = kh*32 + iw (compact pooled col);
    output col = (wo%2)*84 + (wo//2)*6 + cout."""
    w = np.asarray(w, np.float32)
    out = np.zeros((160, 168), np.float32)
    for kh in range(5):
        for kw in range(5):
            for wo in range(28):
                col0 = (wo % 2) * 84 + (wo // 2) * 6
                out[kh * 32 + wo + kw, col0:col0 + 6] = w[:, 0, kh, kw]
    return out


def _pack_conv2(w):
    """(16,6,5,5) -> (420, 160).  Input lane = kh*84 + iwp*6 + cin;
    output col = (wo%2)*80 + (wo//2)*16 + cout."""
    w = np.asarray(w, np.float32)
    out = np.zeros((420, 160), np.float32)
    for kh in range(5):
        for kw in range(5):
            for wo in range(10):
                r0 = kh * 84 + (wo + kw) * 6
                c0 = (wo % 2) * 80 + (wo // 2) * 16
                out[r0:r0 + 6, c0:c0 + 16] = w[:, :, kh, kw].T   # (cin, cout)
    return out


def _pack_fc1(w):
    """(120,400) torch flatten order c*25+h*5+w -> (400, 128) over the compact
    pool2 layout (lane = h*80 + w*16 + c); output lane-padded 120 -> 128."""
    w = np.asarray(w, np.float32).reshape(120, 16, 5, 5)     # (out, c, h, w)
    out = np.zeros((400, 128), np.float32)
    for h in range(5):
        for ww in range(5):
            for c in range(16):
                out[h * 80 + ww * 16 + c, :120] = w[:, c, h, ww]
    return out


def lenet5_forward(x, params, block_b=128):
    """x: (N, 1, 64, 64) float32 NCHW. Returns (N, 15) float32 (post-ReLU logits)."""
    n = x.shape[0]
    # B multiple of 16 keeps all bf16 sublane slice offsets (kh*B) tile-aligned.
    B = _round_up(min(block_b, _round_up(n, 16)), 16)
    n_pad = _round_up(n, B)
    nb = n_pad // B

    # Input repack: bf16, lane-dense 128 cols; row = (h//2)*B + b,
    # lane = (h%2)*64 + (w%2)*32 + (w//2).
    x2 = x[:, 0].astype(jnp.bfloat16)                        # (N, 64, 64)
    if n_pad != n:
        x2 = jnp.pad(x2, ((0, n_pad - n), (0, 0), (0, 0)))
    xb = (x2.reshape(nb, B, 32, 2, 32, 2)
            .transpose(0, 2, 1, 3, 5, 4)
            .reshape(nb, 32 * B, 128))

    w1 = jnp.asarray(_pack_conv1(params["conv1_w"]), dtype=jnp.bfloat16)
    b1 = jnp.asarray(np.tile(np.asarray(params["conv1_b"], np.float32), 28)
                     .reshape(1, 168))
    w2 = jnp.asarray(_pack_conv2(params["conv2_w"]), dtype=jnp.bfloat16)
    b2 = jnp.asarray(np.tile(np.asarray(params["conv2_b"], np.float32), 10)
                     .reshape(1, 160))

    wf1 = jnp.asarray(_pack_fc1(params["fc1_w"]), dtype=jnp.bfloat16)
    bf1 = np.zeros((1, 128), np.float32)
    bf1[0, :120] = np.asarray(params["fc1_b"], np.float32)
    bf1 = jnp.asarray(bf1)

    wf2 = np.zeros((128, 128), np.float32)
    wf2[:120, :84] = np.asarray(params["fc2_w"], np.float32).T
    wf2 = jnp.asarray(wf2, dtype=jnp.bfloat16)
    bf2 = np.zeros((1, 128), np.float32)
    bf2[0, :84] = np.asarray(params["fc2_b"], np.float32)
    bf2 = jnp.asarray(bf2)

    wf3 = np.zeros((128, 128), np.float32)
    wf3[:84, :15] = np.asarray(params["fc3_w"], np.float32).T
    wf3 = jnp.asarray(wf3, dtype=jnp.bfloat16)
    bf3 = np.zeros((1, 128), np.float32)
    bf3[0, :15] = np.asarray(params["fc3_b"], np.float32)
    bf3 = jnp.asarray(bf3)

    operands = (xb, w1, b1, w2, b2, wf1, bf1, wf2, bf2, wf3, bf3)

    in_specs = [pl.BlockSpec((1, 32 * B, 128), lambda i: (i, 0, 0))]
    for op in operands[1:]:
        nd = len(op.shape)
        in_specs.append(pl.BlockSpec(op.shape, lambda i, nd=nd: (0,) * nd))

    per_img_flops = 2 * (28 * 160 * 168 + 10 * 420 * 160
                         + 400 * 128 + 128 * 128 + 128 * 128)
    param_bytes = sum(int(np.prod(op.shape)) * op.dtype.itemsize
                      for op in operands[1:])
    cost = pl.CostEstimate(
        flops=int(n_pad * per_img_flops),
        transcendentals=0,
        bytes_accessed=int(xb.size * 2 + n_pad * 128 * 4 + param_bytes))

    out = pl.pallas_call(
        lenet5_kernel,
        out_shape=jax.ShapeDtypeStruct((nb * B, 128), jnp.float32),
        grid=(nb,),
        in_specs=in_specs,
        out_specs=pl.BlockSpec((B, 128), lambda i: (i, 0)),
        compiler_params=pltpu.CompilerParams(
            dimension_semantics=("parallel",),
            vmem_limit_bytes=48 * 1024 * 1024),
        cost_estimate=cost,
    )(*operands)

    return out[:n, :15]


# ---------------------------------------------------------------------------
# Pure-JAX reference (mirrors the PyTorch forward) for a correctness check
# ---------------------------------------------------------------------------
def lenet5_reference(x, params):
    hp = lax.Precision.HIGHEST

    def pool(v):
        return lax.reduce_window(v, -jnp.inf, lax.max,
                                 (1, 1, 2, 2), (1, 1, 2, 2), "VALID")

    def conv(v, w, b):
        out = lax.conv_general_dilated(
            v, w, (1, 1), "VALID",
            dimension_numbers=("NCHW", "OIHW", "NCHW"), precision=hp)
        return out + b[None, :, None, None]

    v = pool(x)
    v = pool(jax.nn.relu(conv(v, params["conv1_w"], params["conv1_b"])))
    v = pool(jax.nn.relu(conv(v, params["conv2_w"], params["conv2_b"])))
    v = v.reshape(v.shape[0], -1)
    v = jax.nn.relu(jnp.dot(v, params["fc1_w"].T, precision=hp) + params["fc1_b"])
    v = jax.nn.relu(jnp.dot(v, params["fc2_w"].T, precision=hp) + params["fc2_b"])
    v = jax.nn.relu(jnp.dot(v, params["fc3_w"].T, precision=hp) + params["fc3_b"])
    return v


if __name__ == "__main__":
    key = jax.random.PRNGKey(0)
    keys = jax.random.split(key, 12)
    params = {
        "conv1_w": 0.20 * jax.random.normal(keys[0], (6, 1, 5, 5), jnp.float32),
        "conv1_b": 0.10 * jax.random.normal(keys[1], (6,), jnp.float32),
        "conv2_w": 0.08 * jax.random.normal(keys[2], (16, 6, 5, 5), jnp.float32),
        "conv2_b": 0.10 * jax.random.normal(keys[3], (16,), jnp.float32),
        "fc1_w": 0.05 * jax.random.normal(keys[4], (120, 400), jnp.float32),
        "fc1_b": 0.10 * jax.random.normal(keys[5], (120,), jnp.float32),
        "fc2_w": 0.09 * jax.random.normal(keys[6], (84, 120), jnp.float32),
        "fc2_b": 0.10 * jax.random.normal(keys[7], (84,), jnp.float32),
        "fc3_w": 0.11 * jax.random.normal(keys[8], (15, 84), jnp.float32),
        "fc3_b": 0.10 * jax.random.normal(keys[9], (15,), jnp.float32),
    }
    # The module's fc1 (16*5*5 inputs) fixes the spatial size: input must be 64x64.
    x = jax.random.normal(keys[10], (2, 1, 64, 64), jnp.float32)

    out = jax.block_until_ready(lenet5_forward(x, params))
    ref = jax.block_until_ready(lenet5_reference(x, params))
    assert out.shape == (2, 15) and out.dtype == jnp.float32
    # bf16 matmul operands / f32 accumulation -> slightly relaxed tolerance.
    np.testing.assert_allclose(np.asarray(out), np.asarray(ref), rtol=7e-2, atol=7e-2)

    # Also exercise the multi-block path (grid > 1, padded batch).
    xm = jax.random.normal(keys[11], (18, 1, 64, 64), jnp.float32)
    outm = jax.block_until_ready(lenet5_forward(xm, params, block_b=16))
    refm = jax.block_until_ready(lenet5_reference(xm, params))
    assert outm.shape == (18, 15)
    np.testing.assert_allclose(np.asarray(outm), np.asarray(refm), rtol=7e-2, atol=7e-2)

    print("KERNEL_OK")
</pallas_src>

<mosaic_0001>
module attributes {stable_mosaic.version = 11 : i64} {
  func.func @lenet5_kernel(%arg0: i32, %arg1: memref<1x512x128xbf16, #tpu.memory_space<vmem>>, %arg2: memref<160x168xbf16, #tpu.memory_space<vmem>>, %arg3: memref<1x168xf32, #tpu.memory_space<vmem>>, %arg4: memref<420x160xbf16, #tpu.memory_space<vmem>>, %arg5: memref<1x160xf32, #tpu.memory_space<vmem>>, %arg6: memref<400x128xbf16, #tpu.memory_space<vmem>>, %arg7: memref<1x128xf32, #tpu.memory_space<vmem>>, %arg8: memref<128x128xbf16, #tpu.memory_space<vmem>>, %arg9: memref<1x128xf32, #tpu.memory_space<vmem>>, %arg10: memref<128x128xbf16, #tpu.memory_space<vmem>>, %arg11: memref<1x128xf32, #tpu.memory_space<vmem>>, %arg12: memref<16x128xf32, #tpu.memory_space<vmem>>) attributes {dimension_semantics = [#tpu.dimension_semantics<parallel>], iteration_bounds = array<i64: 1>, scalar_prefetch = 0 : i64, scratch_operands = 0 : i64, tpu.core_type = #tpu.core_type<tc>, window_params = [{transform_indices = @transform_0, window_bounds = array<i64: 1, 512, 128>}, {pipeline_mode = #tpu.pipeline_mode<synchronous>, transform_indices = @transform_1, window_bounds = array<i64: 160, 168>}, {pipeline_mode = #tpu.pipeline_mode<synchronous>, transform_indices = @transform_2, window_bounds = array<i64: 1, 168>}, {pipeline_mode = #tpu.pipeline_mode<synchronous>, transform_indices = @transform_3, window_bounds = array<i64: 420, 160>}, {pipeline_mode = #tpu.pipeline_mode<synchronous>, transform_indices = @transform_4, window_bounds = array<i64: 1, 160>}, {pipeline_mode = #tpu.pipeline_mode<synchronous>, transform_indices = @transform_5, window_bounds = array<i64: 400, 128>}, {pipeline_mode = #tpu.pipeline_mode<synchronous>, transform_indices = @transform_6, window_bounds = array<i64: 1, 128>}, {pipeline_mode = #tpu.pipeline_mode<synchronous>, transform_indices = @transform_7, window_bounds = array<i64: 128, 128>}, {pipeline_mode = #tpu.pipeline_mode<synchronous>, transform_indices = @transform_8, window_bounds = array<i64: 1, 128>}, {pipeline_mode = #tpu.pipeline_mode<synchronous>, transform_indices = @transform_9, window_bounds = array<i64: 128, 128>}, {pipeline_mode = #tpu.pipeline_mode<synchronous>, transform_indices = @transform_10, window_bounds = array<i64: 1, 128>}, {transform_indices = @transform_11, window_bounds = array<i64: 16, 128>}]} {
    %c0 = arith.constant 0 : index
    %c0_0 = arith.constant 0 : index
    %c0_1 = arith.constant 0 : index
    %0 = vector.load %arg1[%c0, %c0_0, %c0_1] : memref<1x512x128xbf16, #tpu.memory_space<vmem>>, vector<1x512x128xbf16>
    %1 = vector.shape_cast %0 : vector<1x512x128xbf16> to vector<512x128xbf16>
    %2 = vector.extract_strided_slice %1 {offsets = [0, 0], sizes = [512, 64], strides = [1, 1]} : vector<512x128xbf16> to vector<512x64xbf16>
    %3 = vector.extract_strided_slice %1 {offsets = [0, 64], sizes = [512, 64], strides = [1, 1]} : vector<512x128xbf16> to vector<512x64xbf16>
    %4 = arith.maximumf %2, %3 : vector<512x64xbf16>
    %5 = vector.extract_strided_slice %4 {offsets = [0, 0], sizes = [512, 32], strides = [1, 1]} : vector<512x64xbf16> to vector<512x32xbf16>
    %6 = vector.extract_strided_slice %4 {offsets = [0, 32], sizes = [512, 32], strides = [1, 1]} : vector<512x64xbf16> to vector<512x32xbf16>
    %7 = arith.maximumf %5, %6 : vector<512x32xbf16>
    %8 = vector.extract_strided_slice %7 {offsets = [0, 0], sizes = [448, 32], strides = [1, 1]} : vector<512x32xbf16> to vector<448x32xbf16>
    %9 = vector.extract_strided_slice %7 {offsets = [16, 0], sizes = [448, 32], strides = [1, 1]} : vector<512x32xbf16> to vector<448x32xbf16>
    %10 = vector.extract_strided_slice %7 {offsets = [32, 0], sizes = [448, 32], strides = [1, 1]} : vector<512x32xbf16> to vector<448x32xbf16>
    %11 = vector.extract_strided_slice %7 {offsets = [48, 0], sizes = [448, 32], strides = [1, 1]} : vector<512x32xbf16> to vector<448x32xbf16>
    %12 = vector.extract_strided_slice %7 {offsets = [64, 0], sizes = [448, 32], strides = [1, 1]} : vector<512x32xbf16> to vector<448x32xbf16>
    %13 = tpu.concatenate %8, %9, %10, %11, %12 in 1 : vector<448x32xbf16>, vector<448x32xbf16>, vector<448x32xbf16>, vector<448x32xbf16>, vector<448x32xbf16> -> vector<448x160xbf16>
    %c0_2 = arith.constant 0 : index
    %c0_3 = arith.constant 0 : index
    %14 = vector.load %arg2[%c0_2, %c0_3] : memref<160x168xbf16, #tpu.memory_space<vmem>>, vector<160x168xbf16>
    %cst = arith.constant dense<0.000000e+00> : vector<448x168xf32>
    %15 = tpu.matmul %13, %14, %cst {dimension_numbers = #tpu.dot_dimension_numbers<[1], [0], [0], [1], [0, 0, 1, 1], [], []>} : vector<448x160xbf16>, vector<160x168xbf16>, vector<448x168xf32> -> vector<448x168xf32>
    %c0_4 = arith.constant 0 : index
    %c0_5 = arith.constant 0 : index
    %16 = vector.load %arg3[%c0_4, %c0_5] : memref<1x168xf32, #tpu.memory_space<vmem>>, vector<1x168xf32>
    %17 = vector.broadcast %16 : vector<1x168xf32> to vector<448x168xf32>
    %18 = arith.addf %15, %17 : vector<448x168xf32>
    %cst_6 = arith.constant 0.000000e+00 : f32
    %19 = vector.broadcast %cst_6 : f32 to vector<448x168xf32>
    %20 = arith.maximumf %18, %19 : vector<448x168xf32>
    %21 = arith.truncf %20 : vector<448x168xf32> to vector<448x168xbf16>
    %22 = vector.shape_cast %21 : vector<448x168xbf16> to vector<14x32x168xbf16>
    %23 = vector.extract_strided_slice %22 {offsets = [0, 0, 0], sizes = [14, 16, 168], strides = [1, 1, 1]} : vector<14x32x168xbf16> to vector<14x16x168xbf16>
    %24 = vector.extract_strided_slice %22 {offsets = [0, 16, 0], sizes = [14, 16, 168], strides = [1, 1, 1]} : vector<14x32x168xbf16> to vector<14x16x168xbf16>
    %25 = arith.maximumf %23, %24 : vector<14x16x168xbf16>
    %26 = vector.shape_cast %25 : vector<14x16x168xbf16> to vector<224x168xbf16>
    %27 = vector.extract_strided_slice %26 {offsets = [0, 0], sizes = [224, 84], strides = [1, 1]} : vector<224x168xbf16> to vector<224x84xbf16>
    %28 = vector.extract_strided_slice %26 {offsets = [0, 84], sizes = [224, 84], strides = [1, 1]} : vector<224x168xbf16> to vector<224x84xbf16>
    %29 = arith.maximumf %27, %28 : vector<224x84xbf16>
    %30 = vector.extract_strided_slice %29 {offsets = [0, 0], sizes = [160, 84], strides = [1, 1]} : vector<224x84xbf16> to vector<160x84xbf16>
    %31 = vector.extract_strided_slice %29 {offsets = [16, 0], sizes = [160, 84], strides = [1, 1]} : vector<224x84xbf16> to vector<160x84xbf16>
    %32 = vector.extract_strided_slice %29 {offsets = [32, 0], sizes = [160, 84], strides = [1, 1]} : vector<224x84xbf16> to vector<160x84xbf16>
    %33 = vector.extract_strided_slice %29 {offsets = [48, 0], sizes = [160, 84], strides = [1, 1]} : vector<224x84xbf16> to vector<160x84xbf16>
    %34 = vector.extract_strided_slice %29 {offsets = [64, 0], sizes = [160, 84], strides = [1, 1]} : vector<224x84xbf16> to vector<160x84xbf16>
    %35 = tpu.concatenate %30, %31, %32, %33, %34 in 1 : vector<160x84xbf16>, vector<160x84xbf16>, vector<160x84xbf16>, vector<160x84xbf16>, vector<160x84xbf16> -> vector<160x420xbf16>
    %c0_7 = arith.constant 0 : index
    %c0_8 = arith.constant 0 : index
    %36 = vector.load %arg4[%c0_7, %c0_8] : memref<420x160xbf16, #tpu.memory_space<vmem>>, vector<420x160xbf16>
    %cst_9 = arith.constant dense<0.000000e+00> : vector<160x160xf32>
    %37 = tpu.matmul %35, %36, %cst_9 {dimension_numbers = #tpu.dot_dimension_numbers<[1], [0], [0], [1], [0, 0, 1, 1], [], []>} : vector<160x420xbf16>, vector<420x160xbf16>, vector<160x160xf32> -> vector<160x160xf32>
    %c0_10 = arith.constant 0 : index
    %c0_11 = arith.constant 0 : index
    %38 = vector.load %arg5[%c0_10, %c0_11] : memref<1x160xf32, #tpu.memory_space<vmem>>, vector<1x160xf32>
    %39 = vector.broadcast %38 : vector<1x160xf32> to vector<160x160xf32>
    %40 = arith.addf %37, %39 : vector<160x160xf32>
    %cst_12 = arith.constant 0.000000e+00 : f32
    %41 = vector.broadcast %cst_12 : f32 to vector<160x160xf32>
    %42 = arith.maximumf %40, %41 : vector<160x160xf32>
    %43 = arith.truncf %42 : vector<160x160xf32> to vector<160x160xbf16>
    %44 = vector.shape_cast %43 : vector<160x160xbf16> to vector<5x32x160xbf16>
    %45 = vector.extract_strided_slice %44 {offsets = [0, 0, 0], sizes = [5, 16, 160], strides = [1, 1, 1]} : vector<5x32x160xbf16> to vector<5x16x160xbf16>
    %46 = vector.extract_strided_slice %44 {offsets = [0, 16, 0], sizes = [5, 16, 160], strides = [1, 1, 1]} : vector<5x32x160xbf16> to vector<5x16x160xbf16>
    %47 = arith.maximumf %45, %46 : vector<5x16x160xbf16>
    %48 = vector.shape_cast %47 : vector<5x16x160xbf16> to vector<80x160xbf16>
    %49 = vector.extract_strided_slice %48 {offsets = [0, 0], sizes = [80, 80], strides = [1, 1]} : vector<80x160xbf16> to vector<80x80xbf16>
    %50 = vector.extract_strided_slice %48 {offsets = [0, 80], sizes = [80, 80], strides = [1, 1]} : vector<80x160xbf16> to vector<80x80xbf16>
    %51 = arith.maximumf %49, %50 : vector<80x80xbf16>
    %52 = vector.extract_strided_slice %51 {offsets = [0, 0], sizes = [16, 80], strides = [1, 1]} : vector<80x80xbf16> to vector<16x80xbf16>
    %53 = vector.extract_strided_slice %51 {offsets = [16, 0], sizes = [16, 80], strides = [1, 1]} : vector<80x80xbf16> to vector<16x80xbf16>
    %54 = vector.extract_strided_slice %51 {offsets = [32, 0], sizes = [16, 80], strides = [1, 1]} : vector<80x80xbf16> to vector<16x80xbf16>
    %55 = vector.extract_strided_slice %51 {offsets = [48, 0], sizes = [16, 80], strides = [1, 1]} : vector<80x80xbf16> to vector<16x80xbf16>
    %56 = vector.extract_strided_slice %51 {offsets = [64, 0], sizes = [16, 80], strides = [1, 1]} : vector<80x80xbf16> to vector<16x80xbf16>
    %57 = tpu.concatenate %52, %53, %54, %55, %56 in 1 : vector<16x80xbf16>, vector<16x80xbf16>, vector<16x80xbf16>, vector<16x80xbf16>, vector<16x80xbf16> -> vector<16x400xbf16>
    %c0_13 = arith.constant 0 : index
    %c0_14 = arith.constant 0 : index
    %58 = vector.load %arg6[%c0_13, %c0_14] : memref<400x128xbf16, #tpu.memory_space<vmem>>, vector<400x128xbf16>
    %cst_15 = arith.constant dense<0.000000e+00> : vector<16x128xf32>
    %59 = tpu.matmul %57, %58, %cst_15 {dimension_numbers = #tpu.dot_dimension_numbers<[1], [0], [0], [1], [0, 0, 1, 1], [], []>} : vector<16x400xbf16>, vector<400x128xbf16>, vector<16x128xf32> -> vector<16x128xf32>
    %c0_16 = arith.constant 0 : index
    %c0_17 = arith.constant 0 : index
    %60 = vector.load %arg7[%c0_16, %c0_17] : memref<1x128xf32, #tpu.memory_space<vmem>>, vector<1x128xf32>
    %61 = vector.broadcast %60 : vector<1x128xf32> to vector<16x128xf32>
    %62 = arith.addf %59, %61 : vector<16x128xf32>
    %cst_18 = arith.constant 0.000000e+00 : f32
    %63 = vector.broadcast %cst_18 : f32 to vector<16x128xf32>
    %64 = arith.maximumf %62, %63 : vector<16x128xf32>
    %65 = arith.truncf %64 : vector<16x128xf32> to vector<16x128xbf16>
    %c0_19 = arith.constant 0 : index
    %c0_20 = arith.constant 0 : index
    %66 = vector.load %arg8[%c0_19, %c0_20] : memref<128x128xbf16, #tpu.memory_space<vmem>>, vector<128x128xbf16>
    %cst_21 = arith.constant dense<0.000000e+00> : vector<16x128xf32>
    %67 = tpu.matmul %65, %66, %cst_21 {dimension_numbers = #tpu.dot_dimension_numbers<[1], [0], [0], [1], [0, 0, 1, 1], [], []>} : vector<16x128xbf16>, vector<128x128xbf16>, vector<16x128xf32> -> vector<16x128xf32>
    %c0_22 = arith.constant 0 : index
    %c0_23 = arith.constant 0 : index
    %68 = vector.load %arg9[%c0_22, %c0_23] : memref<1x128xf32, #tpu.memory_space<vmem>>, vector<1x128xf32>
    %69 = vector.broadcast %68 : vector<1x128xf32> to vector<16x128xf32>
    %70 = arith.addf %67, %69 : vector<16x128xf32>
    %cst_24 = arith.constant 0.000000e+00 : f32
    %71 = vector.broadcast %cst_24 : f32 to vector<16x128xf32>
    %72 = arith.maximumf %70, %71 : vector<16x128xf32>
    %73 = arith.truncf %72 : vector<16x128xf32> to vector<16x128xbf16>
    %c0_25 = arith.constant 0 : index
    %c0_26 = arith.constant 0 : index
    %74 = vector.load %arg10[%c0_25, %c0_26] : memref<128x128xbf16, #tpu.memory_space<vmem>>, vector<128x128xbf16>
    %cst_27 = arith.constant dense<0.000000e+00> : vector<16x128xf32>
    %75 = tpu.matmul %73, %74, %cst_27 {dimension_numbers = #tpu.dot_dimension_numbers<[1], [0], [0], [1], [0, 0, 1, 1], [], []>} : vector<16x128xbf16>, vector<128x128xbf16>, vector<16x128xf32> -> vector<16x128xf32>
    %c0_28 = arith.constant 0 : index
    %c0_29 = arith.constant 0 : index
    %76 = vector.load %arg11[%c0_28, %c0_29] : memref<1x128xf32, #tpu.memory_space<vmem>>, vector<1x128xf32>
    %77 = vector.broadcast %76 : vector<1x128xf32> to vector<16x128xf32>
    %78 = arith.addf %75, %77 : vector<16x128xf32>
    %cst_30 = arith.constant 0.000000e+00 : f32
    %79 = vector.broadcast %cst_30 : f32 to vector<16x128xf32>
    %80 = arith.maximumf %78, %79 : vector<16x128xf32>
    %c0_31 = arith.constant 0 : index
    %c0_32 = arith.constant 0 : index
    %81 = vector.load %arg12[%c0_31, %c0_32] : memref<16x128xf32, #tpu.memory_space<vmem>>, vector<16x128xf32>
    tpu.vector_store %arg12[%c0_31, %c0_32], %80 {strides = array<i32>} : memref<16x128xf32, #tpu.memory_space<vmem>>, vector<16x128xf32>,
    return
  }
  func.func @transform_0(%arg0: i32) -> (i32, i32, i32) {
    %c0_i32 = arith.constant 0 : i32
    %c0_i32_0 = arith.constant 0 : i32
    %c0_i32_1 = arith.constant 0 : i32
    return %arg0, %c0_i32, %c0_i32_0 : i32, i32, i32
  }
  func.func @transform_1(%arg0: i32) -> (i32, i32) {
    %c0_i32 = arith.constant 0 : i32
    %c0_i32_0 = arith.constant 0 : i32
    %c0_i32_1 = arith.constant 0 : i32
    return %c0_i32, %c0_i32_0 : i32, i32
  }
  func.func @transform_2(%arg0: i32) -> (i32, i32) {
    %c0_i32 = arith.constant 0 : i32
    %c0_i32_0 = arith.constant 0 : i32
    %c0_i32_1 = arith.constant 0 : i32
    return %c0_i32, %c0_i32_0 : i32, i32
  }
  func.func @transform_3(%arg0: i32) -> (i32, i32) {
    %c0_i32 = arith.constant 0 : i32
    %c0_i32_0 = arith.constant 0 : i32
    %c0_i32_1 = arith.constant 0 : i32
    return %c0_i32, %c0_i32_0 : i32, i32
  }
  func.func @transform_4(%arg0: i32) -> (i32, i32) {
    %c0_i32 = arith.constant 0 : i32
    %c0_i32_0 = arith.constant 0 : i32
    %c0_i32_1 = arith.constant 0 : i32
    return %c0_i32, %c0_i32_0 : i32, i32
  }
  func.func @transform_5(%arg0: i32) -> (i32, i32) {
    %c0_i32 = arith.constant 0 : i32
    %c0_i32_0 = arith.constant 0 : i32
    %c0_i32_1 = arith.constant 0 : i32
    return %c0_i32, %c0_i32_0 : i32, i32
  }
  func.func @transform_6(%arg0: i32) -> (i32, i32) {
    %c0_i32 = arith.constant 0 : i32
    %c0_i32_0 = arith.constant 0 : i32
    %c0_i32_1 = arith.constant 0 : i32
    return %c0_i32, %c0_i32_0 : i32, i32
  }
  func.func @transform_7(%arg0: i32) -> (i32, i32) {
    %c0_i32 = arith.constant 0 : i32
    %c0_i32_0 = arith.constant 0 : i32
    %c0_i32_1 = arith.constant 0 : i32
    return %c0_i32, %c0_i32_0 : i32, i32
  }
  func.func @transform_8(%arg0: i32) -> (i32, i32) {
    %c0_i32 = arith.constant 0 : i32
    %c0_i32_0 = arith.constant 0 : i32
    %c0_i32_1 = arith.constant 0 : i32
    return %c0_i32, %c0_i32_0 : i32, i32
  }
  func.func @transform_9(%arg0: i32) -> (i32, i32) {
    %c0_i32 = arith.constant 0 : i32
    %c0_i32_0 = arith.constant 0 : i32
    %c0_i32_1 = arith.constant 0 : i32
    return %c0_i32, %c0_i32_0 : i32, i32
  }
  func.func @transform_10(%arg0: i32) -> (i32, i32) {
    %c0_i32 = arith.constant 0 : i32
    %c0_i32_0 = arith.constant 0 : i32
    %c0_i32_1 = arith.constant 0 : i32
    return %c0_i32, %c0_i32_0 : i32, i32
  }
  func.func @transform_11(%arg0: i32) -> (i32, i32) {
    %c0_i32 = arith.constant 0 : i32
    %c0_i32_0 = arith.constant 0 : i32
    return %arg0, %c0_i32 : i32, i32
  }
}

</mosaic_0001>

<bundles_post_ra>
// kernel: tpu_custom_call.1
= control target key start
LH: loop header
LB: loop body
LE: loop exit
PB: predicated region body
PF: predicated region fallthrough
CT: control target
= control target key end

     0   :  { %16 = vsyncpa [#allocation3], 0  ;;  %s6620_s0 = inlined_call_operand.vmem [shape: bf16[1,512,128], index: 0, kind: input, shape index: {}]   ;;  %s6621_s1 = inlined_call_operand.vmem [shape: bf16[160,168], index: 1, kind: input, shape index: {}]   ;;  %s6622_s2 = inlined_call_operand.hbm [shape: f32[1,168], index: 2, kind: input, shape index: {}]   ;;  %s6623_s3 = inlined_call_operand.vmem [shape: bf16[420,160], index: 3, kind: input, shape index: {}]   ;;  %s6624_s4 = inlined_call_operand.hbm [shape: f32[1,160], index: 4, kind: input, shape index: {}]   ;;  %s6625_s5 = inlined_call_operand.vmem [shape: bf16[400,128], index: 5, kind: input, shape index: {}]   ;;  %s6626_s6 = inlined_call_operand.vmem [shape: f32[1,128], index: 6, kind: input, shape index: {}]   ;;  %s6627_s7 = inlined_call_operand.vmem [shape: bf16[128,128], index: 7, kind: input, shape index: {}]   ;;  %s6628_s8 = inlined_call_operand.vmem [shape: f32[1,128], index: 8, kind: input, shape index: {}]   ;;  %s6629_s9 = inlined_call_operand.vmem [shape: bf16[128,128], index: 9, kind: input, shape index: {}]   ;;  %s6630_s10 = inlined_call_operand.vmem [shape: f32[1,128], index: 10, kind: input, shape index: {}]   ;;  %s6631_s11 = inlined_call_operand.hbm [shape: f32[16,128], index: 11, kind: output, shape index: {}]  }
   0x1   :  { %17 = vsyncpa [#allocation6], 0 }
   0x2   :  { %18 = vsyncpa [#allocation4], 0  ;;  %s4182_s17 = smov [#allocation2]   ;;  %s4183_s19 = smov [#allocation5]  }
   0x3   :  { %s29_s18 = sshll.u32 %s4182_s17, 4  ;;  %s41_s20 = sshll.u32 %s4183_s19, 4  ;;  %s30_s18 = int_to_ptr.vmem [resolvable:$true] %s29_s18  ;;  %s42_s20 = int_to_ptr.vmem [resolvable:$true] %s41_s20 }
   0x4   :  { %s4124_s21 = scalar_lea.vmem %s30_s18, 32  ;;  %p4129_p1 = scmp.lt.s32.totalorder %s30_s18, %s30_s18 }
   0x5   :  { %p4125_p0 = scmp.ne.s32.totalorder %s30_s18, %s4124_s21  ;;  %p4130_p2 = scmp.lt.s32.totalorder %s4124_s21, %s4124_s21 }
   0x7   :  { %p4131_p3 = por %p4130_p2, %p4129_p1 }
   0x9   :  { %p4132_p4 = pnand %p4131_p3, %p4125_p0 }
   0xb   :  { %4135 = shalt.err (!%p4132_p4)
}
   0xc   :  { %32 = dma.hbm_to_vmem [thread:$0]  %s6622_s2, 32, %s30_s18, [#allocation3]  }
   0xd   :  { %s4144_s24 = scalar_lea.vmem %s42_s20, 32  ;;  %p4149_p6 = scmp.lt.s32.totalorder %s42_s20, %s42_s20 }
   0xe   :  { %p4145_p5 = scmp.ne.s32.totalorder %s42_s20, %s4144_s24  ;;  %p4150_p7 = scmp.lt.s32.totalorder %s4144_s24, %s4144_s24 }
  0x10   :  { %p4151_p8 = por %p4150_p7, %p4149_p6 }
  0x12   :  { %p4152_p9 = pnand %p4151_p8, %p4145_p5 }
  0x14   :  { %4155 = shalt.err (!%p4152_p9)
}
  0x15   :  { %44 = dma.hbm_to_vmem [thread:$0]  %s6624_s4, 32, %s42_s20, [#allocation6]  }
  0x16   :  { %4176 = dma.done.wait [#allocation3], 32  }
  0x17   :  { %4177 = vsyncadd [#allocation3], 4294967264 }
  0x18   :  { %4178 = dma.done.wait [#allocation6], 32  }
  0x19   :  { %4179 = vsyncadd [#allocation6], 4294967264  ;;  %v4269_v0 = vld [vmem:[%s6620_s0 + $0x10] sm:$0xf]  ;;  %v4274_v1 = vld [vmem:[%s6620_s0 + $0x8] sm:$0xf] }
  0x1a   :  { %s4184_s30 = smov 64   ;;  %v4283_v2 = vld [vmem:[%s6620_s0 + $0x14] sm:$0xf]  ;;  %v4288_v3 = vld [vmem:[%s6620_s0 + $0xc] sm:$0xf]  ;;  %s4185_s27 = smov 96  }
  0x1b   :  { %200 = vrot.lane.b32.xlu1 %v4269_v0, %s4184_s30  ;;  %196 = vrot.lane.b32.xlu0 %v4274_v1, %s4184_s30  ;;  %v4297_v4 = vld [vmem:[%s6620_s0 + $0x1c] sm:$0xf]  ;;  %v4302_v5 = vld [vmem:[%s6620_s0 + $0x18] sm:$0xf]  ;;  %s4186_s23 = smov 32   ;;  %vm1096_vm0 = vcmask 261120  }
  0x1c   :  { %v4311_v6 = vld [vmem:[%s6620_s0 + $0x24] sm:$0xf]  ;;  %v4316_v7 = vld [vmem:[%s6620_s0 + $0x20] sm:$0xf]  ;;  %v4325_v8 = vld [vmem:[%s6620_s0 + $0x2c] sm:$0xf] }
  0x1d   :  { %v4330_v9 = vld [vmem:[%s6620_s0 + $0x28] sm:$0xf]  ;;  %v4335_v10 = vld [vmem:[%s6620_s0 + $0x34] sm:$0xf]  ;;  %v4340_v11 = vld [vmem:[%s6620_s0 + $0x30] sm:$0xf] }
  0x1e   :  { %v4349_v12 = vld [vmem:[%s6620_s0 + $0x3c] sm:$0xf]  ;;  %v4354_v13 = vld [vmem:[%s6620_s0 + $0x38] sm:$0xf]  ;;  %v4363_v14 = vld [vmem:[%s6620_s0 + $0x44] sm:$0xf] }
  0x1f   :  { %202 = vrot.lane.b32.xlu1 %v4283_v2, %s4184_s30  ;;  %198 = vrot.lane.b32.xlu0 %v4288_v3, %s4184_s30  ;;  %v4368_v15 = vld [vmem:[%s6620_s0 + $0x40] sm:$0xf]  ;;  %v4377_v16 = vld [vmem:[%s6620_s0 + $0x4c] sm:$0xf]  ;;  %vm1181_vm1 = vcmask 523264   ;;  %vm1238_vm2 = vcmask 785408  }
  0x20   :  { %v4382_v17 = vld [vmem:[%s6620_s0 + $0x48] sm:$0xf]  ;;  %v4391_v18 = vld [vmem:[%s6620_s0 + $0x4] sm:$0xf]  ;;  %v4396_v19 = vld [vmem:[%s6620_s0] sm:$0xf] }
  0x21   :  { %v4405_v20 = vld [vmem:[%s6620_s0 + $0x54] sm:$0xf]  ;;  %v4410_v21 = vld [vmem:[%s6620_s0 + $0x50] sm:$0xf]  ;;  %v4423_v22 = vld [vmem:[%s6620_s0 + $0x5c] sm:$0xf] }
  0x22   :  { %v4428_v23 = vld [vmem:[%s6620_s0 + $0x58] sm:$0xf]  ;;  %v4433_v24 = vld [vmem:[%s6620_s0 + $0x60] sm:$0xf]  ;;  %v4442_v25 = vld [vmem:[%s6620_s0 + $0x64] sm:$0xf] }
  0x23   :  { %206 = vrot.lane.b32.xlu1 %v4297_v4, %s4184_s30  ;;  %204 = vrot.lane.b32.xlu0 %v4302_v5, %s4184_s30  ;;  %v4447_v26 = vld [vmem:[%s6620_s0 + $0x6c] sm:$0xf]  ;;  %v4456_v27 = vld [vmem:[%s6620_s0 + $0x68] sm:$0xf]  ;;  %vm2108_vm3 = vcmask 359424   ;;  %s4189_s24 = smov 40  }
  0x24   :  { %v4461_v28 = vld [vmem:[%s6620_s0 + $0x70] sm:$0xf]  ;;  %v4466_v29 = vld [vmem:[%s6620_s0 + $0x74] sm:$0xf]  ;;  %v4479_v30 = vld [vmem:[%s6620_s0 + $0x7c] sm:$0xf] }
  0x25   :  { %v4484_v31 = vld [vmem:[%s6620_s0 + $0x78] sm:$0xf]  ;;  %v4489_v32 = vld [vmem:[%s6620_s0 + $0x80] sm:$0xf]  ;;  %v4498_v33 = vld [vmem:[%s6620_s0 + $0x84] sm:$0xf] }
  0x26   :  { %v4503_v34 = vld [vmem:[%s6620_s0 + $0x8c] sm:$0xf]  ;;  %v4512_v35 = vld [vmem:[%s6620_s0 + $0x88] sm:$0xf]  ;;  %v4517_v36 = vld [vmem:[%s6620_s0 + $0x90] sm:$0xf] }
  0x27   :  { %210 = vrot.lane.b32.xlu1 %v4311_v6, %s4184_s30  ;;  %208 = vrot.lane.b32.xlu0 %v4316_v7, %s4184_s30  ;;  %v4522_v37 = vld [vmem:[%s6620_s0 + $0x94] sm:$0xf]  ;;  %v4535_v38 = vld [vmem:[%s6620_s0 + $0x9c] sm:$0xf]  ;;  %s4190_s25 = smov 124   ;;  %vm2285_vm4 = vcmask 326656  }
  0x28   :  { %v4540_v39 = vld [vmem:[%s6620_s0 + $0x98] sm:$0xf]  ;;  %vm2306_vm5 = vcmask 1014784   ;;  %vm2244_vm6 = vcmask 687104   ;;  %s4191_s4 = smov 80   ;;  %vm2719_vm7 = vcmask 1041408  }
  0x29   :  { %vm2698_vm8 = vcmask 293888   ;;  %vm2337_vm9 = vcmask 654336   ;;  %vm3092_vm10 = vcmask 392192   ;;  %vm3126_vm11 = vcmask 916480  }
  0x2a   :  { %vm3340_vm12 = vcmask 130048   ;;  %vm4196_vm13 = vmmov 0  }
  0x2b   :  { %214 = vrot.lane.b32.xlu1 %v4325_v8, %s4184_s30  ;;  %212 = vrot.lane.b32.xlu0 %v4330_v9, %s4184_s30 }
  0x2f   :  { %218 = vrot.lane.b32.xlu1 %v4335_v10, %s4184_s30  ;;  %216 = vrot.lane.b32.xlu0 %v4340_v11, %s4184_s30 }
  0x33   :  { %222 = vrot.lane.b32.xlu1 %v4349_v12, %s4184_s30  ;;  %220 = vrot.lane.b32.xlu0 %v4354_v13, %s4184_s30 }
  0x37   :  { %226 = vrot.lane.b32.xlu1 %v4363_v14, %s4184_s30  ;;  %224 = vrot.lane.b32.xlu0 %v4368_v15, %s4184_s30 }
  0x3b   :  { %230 = vrot.lane.b32.xlu1 %v4377_v16, %s4184_s30  ;;  %228 = vrot.lane.b32.xlu0 %v4382_v17, %s4184_s30 }
  0x3f   :  { %194 = vrot.lane.b32.xlu1 %v4391_v18, %s4184_s30  ;;  %192 = vrot.lane.b32.xlu0 %v4396_v19, %s4184_s30 }
  0x43   :  { %234 = vrot.lane.b32.xlu1 %v4405_v20, %s4184_s30  ;;  %232 = vrot.lane.b32.xlu0 %v4410_v21, %s4184_s30 }
  0x47   :  { %238 = vrot.lane.b32.xlu1 %v4423_v22, %s4184_s30  ;;  %236 = vrot.lane.b32.xlu0 %v4428_v23, %s4184_s30 }
  0x4b   :  { %240 = vrot.lane.b32.xlu0 %v4433_v24, %s4184_s30  ;;  %242 = vrot.lane.b32.xlu1 %v4442_v25, %s4184_s30 }
  0x4f   :  { %246 = vrot.lane.b32.xlu1 %v4447_v26, %s4184_s30  ;;  %244 = vrot.lane.b32.xlu0 %v4456_v27, %s4184_s30 }
  0x53   :  { %248 = vrot.lane.b32.xlu0 %v4461_v28, %s4184_s30  ;;  %250 = vrot.lane.b32.xlu1 %v4466_v29, %s4184_s30 }
  0x57   :  { %254 = vrot.lane.b32.xlu1 %v4479_v30, %s4184_s30  ;;  %252 = vrot.lane.b32.xlu0 %v4484_v31, %s4184_s30 }
  0x5b   :  { %256 = vrot.lane.b32.xlu0 %v4489_v32, %s4184_s30  ;;  %258 = vrot.lane.b32.xlu1 %v4498_v33, %s4184_s30 }
  0x5f   :  { %262 = vrot.lane.b32.xlu1 %v4503_v34, %s4184_s30  ;;  %260 = vrot.lane.b32.xlu0 %v4512_v35, %s4184_s30 }
  0x63   :  { %264 = vrot.lane.b32.xlu0 %v4517_v36, %s4184_s30  ;;  %266 = vrot.lane.b32.xlu1 %v4522_v37, %s4184_s30 }
  0x67   :  { %270 = vrot.lane.b32.xlu0 %v4535_v38, %s4184_s30  ;;  %268 = vrot.lane.b32.xlu1 %v4540_v39, %s4184_s30 }
  0x8d   :  { %v201_v40 = vpop.permute.xlu1 %200  ;;  %v197_v41 = vpop.permute.xlu0 %196 }
  0x8e   :  { %v4547_v42 = vmax.bf16 %v197_v41, %v4274_v1  ;;  %v4550_v43 = vmax.bf16 %v201_v40, %v4269_v0 }
  0x90   :  { %516 = vrot.lane.b32.xlu0 %v4547_v42, %s4185_s27 }
  0x91   :  { %v203_v44 = vpop.permute.xlu1 %202  ;;  %v199_v45 = vpop.permute.xlu0 %198 }
  0x92   :  { %v4555_v46 = vmax.bf16 %v199_v45, %v4288_v3  ;;  %v4558_v47 = vmax.bf16 %v203_v44, %v4283_v2 }
  0x94   :  { %518 = vrot.lane.b32.xlu1 %v4555_v46, %s4185_s27  ;;  %520 = vrot.lane.b32.xlu0 %v4550_v43, %s4185_s27 }
  0x95   :  { %v207_v48 = vpop.permute.xlu1 %206  ;;  %v205_v49 = vpop.permute.xlu0 %204 }
  0x96   :  { %v4565_v50 = vmax.bf16 %v205_v49, %v4302_v5  ;;  %v4568_v51 = vmax.bf16 %v207_v48, %v4297_v4 }
  0x98   :  { %522 = vrot.lane.b32.xlu1 %v4558_v47, %s4185_s27  ;;  %524 = vrot.lane.b32.xlu0 %v4565_v50, %s4185_s27 }
  0x99   :  { %v211_v52 = vpop.permute.xlu1 %210  ;;  %v209_v53 = vpop.permute.xlu0 %208 }
  0x9a   :  { %v4575_v54 = vmax.bf16 %v209_v53, %v4316_v7  ;;  %v4578_v55 = vmax.bf16 %v211_v52, %v4311_v6 }
  0x9c   :  { %526 = vrot.lane.b32.xlu1 %v4568_v51, %s4185_s27  ;;  %528 = vrot.lane.b32.xlu0 %v4575_v54, %s4185_s27 }
  0x9d   :  { %v215_v56 = vpop.permute.xlu1 %214  ;;  %v213_v57 = vpop.permute.xlu0 %212 }
  0x9e   :  { %v4585_v58 = vmax.bf16 %v213_v57, %v4330_v9  ;;  %v4588_v59 = vmax.bf16 %v215_v56, %v4325_v8  ;;  %v4701_v56 = vld [vmem:[%s6620_s0 + $0xac] sm:$0xf] }
  0xa0   :  { %530 = vrot.lane.b32.xlu1 %v4578_v55, %s4185_s27  ;;  %532 = vrot.lane.b32.xlu0 %v4585_v58, %s4185_s27 }
  0xa1   :  { %v219_v60 = vpop.permute.xlu1 %218  ;;  %v217_v61 = vpop.permute.xlu0 %216 }
  0xa2   :  { %v4595_v62 = vmax.bf16 %v217_v61, %v4340_v11  ;;  %v4598_v63 = vmax.bf16 %v219_v60, %v4335_v10 }
  0xa4   :  { %534 = vrot.lane.b32.xlu1 %v4588_v59, %s4185_s27  ;;  %536 = vrot.lane.b32.xlu0 %v4595_v62, %s4185_s27 }
  0xa5   :  { %v223_v0 = vpop.permute.xlu1 %222  ;;  %v221_v1 = vpop.permute.xlu0 %220 }
  0xa6   :  { %v4605_v2 = vmax.bf16 %v221_v1, %v4354_v13  ;;  %v4608_v3 = vmax.bf16 %v223_v0, %v4349_v12  ;;  %v4725_v0 = vld [vmem:[%s6620_s0 + $0xb0] sm:$0xf] }
  0xa8   :  { %538 = vrot.lane.b32.xlu1 %v4598_v63, %s4185_s27  ;;  %540 = vrot.lane.b32.xlu0 %v4605_v2, %s4185_s27 }
  0xa9   :  { %v227_v4 = vpop.permute.xlu1 %226  ;;  %v225_v5 = vpop.permute.xlu0 %224 }
  0xaa   :  { %v4615_v6 = vmax.bf16 %v225_v5, %v4368_v15  ;;  %v4618_v7 = vmax.bf16 %v227_v4, %v4363_v14 }
  0xac   :  { %542 = vrot.lane.b32.xlu1 %v4608_v3, %s4185_s27  ;;  %544 = vrot.lane.b32.xlu0 %v4615_v6, %s4185_s27 }
  0xad   :  { %v231_v8 = vpop.permute.xlu1 %230  ;;  %v229_v9 = vpop.permute.xlu0 %228 }
  0xae   :  { %v4625_v10 = vmax.bf16 %v229_v9, %v4382_v17  ;;  %v4628_v11 = vmax.bf16 %v231_v8, %v4377_v16  ;;  %v4749_v8 = vld [vmem:[%s6620_s0 + $0xbc] sm:$0xf] }
  0xb0   :  { %546 = vrot.lane.b32.xlu1 %v4618_v7, %s4185_s27  ;;  %548 = vrot.lane.b32.xlu0 %v4625_v10, %s4185_s27 }
  0xb1   :  { %v195_v12 = vpop.permute.xlu1 %194  ;;  %v193_v13 = vpop.permute.xlu0 %192 }
  0xb2   :  { %v4635_v14 = vmax.bf16 %v193_v13, %v4396_v19  ;;  %v4638_v15 = vmax.bf16 %v195_v12, %v4391_v18  ;;  %v3965_v13 = vld [vmem:[%s6621_s1 + $0x74] ss:$8 sps:$4 sm:$0xff]  }
  0xb3   :  { %1515 = vmatprep.subr.bf16.mxu0 %v3965_v13 }
  0xb4   :  { %550 = vrot.lane.b32.xlu1 %v4628_v11, %s4185_s27  ;;  %512 = vrot.lane.b32.xlu0 %v4635_v14, %s4185_s27 }
  0xb5   :  { %v235_v16 = vpop.permute.xlu1 %234  ;;  %v233_v17 = vpop.permute.xlu0 %232 }
  0xb6   :  { %v4645_v40 = vmax.bf16 %v233_v17, %v4410_v21  ;;  %v4648_v41 = vmax.bf16 %v235_v16, %v4405_v20  ;;  %v3967_v16 = vld [vmem:[%s6621_s1 + $0x70] ss:$8 sps:$4 sm:$0xff]   ;;  %v4779_v17 = vld [vmem:[%s6620_s0 + $0xc0] sm:$0xf] }
  0xb7   :  { %1516 = vmatpush1.bf16.msra.mxu0 %v3967_v16  ;;  %v3977_v16 = vld [vmem:[%s6621_s1 + $0x34] ss:$8 sps:$4 sm:$0xff]  }
  0xb8   :  { %514 = vrot.lane.b32.xlu1 %v4638_v15, %s4185_s27  ;;  %552 = vrot.lane.b32.xlu0 %v4645_v40, %s4185_s27 }
  0xb9   :  { %v239_v18 = vpop.permute.xlu1 %238  ;;  %v237_v19 = vpop.permute.xlu0 %236 }
  0xba   :  { %v4655_v44 = vmax.bf16 %v239_v18, %v4423_v22  ;;  %v4658_v45 = vmax.bf16 %v237_v19, %v4428_v23  ;;  %v4677_v23 = vld [vmem:[%s6620_s0 + $0xa0] sm:$0xf]  ;;  %v3968_v19 = vld [vmem:[%s6621_s1 + $0x64] ss:$8 sps:$4 sm:$0xff]  }
  0xbb   :  { %1517 = vmatprep.subr.bf16.mxu0 %v3968_v19  ;;  %v4851_v19 = vld [vmem:[%s6620_s0 + $0xd0] sm:$0xf] }
  0xbc   :  { %554 = vrot.lane.b32.xlu1 %v4648_v41, %s4185_s27  ;;  %558 = vrot.lane.b32.xlu0 %v4655_v44, %s4185_s27 }
  0xbd   :  { %v241_v20 = vpop.permute.xlu0 %240  ;;  %v243_v21 = vpop.permute.xlu1 %242 }
  0xbe   :  { %v4665_v48 = vmax.bf16 %v241_v20, %v4433_v24  ;;  %v4672_v22 = vmax.bf16 %v243_v21, %v4442_v25  ;;  %v4689_v25 = vld [vmem:[%s6620_s0 + $0xa4] sm:$0xf]  ;;  %v3970_v21 = vld [vmem:[%s6621_s1 + $0x60] ss:$8 sps:$4 sm:$0xff]  }
  0xbf   :  { %1518 = vmatpush1.bf16.msra.mxu0 %v3970_v21  ;;  %v3980_v21 = vld [vmem:[%s6621_s1 + $0x24] ss:$8 sps:$4 sm:$0xff]  }
  0xc0   :  { %556 = vrot.lane.b32.xlu1 %v4658_v45, %s4185_s27  ;;  %560 = vrot.lane.b32.xlu0 %v4665_v48, %s4185_s27 }
  0xc1   :  { %v247_v49 = vpop.permute.xlu1 %246  ;;  %v245_v52 = vpop.permute.xlu0 %244 }
  0xc2   :  { %v4684_v24 = vmax.bf16 %v247_v49, %v4447_v26  ;;  %v4696_v53 = vmax.bf16 %v245_v52, %v4456_v27  ;;  %v4713_v27 = vld [vmem:[%s6620_s0 + $0xa8] sm:$0xf]  ;;  %v4797_v49 = vld [vmem:[%s6620_s0 + $0xc4] sm:$0xf]  ;;  %v3971_v52 = vld [vmem:[%s6621_s1 + $0x54] ss:$8 sps:$4 sm:$0xff]  }
  0xc3   :  { %1519 = vmatprep.subr.bf16.mxu0 %v3971_v52  ;;  %v3982_v52 = vld [vmem:[%s6621_s1 + $0x20] ss:$8 sps:$4 sm:$0xff]  }
  0xc4   :  { %562 = vrot.lane.b32.xlu1 %v4672_v22, %s4185_s27  ;;  %272 = vrot.lane.b32.xlu0 %v4677_v23, %s4184_s30 }
  0xc5   :  { %v249_v26 = vpop.permute.xlu0 %248  ;;  %v251_v57 = vpop.permute.xlu1 %250 }
  0xc6   :  { %v4708_v60 = vmax.bf16 %v249_v26, %v4461_v28  ;;  %v4720_v61 = vmax.bf16 %v251_v57, %v4466_v29  ;;  %v4737_v29 = vld [vmem:[%s6620_s0 + $0xb4] sm:$0xf]  ;;  %v3973_v26 = vld [vmem:[%s6621_s1 + $0x50] ss:$8 sps:$4 sm:$0xff]   ;;  %v4815_v57 = vld [vmem:[%s6620_s0 + $0xcc] sm:$0xf] }
  0xc7   :  { %1520 = vmatpush1.bf16.msra.mxu0 %v3973_v26 }
  0xc8   :  { %274 = vrot.lane.b32.xlu1 %v4689_v25, %s4184_s30  ;;  %566 = vrot.lane.b32.xlu0 %v4684_v24, %s4185_s27 }
  0xc9   :  { %v255_v28 = vpop.permute.xlu1 %254  ;;  %v253_v1 = vpop.permute.xlu0 %252 }
  0xca   :  { %v4732_v4 = vmax.bf16 %v255_v28, %v4479_v30  ;;  %v4744_v5 = vmax.bf16 %v253_v1, %v4484_v31  ;;  %v4761_v31 = vld [vmem:[%s6620_s0 + $0xb8] sm:$0xf]  ;;  %v3974_v1 = vld [vmem:[%s6621_s1 + $0x44] ss:$8 sps:$4 sm:$0xff]  }
  0xcb   :  { %1521 = vmatprep.subr.bf16.mxu0 %v3974_v1 }
  0xcc   :  { %278 = vrot.lane.b32.xlu0 %v4701_v56, %s4184_s30  ;;  %564 = vrot.lane.b32.xlu1 %v4696_v53, %s4185_s27 }
  0xcd   :  { %v257_v30 = vpop.permute.xlu0 %256  ;;  %v259_v9 = vpop.permute.xlu1 %258 }
  0xce   :  { %v4756_v12 = vmax.bf16 %v257_v30, %v4489_v32  ;;  %v4774_v32 = vmax.bf16 %v259_v9, %v4498_v33  ;;  %v3976_v30 = vld [vmem:[%s6621_s1 + $0x40] ss:$8 sps:$4 sm:$0xff]  }
  0xcf   :  { %v4833_v9 = vld [vmem:[%s6620_s0 + $0xc8] sm:$0xf]  ;;  %1522 = vmatpush1.bf16.msra.mxu0 %v3976_v30  ;;  %v3985_v30 = vld [vmem:[%s6621_s1 + $0x10] ss:$8 sps:$4 sm:$0xff]  }
  0xd0   :  { %276 = vrot.lane.b32.xlu1 %v4713_v27, %s4184_s30  ;;  %568 = vrot.lane.b32.xlu0 %v4708_v60, %s4185_s27 }
  0xd1   :  { %v263_v18 = vpop.permute.xlu1 %262  ;;  %v261_v20 = vpop.permute.xlu0 %260  ;;  %1523 = vmatprep.subr.bf16.mxu0 %v3977_v16  ;;  %v4890_v16 = vld [vmem:[%s6620_s0 + $0xdc] sm:$0xf] }
  0xd2   :  { %v4792_v33 = vmax.bf16 %v263_v18, %v4503_v34  ;;  %v4810_v34 = vmax.bf16 %v261_v20, %v4512_v35  ;;  %v3979_v18 = vld [vmem:[%s6621_s1 + $0x30] ss:$8 sps:$4 sm:$0xff]   ;;  %6642 = vst [vmem:[#allocation14_spill] sm:$0xff] %v4890_v16 }
  0xd3   :  { %1524 = vmatpush1.bf16.msra.mxu0 %v3979_v18  ;;  %v3988_v18 = vld [vmem:[%s6621_s1] ss:$8 sps:$4 sm:$0xff]  }
  0xd4   :  { %570 = vrot.lane.b32.xlu1 %v4720_v61, %s4185_s27  ;;  %280 = vrot.lane.b32.xlu0 %v4725_v0, %s4184_s30 }
  0xd5   :  { %v265_v28 = vpop.permute.xlu0 %264  ;;  %v267_v13 = vpop.permute.xlu1 %266  ;;  %1525 = vmatprep.subr.bf16.mxu0 %v3980_v21  ;;  %v3991_v21 = vld [vmem:[%s6621_s1 + $0x90] ss:$8 sps:$4 sm:$0xff]  }
  0xd6   :  { %v4828_v35 = vmax.bf16 %v265_v28, %v4517_v36  ;;  %v4846_v36 = vmax.bf16 %v267_v13, %v4522_v37  ;;  %v3983_v37 = vld [vmem:[%s6621_s1 + $0x14] ss:$8 sps:$4 sm:$0xff]   ;;  %v3986_v13 = vld [vmem:[%s6621_s1 + $0x4] ss:$8 sps:$4 sm:$0xff]  }
  0xd7   :  { %v4872_v28 = vld [vmem:[%s6620_s0 + $0xd4] sm:$0xf]  ;;  %1526 = vmatpush1.bf16.msra.mxu0 %v3982_v52 }
  0xd8   :  { %282 = vrot.lane.b32.xlu1 %v4737_v29, %s4184_s30  ;;  %574 = vrot.lane.b32.xlu0 %v4732_v4, %s4185_s27  ;;  %6640 = vst [vmem:[#allocation12_spill] sm:$0xff] %v4872_v28 }
  0xd9   :  { %v271_v20 = vpop.permute.xlu0 %270  ;;  %v269_v1 = vpop.permute.xlu1 %268  ;;  %1527 = vmatprep.subr.bf16.mxu0 %v3983_v37  ;;  %v3992_v37 = vld [vmem:[%s6621_s1 + $0x84] ss:$8 sps:$4 sm:$0xff]  }
  0xda   :  { %v4867_v26 = vmax.bf16 %v271_v20, %v4535_v38  ;;  %v4885_v38 = vmax.bf16 %v269_v1, %v4540_v39  ;;  %v4902_v39 = vld [vmem:[%s6620_s0 + $0xd8] sm:$0xf]  ;;  %v3989_v20 = vld [vmem:[%s6621_s1 + $0x94] ss:$8 sps:$4 sm:$0xff]   ;;  %v3994_v1 = vld [vmem:[%s6621_s1 + $0x80] ss:$8 sps:$4 sm:$0xff]  }
  0xdb   :  { %1528 = vmatpush1.bf16.msra.mxu0 %v3985_v30  ;;  %6643 = vst [vmem:[#allocation15_spill] sm:$0xff] %v4902_v39  ;;  %s4188_s1 = smov 84  }
  0xdc   :  { %286 = vrot.lane.b32.xlu0 %v4749_v8, %s4184_s30  ;;  %572 = vrot.lane.b32.xlu1 %v4744_v5, %s4185_s27  ;;  %6639 = vst [vmem:[#allocation11_spill] sm:$0xff] %v4867_v26  ;;  %6641 = vst [vmem:[#allocation13_spill] sm:$0xff] %v4885_v38 }
  0xdd   :  { %1529 = vmatprep.subr.bf16.mxu0 %v3986_v13 }
  0xdf   :  { %1530 = vmatpush1.bf16.msra.mxu0 %v3988_v18 }
  0xe0   :  { %284 = vrot.lane.b32.xlu1 %v4761_v31, %s4184_s30  ;;  %576 = vrot.lane.b32.xlu0 %v4756_v12, %s4185_s27 }
  0xe1   :  { %1543 = vmatprep.subr.bf16.mxu0 %v3989_v20 }
  0xe3   :  { %1544 = vmatpush2.bf16.msra.mxu0 %v3991_v21 }
  0xe4   :  { %578 = vrot.lane.b32.xlu1 %v4774_v32, %s4185_s27  ;;  %288 = vrot.lane.b32.xlu0 %v4779_v17, %s4184_s30 }
  0xe5   :  { %1545 = vmatprep.subr.bf16.mxu0 %v3992_v37 }
  0xe7   :  { %1546 = vmatpush2.bf16.msra.mxu0 %v3994_v1 }
  0xe8   :  { %290 = vrot.lane.b32.xlu1 %v4797_v49, %s4184_s30  ;;  %582 = vrot.lane.b32.xlu0 %v4792_v33, %s4185_s27 }
  0xec   :  { %294 = vrot.lane.b32.xlu0 %v4815_v57, %s4184_s30  ;;  %580 = vrot.lane.b32.xlu1 %v4810_v34, %s4185_s27 }
  0xf0   :  { %292 = vrot.lane.b32.xlu1 %v4833_v9, %s4184_s30  ;;  %584 = vrot.lane.b32.xlu0 %v4828_v35, %s4185_s27 }
  0xf4   :  { %586 = vrot.lane.b32.xlu1 %v4846_v36, %s4185_s27  ;;  %296 = vrot.lane.b32.xlu0 %v4851_v19, %s4184_s30 }
  0xf8   :  { %298 = vrot.lane.b32.xlu1 %v4872_v28, %s4184_s30  ;;  %590 = vrot.lane.b32.xlu0 %v4867_v26, %s4185_s27 }
  0xfc   :  { %588 = vrot.lane.b32.xlu1 %v4885_v38, %s4185_s27  ;;  %302 = vrot.lane.b32.xlu0 %v4890_v16, %s4184_s30 }
 0x100   :  { %300 = vrot.lane.b32.xlu1 %v4902_v39, %s4184_s30 }
 0x102   :  { %v517_v52 = vpop.permute.xlu0 %516 }
 0x103   :  { %v706_v18 = vmax.bf16 %v517_v52, %v4547_v42 }
 0x106   :  { %v519_v30 = vpop.permute.xlu1 %518  ;;  %v521_v13 = vpop.permute.xlu0 %520 }
 0x107   :  { %v707_v16 = vmax.bf16 %v519_v30, %v4555_v46  ;;  %v708_v26 = vmax.bf16 %v521_v13, %v4550_v43 }
 0x109   :  { %v4920_v39 = vcombine.low %v706_v18, %v707_v16 }
 0x10a   :  { %v523_v20 = vpop.permute.xlu1 %522  ;;  %v525_v21 = vpop.permute.xlu0 %524 }
 0x10b   :  { %v709_v38 = vmax.bf16 %v523_v20, %v4558_v47  ;;  %913 = vrot.lane.b32.xlu0 %v4920_v39, %s4186_s23  ;;  %v710_v42 = vmax.bf16 %v525_v21, %v4565_v50 }
 0x10d   :  { %v4926_v37 = vcombine.low %v708_v26, %v709_v38 }
 0x10e   :  { %v527_v28 = vpop.permute.xlu1 %526  ;;  %v529_v1 = vpop.permute.xlu0 %528 }
 0x10f   :  { %v711_v46 = vmax.bf16 %v527_v28, %v4568_v51  ;;  %974 = vrot.lane.b32.xlu1 %v4926_v37, %s4184_s30  ;;  %v712_v47 = vmax.bf16 %v529_v1, %v4575_v54 }
 0x111   :  { %v4932_v16 = vcombine.low %v710_v42, %v711_v46 }
 0x112   :  { %v531_v43 = vpop.permute.xlu1 %530  ;;  %v533_v52 = vpop.permute.xlu0 %532 }
 0x113   :  { %v713_v30 = vmax.bf16 %v531_v43, %v4578_v55  ;;  %915 = vrot.lane.b32.xlu1 %v4926_v37, %s4186_s23  ;;  %1035 = vrot.lane.b32.xlu0 %v4932_v16, %s4185_s27  ;;  %v714_v38 = vmax.bf16 %v533_v52, %v4585_v58 }
 0x115   :  { %v4940_v50 = vcombine.low %v712_v47, %v713_v30 }
 0x116   :  { %v535_v51 = vpop.permute.xlu1 %534  ;;  %v537_v26 = vpop.permute.xlu0 %536 }
 0x117   :  { %976 = vrot.lane.b32.xlu0 %v4932_v16, %s4184_s30  ;;  %1037 = vrot.lane.b32.xlu1 %v4940_v50, %s4185_s27  ;;  %v715_v54 = vmax.bf16 %v535_v51, %v4588_v59  ;;  %v716_v1 = vmax.bf16 %v537_v26, %v4595_v62 }
 0x118   :  { %3729 = vmatprep.mubr.msk.bf16.mxu0 %vm1096_vm0, %v4940_v50 }
 0x119   :  { %v4954_v13 = vcombine.low %v714_v38, %v715_v54 }
 0x11a   :  { %v539_v55 = vpop.permute.xlu1 %538  ;;  %v541_v28 = vpop.permute.xlu0 %540 }
 0x11b   :  { %917 = vrot.lane.b32.xlu0 %v4932_v16, %s4186_s23  ;;  %978 = vrot.lane.b32.xlu1 %v4940_v50, %s4184_s30  ;;  %v717_v18 = vmax.bf16 %v539_v55, %v4598_v63  ;;  %v718_v43 = vmax.bf16 %v541_v28, %v4605_v2 }
 0x11d   :  { %v4962_v58 = vcombine.low %v716_v1, %v717_v18 }
 0x11e   :  { %v543_v20 = vpop.permute.xlu1 %542  ;;  %v545_v21 = vpop.permute.xlu0 %544 }
 0x11f   :  { %919 = vrot.lane.b32.xlu1 %v4940_v50, %s4186_s23  ;;  %1039 = vrot.lane.b32.xlu0 %v4954_v13, %s4185_s27  ;;  %v719_v63 = vmax.bf16 %v543_v20, %v4608_v3  ;;  %v720_v3 = vmax.bf16 %v545_v21, %v4615_v6 }
 0x121   :  { %v4976_v52 = vcombine.low %v718_v43, %v719_v63 }
 0x122   :  { %v547_v59 = vpop.permute.xlu1 %546  ;;  %v549_v42 = vpop.permute.xlu0 %548 }
 0x123   :  { %980 = vrot.lane.b32.xlu0 %v4954_v13, %s4184_s30  ;;  %1041 = vrot.lane.b32.xlu1 %v4962_v58, %s4185_s27  ;;  %v721_v47 = vmax.bf16 %v547_v59, %v4618_v7  ;;  %v722_v28 = vmax.bf16 %v549_v42, %v4625_v10 }
 0x125   :  { %v4986_v2 = vcombine.low %v720_v3, %v721_v47 }
 0x126   :  { %v551_v46 = vpop.permute.xlu1 %550  ;;  %v4969_v62 = vpop.permute.xlu0 %512 }
 0x127   :  { %921 = vrot.lane.b32.xlu0 %v4954_v13, %s4186_s23  ;;  %982 = vrot.lane.b32.xlu1 %v4962_v58, %s4184_s30  ;;  %v723_v7 = vmax.bf16 %v551_v46, %v4628_v11 }
 0x129   :  { %v4998_v38 = vcombine.low %v722_v28, %v723_v7 }
 0x12a   :  { %v4979_v30 = vpop.permute.xlu1 %514  ;;  %v553_v51 = vpop.permute.xlu0 %552 }
 0x12b   :  { %923 = vrot.lane.b32.xlu1 %v4962_v58, %s4186_s23  ;;  %1043 = vrot.lane.b32.xlu0 %v4976_v52, %s4185_s27  ;;  %v724_v1 = vmax.bf16 %v553_v51, %v4645_v40 }
 0x12e   :  { %v555_v26 = vpop.permute.xlu1 %554  ;;  %v559_v54 = vpop.permute.xlu0 %558 }
 0x12f   :  { %984 = vrot.lane.b32.xlu0 %v4976_v52, %s4184_s30  ;;  %1045 = vrot.lane.b32.xlu1 %v4986_v2, %s4185_s27  ;;  %v725_v18 = vmax.bf16 %v555_v26, %v4648_v41  ;;  %v727_v63 = vmax.bf16 %v559_v54, %v4655_v44 }
 0x131   :  { %v5006_v10 = vcombine.low %v724_v1, %v725_v18 }
 0x132   :  { %v557_v55 = vpop.permute.xlu1 %556  ;;  %v561_v6 = vpop.permute.xlu0 %560 }
 0x133   :  { %925 = vrot.lane.b32.xlu0 %v4976_v52, %s4186_s23  ;;  %986 = vrot.lane.b32.xlu1 %v4986_v2, %s4184_s30  ;;  %v726_v41 = vmax.bf16 %v557_v55, %v4658_v45  ;;  %v728_v3 = vmax.bf16 %v561_v6, %v4665_v48  ;;  %v5050_v55 = vld [vmem:[%s6620_s0 + $0xe0] sm:$0xf] }
 0x135   :  { %v5018_v46 = vcombine.low %v726_v41, %v727_v63 }
 0x136   :  { %v563_v20 = vpop.permute.xlu1 %562  ;;  %v273_v21 = vpop.permute.xlu0 %272 }
 0x137   :  { %927 = vrot.lane.b32.xlu1 %v4986_v2, %s4186_s23  ;;  %1047 = vrot.lane.b32.xlu0 %v4998_v38, %s4185_s27  ;;  %v729_v43 = vmax.bf16 %v563_v20, %v4672_v22  ;;  %v5036_v48 = vmax.bf16 %v273_v21, %v4677_v23 }
 0x139   :  { %v5026_v44 = vcombine.low %v728_v3, %v729_v43 }
 0x13a   :  { %v275_v11 = vpop.permute.xlu1 %274  ;;  %v567_v59 = vpop.permute.xlu0 %566 }
 0x13b   :  { %988 = vrot.lane.b32.xlu0 %v4998_v38, %s4184_s30  ;;  %1049 = vrot.lane.b32.xlu1 %v5006_v10, %s4185_s27  ;;  %v5029_v54 = vmax.bf16 %v275_v11, %v4689_v25  ;;  %v5045_v25 = vld [vmem:[%s6620_s0 + $0xe4] sm:$0xf]  ;;  %v731_v20 = vmax.bf16 %v567_v59, %v4684_v24 }
 0x13e   :  { %v565_v42 = vpop.permute.xlu1 %564  ;;  %v279_v40 = vpop.permute.xlu0 %278 }
 0x13f   :  { %929 = vrot.lane.b32.xlu0 %v4998_v38, %s4186_s23  ;;  %990 = vrot.lane.b32.xlu1 %v5006_v10, %s4184_s30  ;;  %v730_v28 = vmax.bf16 %v565_v42, %v4696_v53  ;;  %v5072_v24 = vmax.bf16 %v279_v40, %v4701_v56 }
 0x141   :  { %v5062_v1 = vcombine.low %v730_v28, %v731_v20 }
 0x142   :  { %v277_v47 = vpop.permute.xlu1 %276  ;;  %v569_v51 = vpop.permute.xlu0 %568 }
 0x143   :  { %931 = vrot.lane.b32.xlu1 %v5006_v10, %s4186_s23  ;;  %1051 = vrot.lane.b32.xlu0 %v5018_v46, %s4185_s27  ;;  %v5065_v11 = vmax.bf16 %v277_v47, %v4713_v27  ;;  %v732_v63 = vmax.bf16 %v569_v51, %v4708_v60 }
 0x146   :  { %v571_v45 = vpop.permute.xlu1 %570  ;;  %v281_v26 = vpop.permute.xlu0 %280 }
 0x147   :  { %992 = vrot.lane.b32.xlu0 %v5018_v46, %s4184_s30  ;;  %1053 = vrot.lane.b32.xlu1 %v5026_v44, %s4185_s27  ;;  %v733_v53 = vmax.bf16 %v571_v45, %v4720_v61  ;;  %v5087_v56 = vmax.bf16 %v281_v26, %v4725_v0 }
 0x149   :  { %v5080_v27 = vcombine.low %v732_v63, %v733_v53 }
 0x14a   :  { %v283_v22 = vpop.permute.xlu1 %282  ;;  %v575_v7 = vpop.permute.xlu0 %574 }
 0x14b   :  { %594 = vrot.lane.b32.xlu1 %v5029_v54, %s4185_s27  ;;  %592 = vrot.lane.b32.xlu0 %v5036_v48, %s4185_s27  ;;  %v5090_v60 = vmax.bf16 %v283_v22, %v4737_v29  ;;  %v735_v3 = vmax.bf16 %v575_v7, %v4732_v4 }
 0x14e   :  { %v573_v23 = vpop.permute.xlu1 %572  ;;  %v287_v6 = vpop.permute.xlu0 %286 }
 0x14f   :  { %306 = vrot.lane.b32.xlu1 %v5045_v25, %s4184_s30  ;;  %304 = vrot.lane.b32.xlu0 %v5050_v55, %s4184_s30  ;;  %v734_v61 = vmax.bf16 %v573_v23, %v4744_v5  ;;  %v5112_v4 = vmax.bf16 %v287_v6, %v4749_v8 }
 0x151   :  { %v5102_v0 = vcombine.low %v734_v61, %v735_v3  ;;  %v6645_v3 = vld [vmem:[#allocation13_spill] sm:$0xff] }
 0x152   :  { %v285_v18 = vpop.permute.xlu1 %284  ;;  %v577_v21 = vpop.permute.xlu0 %576 }
 0x153   :  { %994 = vrot.lane.b32.xlu1 %v5026_v44, %s4184_s30  ;;  %933 = vrot.lane.b32.xlu0 %v5018_v46, %s4186_s23  ;;  %v5105_v29 = vmax.bf16 %v285_v18, %v4761_v31  ;;  %v736_v22 = vmax.bf16 %v577_v21, %v4756_v12 }
 0x156   :  { %v579_v41 = vpop.permute.xlu1 %578  ;;  %v289_v59 = vpop.permute.xlu0 %288 }
 0x157   :  { %596 = vrot.lane.b32.xlu1 %v5065_v11, %s4185_s27  ;;  %1055 = vrot.lane.b32.xlu0 %v5062_v1, %s4185_s27  ;;  %v737_v5 = vmax.bf16 %v579_v41, %v4774_v32  ;;  %v5127_v8 = vmax.bf16 %v289_v59, %v4779_v17  ;;  %v705_v41 = vmax.bf16 %v4979_v30, %v4638_v15 }
 0x159   :  { %v5120_v31 = vcombine.low %v736_v22, %v737_v5  ;;  %v6646_v22 = vld [vmem:[#allocation11_spill] sm:$0xff] }
 0x15a   :  { %v291_v42 = vpop.permute.xlu1 %290  ;;  %v583_v43 = vpop.permute.xlu0 %582 }
 0x15b   :  { %935 = vrot.lane.b32.xlu1 %v5026_v44, %s4186_s23  ;;  %598 = vrot.lane.b32.xlu0 %v5072_v24, %s4185_s27  ;;  %v5130_v12 = vmax.bf16 %v291_v42, %v4797_v49  ;;  %v739_v18 = vmax.bf16 %v583_v43, %v4792_v33  ;;  %v704_v33 = vmax.bf16 %v4969_v62, %v4635_v14  ;;  %v6644_v43 = vld [vmem:[#allocation12_spill] sm:$0xff] }
 0x15d   :  { %v3677_v42 = vcombine.low %v704_v33, %v705_v41  ;;  %v6648_v33 = vld [vmem:[#allocation14_spill] sm:$0xff] }
 0x15e   :  { %v581_v47 = vpop.permute.xlu1 %580  ;;  %v295_v40 = vpop.permute.xlu0 %294 }
 0x15f   :  { %996 = vrot.lane.b32.xlu0 %v5062_v1, %s4184_s30  ;;  %1057 = vrot.lane.b32.xlu1 %v5080_v27, %s4185_s27  ;;  %v738_v28 = vmax.bf16 %v581_v47, %v4810_v34  ;;  %v5156_v34 = vmax.bf16 %v295_v40, %v4815_v57 }
 0x161   :  { %v5142_v49 = vcombine.low %v738_v28, %v739_v18  ;;  %v6647_v28 = vld [vmem:[#allocation15_spill] sm:$0xff] }
 0x162   :  { %v293_v51 = vpop.permute.xlu1 %292  ;;  %v585_v45 = vpop.permute.xlu0 %584 }
 0x163   :  { %602 = vrot.lane.b32.xlu1 %v5090_v60, %s4185_s27  ;;  %600 = vrot.lane.b32.xlu0 %v5087_v56, %s4185_s27  ;;  %v5145_v21 = vmax.bf16 %v293_v51, %v4833_v9  ;;  %v740_v15 = vmax.bf16 %v585_v45, %v4828_v35 }
 0x166   :  { %v587_v26 = vpop.permute.xlu1 %586  ;;  %v297_v7 = vpop.permute.xlu0 %296 }
 0x167   :  { %998 = vrot.lane.b32.xlu1 %v5080_v27, %s4184_s30  ;;  %937 = vrot.lane.b32.xlu0 %v5062_v1, %s4186_s23  ;;  %v741_v53 = vmax.bf16 %v587_v26, %v4846_v36  ;;  %v5174_v35 = vmax.bf16 %v297_v7, %v4851_v19 }
 0x169   :  { %v5165_v62 = vcombine.low %v740_v15, %v741_v53 }
 0x16a   :  { %v299_v23 = vpop.permute.xlu1 %298  ;;  %v591_v32 = vpop.permute.xlu0 %590 }
 0x16b   :  { %604 = vrot.lane.b32.xlu1 %v5105_v29, %s4185_s27  ;;  %1059 = vrot.lane.b32.xlu0 %v5102_v0, %s4185_s27  ;;  %v5177_v47 = vmax.bf16 %v299_v23, %v6644_v43  ;;  %v743_v7 = vmax.bf16 %v591_v32, %v6646_v22 }
 0x16e   :  { %v589_v6 = vpop.permute.xlu1 %588  ;;  %v303_v20 = vpop.permute.xlu0 %302 }
 0x16f   :  { %939 = vrot.lane.b32.xlu1 %v5080_v27, %s4186_s23  ;;  %606 = vrot.lane.b32.xlu0 %v5112_v4, %s4185_s27  ;;  %v742_v45 = vmax.bf16 %v589_v6, %v6645_v3  ;;  %v5209_v53 = vmax.bf16 %v303_v20, %v6648_v33 }
 0x171   :  { %v5195_v23 = vcombine.low %v742_v45, %v743_v7 }
 0x172   :  { %v301_v17 = vpop.permute.xlu1 %300 }
 0x173   :  { %1000 = vrot.lane.b32.xlu0 %v5102_v0, %s4184_s30  ;;  %1061 = vrot.lane.b32.xlu1 %v5120_v31, %s4185_s27  ;;  %v5198_v18 = vmax.bf16 %v301_v17, %v6647_v28 }
 0x177   :  { %610 = vrot.lane.b32.xlu1 %v5130_v12, %s4185_s27  ;;  %608 = vrot.lane.b32.xlu0 %v5127_v8, %s4185_s27 }
 0x17b   :  { %1002 = vrot.lane.b32.xlu1 %v5120_v31, %s4184_s30  ;;  %941 = vrot.lane.b32.xlu0 %v5102_v0, %s4186_s23 }
 0x17d   :  { %v914_v59 = vpop.permute.xlu0 %913 }
 0x17e   :  { %v1099_v14 = vsel %vm1096_vm0, %v3677_v42, %v914_v59  ;;  %v5220_v42 = vld [vmem:[%s6620_s0 + $0xe8] sm:$0xf] }
 0x17f   :  { %612 = vrot.lane.b32.xlu1 %v5145_v21, %s4185_s27  ;;  %1063 = vrot.lane.b32.xlu0 %v5142_v49, %s4185_s27 }
 0x181   :  { %v975_v9 = vpop.permute.xlu1 %974 }
 0x182   :  { %v1183_v57 = vsel %vm1181_vm1, %v1099_v14, %v975_v9 }
 0x183   :  { %943 = vrot.lane.b32.xlu1 %v5120_v31, %s4186_s23  ;;  %614 = vrot.lane.b32.xlu0 %v5156_v34, %s4185_s27 }
 0x185   :  { %v916_v36 = vpop.permute.xlu1 %915  ;;  %v1036_v30 = vpop.permute.xlu0 %1035 }
 0x186   :  { %v1240_v63 = vsel %vm1238_vm2, %v1183_v57, %v1036_v30  ;;  %v1102_v51 = vsel %vm1096_vm0, %v4920_v39, %v916_v36  ;;  %v5234_v36 = vld [vmem:[%s6620_s0 + $0xec] sm:$0xf] }
 0x187   :  { %1004 = vrot.lane.b32.xlu0 %v5142_v49, %s4184_s30  ;;  %1065 = vrot.lane.b32.xlu1 %v5165_v62, %s4185_s27 }
 0x188   :  { %1548 = vmatmul.mubr.bf16.vlgmr.msra.gmra.mxu0 %v1240_v63 }
 0x189   :  { %3730 = vmatprep.mubr.msk.bf16.mxu0 %vm1096_vm0, %v4954_v13  ;;  %v1038_v61 = vpop.permute.xlu1 %1037  ;;  %v977_v40 = vpop.permute.xlu0 %976 }
 0x18a   :  { %v1185_v19 = vsel %vm1181_vm1, %v1102_v51, %v977_v40 }
 0x18b   :  { %618 = vrot.lane.b32.xlu1 %v5177_v47, %s4185_s27  ;;  %616 = vrot.lane.b32.xlu0 %v5174_v35, %s4185_s27  ;;  %v1243_v39 = vsel %vm1238_vm2, %v1185_v19, %v1038_v61 }
 0x18d   :  { %v979_v26 = vpop.permute.xlu1 %978  ;;  %v918_v5 = vpop.permute.xlu0 %917 }
 0x18e   :  { %v1105_v32 = vsel %vm1096_vm0, %v4926_v37, %v918_v5 }
 0x18f   :  { %1006 = vrot.lane.b32.xlu1 %v5165_v62, %s4184_s30  ;;  %945 = vrot.lane.b32.xlu0 %v5142_v49, %s4186_s23  ;;  %v1187_v9 = vsel %vm1181_vm1, %v1105_v32, %v979_v26 }
 0x190   :  { %1558 = vmatmul.mubr.bf16.gmra.mxu0 %v1243_v39 }
 0x191   :  { %3731 = vmatprep.mubr.msk.bf16.mxu0 %vm1096_vm0, %v4962_v58  ;;  %v920_v6 = vpop.permute.xlu1 %919  ;;  %v1040_v41 = vpop.permute.xlu0 %1039 }
 0x192   :  { %v1246_v37 = vsel %vm1238_vm2, %v1187_v9, %v1040_v41  ;;  %v1108_v14 = vsel %vm1096_vm0, %v4932_v16, %v920_v6 }
 0x193   :  { %620 = vrot.lane.b32.xlu1 %v5198_v18, %s4185_s27  ;;  %1067 = vrot.lane.b32.xlu0 %v5195_v23, %s4185_s27 }
 0x195   :  { %v1042_v59 = vpop.permute.xlu1 %1041  ;;  %v981_v17 = vpop.permute.xlu0 %980 }
 0x196   :  { %v1189_v57 = vsel %vm1181_vm1, %v1108_v14, %v981_v17 }
 0x197   :  { %947 = vrot.lane.b32.xlu1 %v5165_v62, %s4186_s23  ;;  %622 = vrot.lane.b32.xlu0 %v5209_v53, %s4185_s27  ;;  %v1249_v16 = vsel %vm1238_vm2, %v1189_v57, %v1042_v59 }
 0x198   :  { %1568 = vmatmul.mubr.bf16.gmra.mxu0 %v1246_v37 }
 0x199   :  { %3732 = vmatprep.mubr.msk.bf16.mxu0 %vm1096_vm0, %v4976_v52  ;;  %v983_v20 = vpop.permute.xlu1 %982  ;;  %v922_v15 = vpop.permute.xlu0 %921 }
 0x19a   :  { %v1111_v40 = vsel %vm1096_vm0, %v4940_v50, %v922_v15 }
 0x19b   :  { %308 = vrot.lane.b32.xlu1 %v5220_v42, %s4184_s30  ;;  %1008 = vrot.lane.b32.xlu0 %v5195_v23, %s4184_s30  ;;  %v1191_v3 = vsel %vm1181_vm1, %v1111_v40, %v983_v20 }
 0x19d   :  { %v924_v30 = vpop.permute.xlu1 %923  ;;  %v1044_v63 = vpop.permute.xlu0 %1043 }
 0x19e   :  { %v1252_v45 = vsel %vm1238_vm2, %v1191_v3, %v1044_v63  ;;  %v1114_v22 = vsel %vm1096_vm0, %v4954_v13, %v924_v30 }
 0x19f   :  { %310 = vrot.lane.b32.xlu0 %v5234_v36, %s4184_s30 }
 0x1a0   :  { %1578 = vmatmul.mubr.bf16.gmra.mxu0 %v1249_v16 }
 0x1a1   :  { %3733 = vmatprep.mubr.msk.bf16.mxu0 %vm1096_vm0, %v4986_v2  ;;  %v1046_v43 = vpop.permute.xlu1 %1045  ;;  %v985_v61 = vpop.permute.xlu0 %984 }
 0x1a2   :  { %v1193_v7 = vsel %vm1181_vm1, %v1114_v22, %v985_v61 }
 0x1a3   :  { %v1255_v50 = vsel %vm1238_vm2, %v1193_v7, %v1046_v43 }
 0x1a5   :  { %v987_v51 = vpop.permute.xlu1 %986  ;;  %v926_v19 = vpop.permute.xlu0 %925 }
 0x1a6   :  { %v1117_v32 = vsel %vm1096_vm0, %v4962_v58, %v926_v19 }
 0x1a7   :  { %v1195_v17 = vsel %vm1181_vm1, %v1117_v32, %v987_v51 }
 0x1a8   :  { %1588 = vmatmul.mubr.bf16.gmra.mxu0 %v1252_v45 }
 0x1a9   :  { %3734 = vmatprep.mubr.msk.bf16.mxu0 %vm1096_vm0, %v4998_v38  ;;  %v928_v26 = vpop.permute.xlu1 %927  ;;  %v1048_v5 = vpop.permute.xlu0 %1047 }
 0x1aa   :  { %v1258_v13 = vsel %vm1238_vm2, %v1195_v17, %v1048_v5  ;;  %v1120_v20 = vsel %vm1096_vm0, %v4976_v52, %v928_v26 }
 0x1ad   :  { %v1050_v39 = vpop.permute.xlu1 %1049  ;;  %v989_v28 = vpop.permute.xlu0 %988 }
 0x1ae   :  { %v1197_v15 = vsel %vm1181_vm1, %v1120_v20, %v989_v28 }
 0x1af   :  { %v1261_v63 = vsel %vm1238_vm2, %v1197_v15, %v1050_v39 }
 0x1b0   :  { %1598 = vmatmul.mubr.bf16.gmra.mxu0 %v1255_v50 }
 0x1b1   :  { %3735 = vmatprep.mubr.msk.bf16.mxu0 %vm1096_vm0, %v5006_v10  ;;  %v991_v6 = vpop.permute.xlu1 %990  ;;  %v930_v41 = vpop.permute.xlu0 %929 }
 0x1b5   :  { %v932_v33 = vpop.permute.xlu1 %931  ;;  %v1052_v59 = vpop.permute.xlu0 %1051 }
 0x1b6   :  { %v1126_v3 = vsel %vm1096_vm0, %v4998_v38, %v932_v33 }
 0x1b8   :  { %1608 = vmatmul.mubr.bf16.gmra.mxu0 %v1258_v13 }
 0x1b9   :  { %3736 = vmatprep.mubr.msk.bf16.mxu0 %vm1096_vm0, %v5018_v46  ;;  %v1054_v9 = vpop.permute.xlu1 %1053  ;;  %v993_v37 = vpop.permute.xlu0 %992 }
 0x1ba   :  { %v1201_v45 = vsel %vm1181_vm1, %v1126_v3, %v993_v37 }
 0x1bb   :  { %v1267_v39 = vsel %vm1238_vm2, %v1201_v45, %v1054_v9  ;;  %v5366_v45 = vld [vmem:[%s6620_s0 + $0xf0] sm:$0xf] }
 0x1bd   :  { %v595_v14 = vpop.permute.xlu1 %594  ;;  %v593_v57 = vpop.permute.xlu0 %592 }
 0x1be   :  { %v745_v58 = vmax.bf16 %v595_v14, %v5029_v54  ;;  %v744_v30 = vmax.bf16 %v593_v57, %v5036_v48  ;;  %v1123_v54 = vsel %vm1096_vm0, %v4986_v2, %v930_v41 }
 0x1c0   :  { %v5265_v16 = vcombine.low %v744_v30, %v745_v58  ;;  %1618 = vmatmul.mubr.bf16.gmra.mxu0 %v1261_v63 }
 0x1c1   :  { %3737 = vmatprep.mubr.msk.bf16.mxu0 %vm1096_vm0, %v5026_v44  ;;  %v307_v43 = vpop.permute.xlu1 %306  ;;  %v305_v61 = vpop.permute.xlu0 %304 }
 0x1c2   :  { %v5270_v52 = vmax.bf16 %v307_v43, %v5045_v25  ;;  %v5273_v40 = vmax.bf16 %v305_v61, %v5050_v55  ;;  %1069 = vrot.lane.b32.xlu1 %v5265_v16, %s4185_s27  ;;  %v1199_v25 = vsel %vm1181_vm1, %v1123_v54, %v991_v6 }
 0x1c3   :  { %v1264_v19 = vsel %vm1238_vm2, %v1199_v25, %v1052_v59 }
 0x1c4   :  { %624 = vrot.lane.b32.xlu0 %v5273_v40, %s4185_s27 }
 0x1c5   :  { %v995_v48 = vpop.permute.xlu1 %994  ;;  %v934_v51 = vpop.permute.xlu0 %933 }
 0x1c6   :  { %626 = vrot.lane.b32.xlu1 %v5270_v52, %s4185_s27 }
 0x1c8   :  { %1628 = vmatmul.mubr.bf16.gmra.mxu0 %v1264_v19  ;;  %949 = vrot.lane.b32.xlu0 %v5195_v23, %s4186_s23 }
 0x1c9   :  { %3738 = vmatprep.mubr.msk.bf16.mxu0 %vm1096_vm0, %v5062_v1  ;;  %v597_v2 = vpop.permute.xlu1 %596  ;;  %v1056_v55 = vpop.permute.xlu0 %1055 }
 0x1ca   :  { %1010 = vrot.lane.b32.xlu1 %v5265_v16, %s4184_s30  ;;  %v746_v22 = vmax.bf16 %v597_v2, %v5065_v11  ;;  %v1129_v11 = vsel %vm1096_vm0, %v5006_v10, %v934_v51 }
 0x1cb   :  { %v1203_v33 = vsel %vm1181_vm1, %v1129_v11, %v995_v48 }
 0x1cc   :  { %v1270_v59 = vsel %vm1238_vm2, %v1203_v33, %v1056_v55 }
 0x1cd   :  { %v936_v26 = vpop.permute.xlu1 %935  ;;  %v599_v5 = vpop.permute.xlu0 %598 }
 0x1ce   :  { %v747_v7 = vmax.bf16 %v599_v5, %v5072_v24  ;;  %951 = vrot.lane.b32.xlu1 %v5265_v16, %s4186_s23 }
 0x1d0   :  { %v5299_v28 = vcombine.low %v746_v22, %v747_v7  ;;  %1638 = vmatmul.mubr.bf16.gmra.mxu0 %v1267_v39 }
 0x1d1   :  { %3739 = vmatprep.mubr.msk.bf16.mxu0 %vm1096_vm0, %v5080_v27  ;;  %v1058_v38 = vpop.permute.xlu1 %1057  ;;  %v997_v50 = vpop.permute.xlu0 %996 }
 0x1d2   :  { %1071 = vrot.lane.b32.xlu0 %v5299_v28, %s4185_s27 }
 0x1d5   :  { %v603_v24 = vpop.permute.xlu1 %602  ;;  %v601_v6 = vpop.permute.xlu0 %600 }
 0x1d6   :  { %v749_v41 = vmax.bf16 %v603_v24, %v5090_v60  ;;  %v748_v32 = vmax.bf16 %v601_v6, %v5087_v56  ;;  %1012 = vrot.lane.b32.xlu0 %v5299_v28, %s4184_s30  ;;  %v1132_v56 = vsel %vm1096_vm0, %v5018_v46, %v936_v26 }
 0x1d7   :  { %v1205_v60 = vsel %vm1181_vm1, %v1132_v56, %v997_v50 }
 0x1d8   :  { %v5313_v17 = vcombine.low %v748_v32, %v749_v41  ;;  %1648 = vmatmul.mubr.bf16.gmra.mxu0 %v1270_v59  ;;  %v1273_v20 = vsel %vm1238_vm2, %v1205_v60, %v1058_v38 }
 0x1d9   :  { %3740 = vmatprep.mubr.msk.bf16.mxu0 %vm1096_vm0, %v5102_v0  ;;  %v999_v10 = vpop.permute.xlu1 %998  ;;  %v938_v13 = vpop.permute.xlu0 %937 }
 0x1da   :  { %953 = vrot.lane.b32.xlu0 %v5299_v28, %s4186_s23  ;;  %1073 = vrot.lane.b32.xlu1 %v5313_v17, %s4185_s27  ;;  %v1135_v46 = vsel %vm1096_vm0, %v5026_v44, %v938_v13 }
 0x1db   :  { %v1207_v61 = vsel %vm1181_vm1, %v1135_v46, %v999_v10 }
 0x1dd   :  { %v605_v9 = vpop.permute.xlu1 %604  ;;  %v1060_v37 = vpop.permute.xlu0 %1059 }
 0x1de   :  { %1014 = vrot.lane.b32.xlu1 %v5313_v17, %s4184_s30  ;;  %v750_v57 = vmax.bf16 %v605_v9, %v5105_v29  ;;  %v1276_v54 = vsel %vm1238_vm2, %v1207_v61, %v1060_v37 }
 0x1e0   :  { %1658 = vmatmul.mubr.bf16.gmra.mxu0 %v1273_v20 }
 0x1e1   :  { %3741 = vmatprep.mubr.msk.bf16.mxu0 %vm1096_vm0, %v5120_v31  ;;  %v940_v15 = vpop.permute.xlu1 %939  ;;  %v607_v14 = vpop.permute.xlu0 %606 }
 0x1e2   :  { %v751_v58 = vmax.bf16 %v607_v14, %v5112_v4  ;;  %955 = vrot.lane.b32.xlu1 %v5313_v17, %s4186_s23  ;;  %v1138_v51 = vsel %vm1096_vm0, %v5062_v1, %v940_v15 }
 0x1e4   :  { %v5335_v30 = vcombine.low %v750_v57, %v751_v58 }
 0x1e5   :  { %v1062_v63 = vpop.permute.xlu1 %1061  ;;  %v1001_v43 = vpop.permute.xlu0 %1000 }
 0x1e6   :  { %1075 = vrot.lane.b32.xlu0 %v5335_v30, %s4185_s27  ;;  %v1209_v25 = vsel %vm1181_vm1, %v1138_v51, %v1001_v43  ;;  %v1345_v51 = vlaneseq }
 0x1e8   :  { %1668 = vmatmul.mubr.bf16.gmra.mxu0 %v1276_v54 }
 0x1e9   :  { %3742 = vmatprep.mubr.msk.bf16.mxu0 %vm1096_vm0, %v5142_v49  ;;  %v611_v29 = vpop.permute.xlu1 %610  ;;  %v609_v4 = vpop.permute.xlu0 %608 }
 0x1ea   :  { %v753_v48 = vmax.bf16 %v611_v29, %v5130_v12  ;;  %v752_v44 = vmax.bf16 %v609_v4, %v5127_v8  ;;  %1016 = vrot.lane.b32.xlu0 %v5335_v30, %s4184_s30  ;;  %v1279_v8 = vsel %vm1238_vm2, %v1209_v25, %v1062_v63  ;;  %v5455_v25 = vld [vmem:[%s6620_s0 + $0xfc] sm:$0xf] }
 0x1ec   :  { %v5350_v19 = vcombine.low %v752_v44, %v753_v48 }
 0x1ed   :  { %v1003_v2 = vpop.permute.xlu1 %1002  ;;  %v942_v55 = vpop.permute.xlu0 %941 }
 0x1ee   :  { %957 = vrot.lane.b32.xlu0 %v5335_v30, %s4186_s23  ;;  %1077 = vrot.lane.b32.xlu1 %v5350_v19, %s4185_s27  ;;  %v1141_v3 = vsel %vm1096_vm0, %v5080_v27, %v942_v55 }
 0x1ef   :  { %v1211_v39 = vsel %vm1181_vm1, %v1141_v3, %v1003_v2  ;;  %v5457_v2 = vshrl.u32 %v1345_v51, 7 }
 0x1f0   :  { %1678 = vmatmul.mubr.bf16.gmra.mxu0 %v1279_v8 }
 0x1f1   :  { %3743 = vmatprep.mubr.msk.bf16.mxu0 %vm1096_vm0, %v5165_v62  ;;  %v613_v12 = vpop.permute.xlu1 %612  ;;  %v1064_v1 = vpop.permute.xlu0 %1063 }
 0x1f2   :  { %1018 = vrot.lane.b32.xlu1 %v5350_v19, %s4184_s30  ;;  %v754_v22 = vmax.bf16 %v613_v12, %v5145_v21  ;;  %v1282_v38 = vsel %vm1238_vm2, %v1211_v39, %v1064_v1  ;;  %v1343_v1 = vld [vmem:[#allocation2] sm:$0x3] }
 0x1f5   :  { %v944_v26 = vpop.permute.xlu1 %943  ;;  %v615_v5 = vpop.permute.xlu0 %614 }
 0x1f6   :  { %v755_v7 = vmax.bf16 %v615_v5, %v5156_v34  ;;  %312 = vrot.lane.b32.xlu1 %v5366_v45, %s4184_s30  ;;  %v1144_v21 = vsel %vm1096_vm0, %v5102_v0, %v944_v26  ;;  %v5387_v34 = vld [vmem:[%s6620_s0 + $0xf4] sm:$0xf] }
 0x1f8   :  { %v5374_v50 = vcombine.low %v754_v22, %v755_v7  ;;  %1688 = vmatmul.mubr.bf16.gmra.mxu0 %v1282_v38 }
 0x1f9   :  { %3744 = vmatprep.mubr.msk.bf16.mxu0 %vm1096_vm0, %v5195_v23  ;;  %v1066_v27 = vpop.permute.xlu1 %1065  ;;  %v1005_v11 = vpop.permute.xlu0 %1004 }
 0x1fa   :  { %959 = vrot.lane.b32.xlu1 %v5350_v19, %s4186_s23  ;;  %1079 = vrot.lane.b32.xlu0 %v5374_v50, %s4185_s27  ;;  %v1213_v24 = vsel %vm1181_vm1, %v1144_v21, %v1005_v11  ;;  %v6637_v11 = vsub.s32 1, %v5457_v2 }
 0x1fb   :  { %v1285_v59 = vsel %vm1238_vm2, %v1213_v24, %v1066_v27 }
 0x1fd   :  { %v619_v6 = vpop.permute.xlu1 %618  ;;  %v617_v41 = vpop.permute.xlu0 %616 }
 0x1fe   :  { %v757_v32 = vmax.bf16 %v619_v6, %v5177_v47  ;;  %v756_v33 = vmax.bf16 %v617_v41, %v5174_v35  ;;  %314 = vrot.lane.b32.xlu0 %v5387_v34, %s4184_s30 }
 0x200   :  { %v5395_v10 = vcombine.low %v756_v33, %v757_v32  ;;  %1698 = vmatmul.mubr.bf16.gmra.mxu0 %v1285_v59 }
 0x201   :  { %3745 = vmatprep.mubr.msk.bf16.mxu0 %vm1096_vm0, %v5265_v16  ;;  %v1007_v0 = vpop.permute.xlu1 %1006  ;;  %v946_v13 = vpop.permute.xlu0 %945 }
 0x202   :  { %v1147_v56 = vsel %vm1096_vm0, %v5120_v31, %v946_v13  ;;  %1020 = vrot.lane.b32.xlu0 %v5374_v50, %s4184_s30  ;;  %1081 = vrot.lane.b32.xlu1 %v5395_v10, %s4185_s27 }
 0x203   :  { %v1215_v60 = vsel %vm1181_vm1, %v1147_v56, %v1007_v0 }
 0x205   :  { %v621_v35 = vpop.permute.xlu1 %620  ;;  %v1068_v47 = vpop.permute.xlu0 %1067 }
 0x206   :  { %961 = vrot.lane.b32.xlu0 %v5374_v50, %s4186_s23  ;;  %1022 = vrot.lane.b32.xlu1 %v5395_v10, %s4184_s30  ;;  %v1288_v9 = vsel %vm1238_vm2, %v1215_v60, %v1068_v47  ;;  %v758_v20 = vmax.bf16 %v621_v35, %v5198_v18  ;;  %v5436_v18 = vld [vmem:[%s6620_s0 + $0xf8] sm:$0xf]  ;;  %s4187_s0 = smov 44  }
 0x208   :  { %1708 = vmatmul.mubr.bf16.gmra.mxu0 %v1288_v9 }
 0x209   :  { %3746 = vmatprep.mubr.msk.bf16.mxu0 %vm1096_vm0, %v5299_v28  ;;  %v948_v31 = vpop.permute.xlu1 %947  ;;  %v623_v37 = vpop.permute.xlu0 %622 }
 0x20a   :  { %v759_v15 = vmax.bf16 %v623_v37, %v5209_v53  ;;  %v1150_v53 = vsel %vm1096_vm0, %v5142_v49, %v948_v31 }
 0x20c   :  { %v5415_v14 = vcombine.low %v758_v20, %v759_v15 }
 0x20d   :  { %v309_v57 = vpop.permute.xlu1 %308  ;;  %v1009_v58 = vpop.permute.xlu0 %1008 }
 0x20e   :  { %v5418_v46 = vmax.bf16 %v309_v57, %v5220_v42  ;;  %1083 = vrot.lane.b32.xlu0 %v5415_v14, %s4185_s27  ;;  %v1217_v42 = vsel %vm1181_vm1, %v1150_v53, %v1009_v58 }
 0x210   :  { %628 = vrot.lane.b32.xlu1 %v5418_v46, %s4185_s27 }
 0x211   :  { %v311_v63 = vpop.permute.xlu0 %310 }
 0x212   :  { %v5425_v43 = vmax.bf16 %v311_v63, %v5234_v36 }
 0x214   :  { %963 = vrot.lane.b32.xlu1 %v5395_v10, %s4186_s23  ;;  %630 = vrot.lane.b32.xlu0 %v5425_v43, %s4185_s27 }
 0x218   :  { %1024 = vrot.lane.b32.xlu0 %v5415_v14, %s4184_s30 }
 0x21c   :  { %316 = vrot.lane.b32.xlu0 %v5436_v18, %s4184_s30 }
 0x234   :  { %v1070_v36 = vpop.permute.xlu1 %1069 }
 0x235   :  { %v1291_v61 = vsel %vm1238_vm2, %v1217_v42, %v1070_v36 }
 0x236   :  { %1718 = vmatmul.mubr.bf16.gmra.mxu0 %v1291_v61  ;;  %v625_v54 = vpop.permute.xlu0 %624 }
 0x237   :  { %3747 = vmatprep.mubr.msk.bf16.mxu0 %vm1096_vm0, %v5313_v17  ;;  %v760_v4 = vmax.bf16 %v625_v54, %v5273_v40 }
 0x238   :  { %v627_v29 = vpop.permute.xlu1 %626 }
 0x239   :  { %v761_v48 = vmax.bf16 %v627_v29, %v5270_v52  ;;  %v6638_v52 = vsub.s32 0, %v5457_v2 }
 0x23a   :  { %v950_v49 = vpop.permute.xlu0 %949 }
 0x23b   :  { %v5448_v44 = vcombine.low %v760_v4, %v761_v48  ;;  %v1153_v55 = vsel %vm1096_vm0, %v5165_v62, %v950_v49  ;;  %v5468_v26 = vrot.slane %v1343_v1, %v6638_v52 }
 0x23c   :  { %v1011_v40 = vpop.permute.xlu1 %1010 }
 0x23d   :  { %1085 = vrot.lane.b32.xlu1 %v5448_v44, %s4185_s27  ;;  %v1219_v8 = vsel %vm1181_vm1, %v1153_v55, %v1011_v40 }
 0x240   :  { %v952_v62 = vpop.permute.xlu1 %951 }
 0x241   :  { %318 = vrot.lane.b32.xlu1 %v5455_v25, %s4184_s30  ;;  %v1156_v39 = vsel %vm1096_vm0, %v5195_v23, %v952_v62  ;;  %v5483_v23 = vrot.slane %v1343_v1, %v6637_v11 }
 0x244   :  { %v1072_v12 = vpop.permute.xlu0 %1071 }
 0x245   :  { %v1294_v3 = vsel %vm1238_vm2, %v1219_v8, %v1072_v12 }
 0x246   :  { %1728 = vmatmul.mubr.bf16.gmra.mxu0 %v1294_v3 }
 0x247   :  { %3748 = vmatprep.mubr.msk.bf16.mxu0 %vm1096_vm0, %v5335_v30 }
 0x248   :  { %v1549_v5 = vpop.f32.mrf.mxu0  ;;  %v1013_v22 = vpop.permute.xlu0 %1012 }
 0x249   :  { %v1550_v38 = vadd.f32 %v1549_v5, %v5468_v26  ;;  %v1221_v27 = vsel %vm1181_vm1, %v1156_v39, %v1013_v22 }
 0x24a   :  { %v1551_v7 = vpop.f32.mrf.mxu0 }
 0x24b   :  { %v1828_v33 = vmax.f32 %v1550_v38, 0.0  ;;  %v1552_v9 = vadd.f32 %v1551_v7, %v5483_v23 }
 0x24c   :  { %v1553_v21 = vpop.f32.mrf.mxu0  ;;  %v1074_v24 = vpop.permute.xlu1 %1073 }
 0x24d   :  { %v1554_v6 = vadd.f32 %v1553_v21, %v5468_v26  ;;  %v1297_v41 = vsel %vm1238_vm2, %v1221_v27, %v1074_v24  ;;  %v954_v35 = vpop.permute.xlu0 %953  ;;  %v1829_v61 = vmax.f32 %v1552_v9, 0.0 }
 0x24e   :  { %v1555_v32 = vpop.f32.mrf.mxu0  ;;  %1738 = vmatmul.mubr.bf16.gmra.mxu0 %v1297_v41  ;;  %v1159_v57 = vsel %vm1096_vm0, %v5265_v16, %v954_v35 }
 0x24f   :  { %v1830_v59 = vmax.f32 %v1554_v6, 0.0  ;;  %3749 = vmatprep.mubr.msk.bf16.mxu0 %vm1096_vm0, %v5350_v19  ;;  %v1556_v47 = vadd.f32 %v1555_v32, %v5483_v23 }
 0x250   :  { %v1559_v0 = vpop.f32.mrf.mxu0  ;;  %v1015_v37 = vpop.permute.xlu1 %1014 }
 0x251   :  { %v1940_v13 = vpack.c.bf16 %v1830_v59, %v1828_v33  ;;  %v1560_v60 = vadd.f32 %v1559_v0, %v5468_v26  ;;  %v1831_v63 = vmax.f32 %v1556_v47, 0.0  ;;  %v1223_v54 = vsel %vm1181_vm1, %v1159_v57, %v1015_v37 }
 0x252   :  { %v1561_v56 = vpop.f32.mrf.mxu0 }
 0x253   :  { %v1562_v20 = vadd.f32 %v1561_v56, %v5483_v23  ;;  %v1832_v53 = vmax.f32 %v1560_v60, 0.0  ;;  %v5495_v8 = vpack.c.bf16 %v1831_v63, %v1829_v61 }
 0x254   :  { %v1563_v31 = vpop.f32.mrf.mxu0  ;;  %v956_v3 = vpop.permute.xlu1 %955 }
 0x255   :  { %v1564_v15 = vadd.f32 %v1563_v31, %v5468_v26  ;;  %v1833_v48 = vmax.f32 %v1562_v20, 0.0  ;;  %v1162_v27 = vsel %vm1096_vm0, %v5299_v28, %v956_v3 }
 0x256   :  { %v1565_v58 = vpop.f32.mrf.mxu0 }
 0x257   :  { %v1834_v42 = vmax.f32 %v1564_v15, 0.0  ;;  %v1566_v36 = vadd.f32 %v1565_v58, %v5483_v23 }
 0x258   :  { %v1569_v29 = vpop.f32.mrf.mxu0  ;;  %v1076_v4 = vpop.permute.xlu0 %1075 }
 0x259   :  { %v1942_v51 = vpack.c.bf16 %v1834_v42, %v1832_v53  ;;  %v1835_v49 = vmax.f32 %v1566_v36, 0.0  ;;  %v1300_v55 = vsel %vm1238_vm2, %v1223_v54, %v1076_v4  ;;  %v1570_v1 = vadd.f32 %v1569_v29, %v5468_v26 }
 0x25a   :  { %v1571_v40 = vpop.f32.mrf.mxu0  ;;  %1748 = vmatmul.mubr.bf16.gmra.mxu0 %v1300_v55 }
 0x25b   :  { %v5497_v16 = vmax.bf16 %v1942_v51, %v1940_v13  ;;  %v5499_v12 = vpack.c.bf16 %v1835_v49, %v1833_v48  ;;  %3750 = vmatprep.mubr.msk.bf16.mxu0 %vm1096_vm0, %v5374_v50  ;;  %v1572_v22 = vadd.f32 %v1571_v40, %v5483_v23  ;;  %v1836_v21 = vmax.f32 %v1570_v1, 0.0 }
 0x25c   :  { %v1573_v62 = vpop.f32.mrf.mxu0  ;;  %v1017_v39 = vpop.permute.xlu0 %1016 }
 0x25d   :  { %v1574_v7 = vadd.f32 %v1573_v62, %v5468_v26  ;;  %v1225_v41 = vsel %vm1181_vm1, %v1162_v27, %v1017_v39  ;;  %v1837_v59 = vmax.f32 %v1572_v22, 0.0 }
 0x25e   :  { %v1575_v38 = vpop.f32.mrf.mxu0 }
 0x25f   :  { %v1838_v24 = vmax.f32 %v1574_v7, 0.0  ;;  %v1576_v6 = vadd.f32 %v1575_v38, %v5483_v23 }
 0x260   :  { %v1579_v32 = vpop.f32.mrf.mxu0  ;;  %v1078_v33 = vpop.permute.xlu1 %1077 }
 0x261   :  { %v1944_v0 = vpack.c.bf16 %v1838_v24, %v1836_v21  ;;  %v1839_v13 = vmax.f32 %v1576_v6, 0.0  ;;  %v1303_v56 = vsel %vm1238_vm2, %v1225_v41, %v1078_v33  ;;  %v1580_v60 = vadd.f32 %v1579_v32, %v5468_v26  ;;  %v958_v42 = vpop.permute.xlu0 %957 }
 0x262   :  { %v1581_v35 = vpop.f32.mrf.mxu0  ;;  %1758 = vmatmul.mubr.bf16.gmra.mxu0 %v1303_v56  ;;  %v1165_v55 = vsel %vm1096_vm0, %v5313_v17, %v958_v42 }
 0x263   :  { %v5513_v47 = vpack.c.bf16 %v1839_v13, %v1837_v59  ;;  %3751 = vmatprep.mubr.msk.bf16.mxu0 %vm1096_vm0, %v5395_v10  ;;  %v1582_v31 = vadd.f32 %v1581_v35, %v5483_v23  ;;  %v1840_v15 = vmax.f32 %v1580_v60, 0.0 }
 0x264   :  { %v1583_v28 = vpop.f32.mrf.mxu0  ;;  %v1019_v9 = vpop.permute.xlu1 %1018 }
 0x265   :  { %v1584_v37 = vadd.f32 %v1583_v28, %v5468_v26  ;;  %v1841_v36 = vmax.f32 %v1582_v31, 0.0  ;;  %v1227_v1 = vsel %vm1181_vm1, %v1165_v55, %v1019_v9 }
 0x266   :  { %v1585_v20 = vpop.f32.mrf.mxu0 }
 0x267   :  { %v1842_v57 = vmax.f32 %v1584_v37, 0.0  ;;  %v1586_v58 = vadd.f32 %v1585_v20, %v5483_v23 }
 0x268   :  { %v1589_v63 = vpop.f32.mrf.mxu0  ;;  %v313_v53 = vpop.permute.xlu1 %312 }
 0x269   :  { %v1946_v61 = vpack.c.bf16 %v1842_v57, %v1840_v15  ;;  %v1843_v54 = vmax.f32 %v1586_v58, 0.0  ;;  %v5522_v29 = vmax.bf16 %v313_v53, %v5366_v45  ;;  %v1590_v49 = vadd.f32 %v1589_v63, %v5468_v26 }
 0x26a   :  { %v1591_v4 = vpop.f32.mrf.mxu0 }
 0x26b   :  { %v5524_v48 = vmax.bf16 %v1946_v61, %v1944_v0  ;;  %v5526_v51 = vpack.c.bf16 %v1843_v54, %v1841_v36  ;;  %632 = vrot.lane.b32.xlu0 %v5522_v29, %s4185_s27  ;;  %v1592_v3 = vadd.f32 %v1591_v4, %v5483_v23  ;;  %v1844_v38 = vmax.f32 %v1590_v49, 0.0 }
 0x26c   :  { %v1593_v40 = vpop.f32.mrf.mxu0  ;;  %v1080_v22 = vpop.permute.xlu0 %1079 }
 0x26d   :  { %v1999_v45 = vmax.bf16 %v5526_v51, %v5513_v47  ;;  %v1594_v62 = vadd.f32 %v1593_v40, %v5468_v26  ;;  %v1306_v39 = vsel %vm1238_vm2, %v1227_v1, %v1080_v22  ;;  %v960_v17 = vpop.permute.xlu1 %959  ;;  %v1845_v6 = vmax.f32 %v1592_v3, 0.0 }
 0x26e   :  { %v1595_v7 = vpop.f32.mrf.mxu0  ;;  %1768 = vmatmul.mubr.bf16.gmra.mxu0 %v1306_v39  ;;  %v1168_v28 = vsel %vm1096_vm0, %v5335_v30, %v960_v17 }
 0x26f   :  { %v1846_v27 = vmax.f32 %v1594_v62, 0.0  ;;  %v1596_v21 = vadd.f32 %v1595_v7, %v5483_v23  ;;  %965 = vrot.lane.b32.xlu0 %v5415_v14, %s4186_s23  ;;  %3752 = vmatprep.mubr.msk.bf16.mxu0 %vm1096_vm0, %v5415_v14 }
 0x270   :  { %v1599_v24 = vpop.f32.mrf.mxu0  ;;  %v315_v33 = vpop.permute.xlu0 %314 }
 0x271   :  { %v1948_v41 = vpack.c.bf16 %v1846_v27, %v1844_v38  ;;  %v1847_v32 = vmax.f32 %v1596_v21, 0.0  ;;  %v5545_v59 = vmax.bf16 %v315_v33, %v5387_v34  ;;  %v1600_v56 = vadd.f32 %v1599_v24, %v5468_v26 }
 0x272   :  { %v1601_v0 = vpop.f32.mrf.mxu0 }
 0x273   :  { %v5547_v13 = vpack.c.bf16 %v1847_v32, %v1845_v6  ;;  %634 = vrot.lane.b32.xlu1 %v5545_v59, %s4185_s27  ;;  %v1602_v9 = vadd.f32 %v1601_v0, %v5483_v23  ;;  %v1848_v15 = vmax.f32 %v1600_v56, 0.0 }
 0x274   :  { %v1603_v35 = vpop.f32.mrf.mxu0  ;;  %v1082_v60 = vpop.permute.xlu1 %1081 }
 0x275   :  { %v1604_v31 = vadd.f32 %v1603_v35, %v5468_v26  ;;  %v1021_v37 = vpop.permute.xlu0 %1020  ;;  %v1849_v30 = vmax.f32 %v1602_v9, 0.0 }
 0x276   :  { %v1229_v34 = vsel %vm1181_vm1, %v1168_v28, %v1021_v37  ;;  %v1605_v20 = vpop.f32.mrf.mxu0 }
 0x277   :  { %v1850_v57 = vmax.f32 %v1604_v31, 0.0  ;;  %v1606_v58 = vadd.f32 %v1605_v20, %v5483_v23  ;;  %v1309_v63 = vsel %vm1238_vm2, %v1229_v34, %v1082_v60  ;;  %1026 = vrot.lane.b32.xlu1 %v5448_v44, %s4184_s30 }
 0x278   :  { %v5559_v53 = vpop.f32.mrf.mxu0  ;;  %1778 = vmatmul.mubr.bf16.gmra.mxu0 %v1309_v63  ;;  %v1023_v1 = vpop.permute.xlu1 %1022 }
 0x279   :  { %v1950_v42 = vpack.c.bf16 %v1850_v57, %v1848_v15  ;;  %v1851_v36 = vmax.f32 %v1606_v58, 0.0  ;;  %3753 = vmatprep.mubr.msk.bf16.mxu0 %vm1096_vm0, %v5448_v44  ;;  %v962_v61 = vpop.permute.xlu0 %961 }
 0x27a   :  { %v1611_v54 = vpop.f32.mrf.mxu0  ;;  %v1171_v3 = vsel %vm1096_vm0, %v5350_v19, %v962_v61 }
 0x27b   :  { %v5565_v4 = vmax.bf16 %v1950_v42, %v1948_v41  ;;  %v5567_v49 = vpack.c.bf16 %v1851_v36, %v1849_v30  ;;  %v1612_v62 = vadd.f32 %v1611_v54, %v5483_v23  ;;  %v1231_v27 = vsel %vm1181_vm1, %v1171_v3, %v1023_v1 }
 0x27c   :  { %v5569_v55 = vpop.f32.mrf.mxu0 }
 0x27d   :  { %v2001_v40 = vmax.bf16 %v5567_v49, %v5547_v13  ;;  %v1853_v21 = vmax.f32 %v1612_v62, 0.0 }
 0x27e   :  { %v1615_v22 = vpop.f32.mrf.mxu0 }
 0x27f   :  { %v1616_v7 = vadd.f32 %v1615_v22, %v5483_v23 }
 0x280   :  { %v5577_v39 = vpop.f32.mrf.mxu0  ;;  %v1084_v38 = vpop.permute.xlu0 %1083 }
 0x281   :  { %v1855_v17 = vmax.f32 %v1616_v7, 0.0  ;;  %v1312_v24 = vsel %vm1238_vm2, %v1231_v27, %v1084_v38 }
 0x282   :  { %v1621_v6 = vpop.f32.mrf.mxu0  ;;  %1788 = vmatmul.mubr.bf16.gmra.mxu0 %v1312_v24  ;;  %v629_v33 = vpop.permute.xlu1 %628 }
 0x283   :  { %v5581_v41 = vpack.c.bf16 %v1855_v17, %v1853_v21  ;;  %v1622_v19 = vadd.f32 %v1621_v6, %v5483_v23  ;;  %v762_v60 = vmax.bf16 %v629_v33, %v5418_v46 }
 0x284   :  { %v5583_v32 = vpop.f32.mrf.mxu0 }
 0x285   :  { %v1857_v31 = vmax.f32 %v1622_v19, 0.0 }
 0x286   :  { %v1625_v0 = vpop.f32.mrf.mxu0  ;;  %v631_v35 = vpop.permute.xlu0 %630 }
 0x287   :  { %v1626_v56 = vadd.f32 %v1625_v0, %v5483_v23  ;;  %v763_v28 = vmax.bf16 %v631_v35, %v5425_v43 }
 0x288   :  { %v5589_v9 = vpop.f32.mrf.mxu0 }
 0x289   :  { %v1859_v37 = vmax.f32 %v1626_v56, 0.0  ;;  %v5591_v34 = vcombine.low %v762_v60, %v763_v28 }
 0x28a   :  { %v1631_v20 = vpop.f32.mrf.mxu0  ;;  %v1025_v57 = vpop.permute.xlu0 %1024 }
 0x28b   :  { %v5593_v15 = vpack.c.bf16 %v1859_v37, %v1857_v31  ;;  %1087 = vrot.lane.b32.xlu0 %v5591_v34, %s4185_s27  ;;  %3754 = vmatprep.mubr.msk.bf16.mxu0 %vm1096_vm0, %v5591_v34  ;;  %v1632_v43 = vadd.f32 %v1631_v20, %v5483_v23 }
 0x28c   :  { %v5595_v58 = vpop.f32.mrf.mxu0 }
 0x28d   :  { %v2003_v46 = vmax.bf16 %v5593_v15, %v5581_v41  ;;  %v1861_v54 = vmax.f32 %v1632_v43, 0.0 }
 0x28e   :  { %v1635_v63 = vpop.f32.mrf.mxu0  ;;  %v317_v42 = vpop.permute.xlu0 %316 }
 0x28f   :  { %v1636_v30 = vadd.f32 %v1635_v63, %v5483_v23  ;;  %v5606_v36 = vmax.bf16 %v317_v42, %v5436_v18 }
 0x290   :  { %v5608_v61 = vpop.f32.mrf.mxu0 }
 0x291   :  { %v1863_v1 = vmax.f32 %v1636_v30, 0.0  ;;  %636 = vrot.lane.b32.xlu1 %v5606_v36, %s4185_s27 }
 0x292   :  { %v1641_v3 = vpop.f32.mrf.mxu0 }
 0x293   :  { %v5612_v62 = vpack.c.bf16 %v1863_v1, %v1861_v54  ;;  %v1642_v7 = vadd.f32 %v1641_v3, %v5483_v23 }
 0x294   :  { %v1643_v22 = vpop.f32.mrf.mxu0 }
 0x295   :  { %967 = vrot.lane.b32.xlu1 %v5448_v44, %s4186_s23  ;;  %v1865_v21 = vmax.f32 %v1642_v7, 0.0  ;;  %v964_v7 = vpop.permute.xlu1 %963 }
 0x296   :  { %v1645_v38 = vpop.f32.mrf.mxu0 }
 0x297   :  { %v1646_v18 = vadd.f32 %v1645_v38, %v5483_v23 }
 0x298   :  { %v5618_v27 = vpop.f32.mrf.mxu0 }
 0x299   :  { %v1867_v17 = vmax.f32 %v1646_v18, 0.0 }
 0x29a   :  { %v1651_v24 = vpop.f32.mrf.mxu0 }
 0x29b   :  { %v5620_v6 = vpack.c.bf16 %v1867_v17, %v1865_v21  ;;  %v1652_v0 = vadd.f32 %v1651_v24, %v5483_v23  ;;  %v1174_v24 = vsel %vm1096_vm0, %v5374_v50, %v964_v7 }
 0x29c   :  { %v5622_v19 = vpop.f32.mrf.mxu0 }
 0x29d   :  { %v2005_v33 = vmax.bf16 %v5620_v6, %v5612_v62  ;;  %v1869_v60 = vmax.f32 %v1652_v0, 0.0 }
 0x29e   :  { %v1655_v56 = vpop.f32.mrf.mxu0 }
 0x29f   :  { %v1656_v35 = vadd.f32 %v1655_v56, %v5483_v23  ;;  %v1233_v56 = vsel %vm1181_vm1, %v1174_v24, %v1025_v57  ;;  %v1624_v57 = vadd.f32 %v5583_v32, %v5468_v26  ;;  %v1614_v24 = vadd.f32 %v5569_v55, %v5468_v26 }
 0x2a0   :  { %v1659_v44 = vpop.f32.mrf.mxu0  ;;  %v1634_v55 = vadd.f32 %v5595_v58, %v5468_v26  ;;  %v1654_v58 = vadd.f32 %v5622_v19, %v5468_v26 }
 0x2a1   :  { %v1871_v28 = vmax.f32 %v1656_v35, 0.0  ;;  %v1854_v32 = vmax.f32 %v1614_v24, 0.0 }
 0x2a2   :  { %v1661_v31 = vpop.f32.mrf.mxu0  ;;  %v1862_v11 = vmax.f32 %v1634_v55, 0.0 }
 0x2a3   :  { %v5628_v37 = vpack.c.bf16 %v1871_v28, %v1869_v60  ;;  %v1662_v43 = vadd.f32 %v1661_v31, %v5483_v23 }
 0x2a4   :  { %v1663_v20 = vpop.f32.mrf.mxu0 }
 0x2a5   :  { %v1873_v54 = vmax.f32 %v1662_v43, 0.0 }
 0x2a6   :  { %v1665_v63 = vpop.f32.mrf.mxu0 }
 0x2a7   :  { %v1666_v30 = vadd.f32 %v1665_v63, %v5483_v23 }
 0x2a8   :  { %v5632_v42 = vpop.f32.mrf.mxu0 }
 0x2a9   :  { %v1875_v1 = vmax.f32 %v1666_v30, 0.0 }
 0x2aa   :  { %v1671_v3 = vpop.f32.mrf.mxu0 }
 0x2ab   :  { %v5634_v38 = vpack.c.bf16 %v1875_v1, %v1873_v54  ;;  %v1672_v17 = vadd.f32 %v1671_v3, %v5483_v23 }
 0x2ac   :  { %v1673_v18 = vpop.f32.mrf.mxu0 }
 0x2ad   :  { %v1877_v43 = vmax.f32 %v1672_v17, 0.0 }
 0x2ae   :  { %v1675_v0 = vpop.f32.mrf.mxu0 }
 0x2af   :  { %v1676_v35 = vadd.f32 %v1675_v0, %v5483_v23  ;;  %v1086_v60 = vpop.permute.xlu1 %1085  ;;  %v1620_v0 = vadd.f32 %v5577_v39, %v5468_v26  ;;  %v1640_v39 = vadd.f32 %v5608_v61, %v5468_v26  ;;  %v1660_v61 = vadd.f32 %v1659_v44, %v5468_v26 }
 0x2b0   :  { %v1679_v28 = vpop.f32.mrf.mxu0  ;;  %v1315_v31 = vsel %vm1238_vm2, %v1233_v56, %v1086_v60  ;;  %v1644_v60 = vadd.f32 %v1643_v22, %v5468_v26  ;;  %v1630_v22 = vadd.f32 %v5589_v9, %v5468_v26 }
 0x2b1   :  { %v1879_v63 = vmax.f32 %v1676_v35, 0.0  ;;  %1798 = vmatmul.mubr.bf16.gmra.mxu0 %v1315_v31  ;;  %v1858_v35 = vmax.f32 %v1624_v57, 0.0  ;;  %v1864_v52 = vmax.f32 %v1640_v39, 0.0  ;;  %v1872_v44 = vmax.f32 %v1660_v61, 0.0 }
 0x2b2   :  { %v5644_v30 = vpop.f32.mrf.mxu0  ;;  %v1866_v57 = vmax.f32 %v1644_v60, 0.0  ;;  %v1674_v39 = vadd.f32 %v1673_v18, %v5468_v26 }
 0x2b3   :  { %v5646_v54 = vpack.c.bf16 %v1879_v63, %v1877_v43  ;;  %v319_v1 = vpop.permute.xlu1 %318  ;;  %v1856_v43 = vmax.f32 %v1620_v0, 0.0 }
 0x2b4   :  { %v1683_v3 = vpop.f32.mrf.mxu0  ;;  %v5649_v50 = vmax.bf16 %v319_v1, %v5455_v25  ;;  %v1610_v25 = vadd.f32 %v5559_v53, %v5468_v26  ;;  %v1664_v53 = vadd.f32 %v1663_v20, %v5468_v26  ;;  %v1650_v20 = vadd.f32 %v5618_v27, %v5468_v26 }
 0x2b5   :  { %v1954_v1 = vpack.c.bf16 %v1858_v35, %v1856_v43  ;;  %v1860_v35 = vmax.f32 %v1630_v22, 0.0  ;;  %v1958_v60 = vpack.c.bf16 %v1866_v57, %v1864_v52  ;;  %v1684_v19 = vadd.f32 %v1683_v3, %v5468_v26 }
 0x2b6   :  { %v5651_v7 = vpop.f32.mrf.mxu0  ;;  %638 = vrot.lane.b32.xlu0 %v5649_v50, %s4185_s27  ;;  %v1870_v43 = vmax.f32 %v1654_v58, 0.0  ;;  %v1868_v21 = vmax.f32 %v1650_v20, 0.0  ;;  %v1670_v52 = vadd.f32 %v5632_v42, %v5468_v26  ;;  %v1878_v57 = vmax.f32 %v1674_v39, 0.0 }
 0x2b7   :  { %v1956_v55 = vpack.c.bf16 %v1862_v11, %v1860_v35 }
 0x2b8   :  { %v1689_v17 = vpop.f32.mrf.mxu0  ;;  %v1960_v22 = vpack.c.bf16 %v1870_v43, %v1868_v21  ;;  %v1876_v61 = vmax.f32 %v1670_v52, 0.0 }
 0x2b9   :  { %v1690_v20 = vadd.f32 %v1689_v17, %v5468_v26 }
 0x2ba   :  { %v5661_v56 = vpop.f32.mrf.mxu0  ;;  %1028 = vrot.lane.b32.xlu0 %v5591_v34, %s4184_s30  ;;  %v1852_v34 = vmax.f32 %v1610_v25, 0.0  ;;  %v1874_v25 = vmax.f32 %v1664_v53, 0.0  ;;  %v5695_v53 = vmax.bf16 %v1958_v60, %v1956_v55 }
 0x2bc   :  { %v1693_v31 = vpop.f32.mrf.mxu0  ;;  %v1952_v0 = vpack.c.bf16 %v1854_v32, %v1852_v34  ;;  %v1680_v34 = vadd.f32 %v1679_v28, %v5468_v26  ;;  %v1962_v27 = vpack.c.bf16 %v1874_v25, %v1872_v44  ;;  %v1964_v25 = vpack.c.bf16 %v1878_v57, %v1876_v61 }
 0x2bd   :  { %v1694_v18 = vadd.f32 %v1693_v31, %v5468_v26  ;;  %v1884_v31 = vmax.f32 %v1690_v20, 0.0  ;;  %v1692_v61 = vadd.f32 %v5661_v56, %v5483_v23 }
 0x2be   :  { %v5672_v63 = vpop.f32.mrf.mxu0  ;;  %2056 = vrot.lane.b32.xlu0 %v5524_v48, %s4187_s0  ;;  %v5688_v9 = vmax.bf16 %v1954_v1, %v1952_v0  ;;  %v1882_v1 = vmax.f32 %v1684_v19, 0.0  ;;  %v1880_v11 = vmax.f32 %v1680_v34, 0.0  ;;  %v5704_v58 = vmax.bf16 %v1962_v27, %v1960_v22 }
 0x2bf   :  { %v1886_v35 = vmax.f32 %v1694_v18, 0.0 }
 0x2c0   :  { %v1699_v24 = vpop.f32.mrf.mxu0  ;;  %v1966_v0 = vpack.c.bf16 %v1882_v1, %v1880_v11 }
 0x2c1   :  { %v1700_v28 = vadd.f32 %v1699_v24, %v5468_v26  ;;  %v1968_v19 = vpack.c.bf16 %v1886_v35, %v1884_v31 }
 0x2c2   :  { %v5682_v5 = vpop.f32.mrf.mxu0  ;;  %2060 = vrot.lane.b32.xlu0 %v5565_v4, %s4187_s0  ;;  %v5709_v21 = vmax.bf16 %v1966_v0, %v1964_v25 }
 0x2c3   :  { %v1888_v60 = vmax.f32 %v1700_v28, 0.0 }
 0x2c4   :  { %v1703_v32 = vpop.f32.mrf.mxu0 }
 0x2c5   :  { %v1704_v3 = vadd.f32 %v1703_v32, %v5468_v26 }
 0x2c6   :  { %2064 = vrot.lane.b32.xlu0 %v5688_v9, %s4187_s0  ;;  %v1705_v17 = vpop.f32.mrf.mxu0 }
 0x2c7   :  { %v1890_v42 = vmax.f32 %v1704_v3, 0.0  ;;  %v1682_v3 = vadd.f32 %v5644_v30, %v5483_v23  ;;  %v1706_v51 = vadd.f32 %v1705_v17, %v5483_v23  ;;  %v1696_v30 = vadd.f32 %v5672_v63, %v5483_v23 }
 0x2c8   :  { %v1709_v34 = vpop.f32.mrf.mxu0  ;;  %v6649_v17 = vmax.bf16 %v5634_v38, %v5628_v37 }
 0x2c9   :  { %v1970_v24 = vpack.c.bf16 %v1890_v42, %v1888_v60  ;;  %v1891_v0 = vmax.f32 %v1706_v51, 0.0  ;;  %v1887_v60 = vmax.f32 %v1696_v30, 0.0 }
 0x2ca   :  { %2068 = vrot.lane.b32.xlu0 %v5695_v53, %s4187_s0  ;;  %v1711_v52 = vpop.f32.mrf.mxu0 }
 0x2cb   :  { %v5713_v43 = vmax.bf16 %v1970_v24, %v1968_v19 }
 0x2cc   :  { %v1713_v1 = vpop.f32.mrf.mxu0 }
 0x2cd   :  { %v1714_v57 = vadd.f32 %v1713_v1, %v5468_v26 }
 0x2ce   :  { %2072 = vrot.lane.b32.xlu0 %v5704_v58, %s4187_s0 }
 0x2cf   :  { %v1894_v28 = vmax.f32 %v1714_v57, 0.0 }
 0x2d2   :  { %2076 = vrot.lane.b32.xlu0 %v5709_v21, %s4187_s0 }
 0x2d6   :  { %2080 = vrot.lane.b32.xlu0 %v5713_v43, %s4187_s0 }
 0x2dd   :  { %v633_v44 = vpop.permute.xlu0 %632 }
 0x2de   :  { %v764_v55 = vmax.bf16 %v633_v44, %v5522_v29  ;;  %v1686_v29 = vadd.f32 %v5651_v7, %v5483_v23  ;;  %v1702_v7 = vadd.f32 %v5682_v5, %v5483_v23 }
 0x2e0   :  { %v1883_v47 = vmax.f32 %v1686_v29, 0.0  ;;  %v1889_v31 = vmax.f32 %v1702_v7, 0.0 }
 0x2e1   :  { %v966_v11 = vpop.permute.xlu0 %965 }
 0x2e2   :  { %v1177_v5 = vsel %vm1096_vm0, %v5395_v10, %v966_v11 }
 0x2e5   :  { %v635_v32 = vpop.permute.xlu1 %634 }
 0x2e6   :  { %v765_v39 = vmax.bf16 %v635_v32, %v5545_v59  ;;  %v1715_v59 = vpop.f32.mrf.mxu0  ;;  %v1885_v32 = vmax.f32 %v1692_v61, 0.0 }
 0x2e7   :  { %v1716_v24 = vadd.f32 %v1715_v59, %v5483_v23 }
 0x2e8   :  { %v3707_v27 = vcombine.low %v764_v55, %v765_v39  ;;  %v1971_v55 = vpack.c.bf16 %v1891_v0, %v1889_v31  ;;  %v1712_v39 = vadd.f32 %v1711_v52, %v5483_v23  ;;  %v1969_v1 = vpack.c.bf16 %v1887_v60, %v1885_v32  ;;  %v4001_v32 = vld [vmem:[%s6623_s3 + $0x54] ss:$8 sps:$4 sm:$0xff]  }
 0x2e9   :  { %v1027_v41 = vpop.permute.xlu1 %1026  ;;  %v1895_v29 = vmax.f32 %v1716_v24, 0.0 }
 0x2ea   :  { %1089 = vrot.lane.b32.xlu1 %v3707_v27, %s4185_s27  ;;  %3755 = vmatprep.mubr.msk.bf16.mxu0 %vm1096_vm0, %v3707_v27  ;;  %v1235_v62 = vsel %vm1181_vm1, %v1177_v5, %v1027_v41  ;;  %v2011_v37 = vmax.bf16 %v1971_v55, %v1969_v1  ;;  %v1893_v38 = vmax.f32 %v1712_v39, 0.0  ;;  %v4003_v55 = vld [vmem:[%s6623_s3 + $0x50] ss:$8 sps:$4 sm:$0xff]  }
 0x2ee   :  { %2058 = vrot.lane.b32.xlu1 %v1999_v45, %s4187_s0  ;;  %v1710_v45 = vadd.f32 %v1709_v34, %v5468_v26 }
 0x2f0   :  { %v1892_v63 = vmax.f32 %v1710_v45, 0.0 }
 0x2f2   :  { %2062 = vrot.lane.b32.xlu1 %v2001_v40, %s4187_s0  ;;  %v1881_v40 = vmax.f32 %v1682_v3, 0.0 }
 0x2f6   :  { %v1719_v22 = vpop.f32.mrf.mxu0  ;;  %2066 = vrot.lane.b32.xlu1 %v2003_v46, %s4187_s0  ;;  %v1967_v46 = vpack.c.bf16 %v1883_v47, %v1881_v40 }
 0x2f7   :  { %v1720_v49 = vadd.f32 %v1719_v22, %v5468_v26  ;;  %v1973_v22 = vpack.c.bf16 %v1895_v29, %v1893_v38  ;;  %v4006_v38 = vld [vmem:[%s6623_s3 + $0x40] ss:$8 sps:$4 sm:$0xff]  }
 0x2f8   :  { %v1721_v13 = vpop.f32.mrf.mxu0  ;;  %v2009_v44 = vmax.bf16 %v1967_v46, %v5646_v54 }
 0x2f9   :  { %v1896_v42 = vmax.f32 %v1720_v49, 0.0  ;;  %v1722_v56 = vadd.f32 %v1721_v13, %v5483_v23  ;;  %v6650_v49 = vmax.bf16 %v5499_v12, %v5495_v8 }
 0x2fa   :  { %v1723_v18 = vpop.f32.mrf.mxu0  ;;  %2070 = vrot.lane.b32.xlu1 %v2005_v33, %s4187_s0  ;;  %v1972_v33 = vpack.c.bf16 %v1894_v28, %v1892_v63 }
 0x2fb   :  { %v1724_v15 = vadd.f32 %v1723_v18, %v5468_v26  ;;  %v1897_v59 = vmax.f32 %v1722_v56, 0.0  ;;  %v3997_v56 = vld [vmem:[%s6623_s3 + $0x70] ss:$8 sps:$4 sm:$0xff]  }
 0x2fc   :  { %v1725_v20 = vpop.f32.mrf.mxu0 }
 0x2fd   :  { %v1898_v25 = vmax.f32 %v1724_v15, 0.0  ;;  %v1726_v35 = vadd.f32 %v1725_v20, %v5483_v23  ;;  %v1088_v6 = vpop.permute.xlu0 %1087 }
 0x2fe   :  { %2074 = vrot.lane.b32.xlu1 %v6649_v17, %s4187_s0  ;;  %v1318_v10 = vsel %vm1238_vm2, %v1235_v62, %v1088_v6  ;;  %v4000_v17 = vld [vmem:[%s6623_s3 + $0x60] ss:$8 sps:$4 sm:$0xff]  }
 0x2ff   :  { %v1974_v19 = vpack.c.bf16 %v1898_v25, %v1896_v42  ;;  %1808 = vmatmul.mubr.bf16.gmra.mxu0 %v1318_v10  ;;  %v1899_v27 = vmax.f32 %v1726_v35, 0.0 }
 0x301   :  { %v5765_v34 = vmax.bf16 %v1974_v19, %v1972_v33  ;;  %v1975_v3 = vpack.c.bf16 %v1899_v27, %v1897_v59  ;;  %v3995_v33 = vld [vmem:[%s6623_s3 + $0x74] ss:$8 sps:$4 sm:$0xff]   ;;  %v3998_v19 = vld [vmem:[%s6623_s3 + $0x64] ss:$8 sps:$4 sm:$0xff]  }
 0x302   :  { %2078 = vrot.lane.b32.xlu1 %v2009_v44, %s4187_s0  ;;  %2726 = vmatprep.subr.bf16.mxu1 %v3995_v33  ;;  %v4004_v27 = vld [vmem:[%s6623_s3 + $0x44] ss:$8 sps:$4 sm:$0xff]  }
 0x303   :  { %2084 = vrot.lane.b32.xlu0 %v5765_v34, %s4187_s0  ;;  %v2013_v57 = vmax.bf16 %v1975_v3, %v1973_v22  ;;  %2727 = vmatpush1.bf16.msra.mxu1 %v3997_v56  ;;  %v637_v10 = vpop.permute.xlu1 %636  ;;  %v4007_v3 = vld [vmem:[%s6623_s3 + $0x34] ss:$8 sps:$4 sm:$0xff]   ;;  %v4039_v56 = vld [vmem:[%s6623_s3 + $0x90] ss:$8 sps:$4 sm:$0xff]  }
 0x304   :  { %2728 = vmatprep.subr.bf16.mxu1 %v3998_v19  ;;  %v766_v1 = vmax.bf16 %v637_v10, %v5606_v36  ;;  %v4009_v36 = vld [vmem:[%s6623_s3 + $0x30] ss:$8 sps:$4 sm:$0xff]  }
 0x306   :  { %v1729_v54 = vpop.f32.mrf.mxu0  ;;  %2082 = vrot.lane.b32.xlu1 %v2011_v37, %s4187_s0 }
 0x307   :  { %2052 = vrot.lane.b32.xlu0 %v5497_v16, %s4187_s0  ;;  %v1730_v40 = vadd.f32 %v1729_v54, %v5468_v26  ;;  %2729 = vmatpush1.bf16.msra.mxu1 %v4000_v17  ;;  %v968_v19 = vpop.permute.xlu1 %967 }
 0x308   :  { %v1731_v52 = vpop.f32.mrf.mxu0  ;;  %2730 = vmatprep.subr.bf16.mxu1 %v4001_v32  ;;  %v1180_v10 = vsel %vm1096_vm0, %v5415_v14, %v968_v19 }
 0x309   :  { %v1732_v18 = vadd.f32 %v1731_v52, %v5483_v23  ;;  %v1900_v61 = vmax.f32 %v1730_v40, 0.0  ;;  %v4012_v52 = vld [vmem:[%s6623_s3 + $0x20] ss:$8 sps:$4 sm:$0xff]  }
 0x30a   :  { %v1733_v47 = vpop.f32.mrf.mxu0  ;;  %2086 = vrot.lane.b32.xlu1 %v2013_v57, %s4187_s0  ;;  %v4013_v57 = vld [vmem:[%s6623_s3 + $0x14] ss:$8 sps:$4 sm:$0xff]  }
 0x30b   :  { %v1734_v13 = vadd.f32 %v1733_v47, %v5468_v26  ;;  %v1901_v5 = vmax.f32 %v1732_v18, 0.0  ;;  %2731 = vmatpush1.bf16.msra.mxu1 %v4003_v55 }
 0x30c   :  { %v1735_v51 = vpop.f32.mrf.mxu0  ;;  %2732 = vmatprep.subr.bf16.mxu1 %v4004_v27  ;;  %v4040_v27 = vld [vmem:[%s6623_s3 + $0x84] ss:$8 sps:$4 sm:$0xff]  }
 0x30d   :  { %v1736_v7 = vadd.f32 %v1735_v51, %v5483_v23  ;;  %v1902_v41 = vmax.f32 %v1734_v13, 0.0  ;;  %v4015_v51 = vld [vmem:[%s6623_s3 + $0x10] ss:$8 sps:$4 sm:$0xff]  }
 0x30e   :  { %v1739_v45 = vpop.f32.mrf.mxu0  ;;  %2054 = vrot.lane.b32.xlu1 %v6650_v49, %s4187_s0  ;;  %v4018_v49 = vld [vmem:[%s6623_s3] ss:$8 sps:$4 sm:$0xff]  }
 0x30f   :  { %v1740_v11 = vadd.f32 %v1739_v45, %v5468_v26  ;;  %v1903_v63 = vmax.f32 %v1736_v7, 0.0  ;;  %v1976_v42 = vpack.c.bf16 %v1902_v41, %v1900_v61  ;;  %2733 = vmatpush1.bf16.msra.mxu1 %v4006_v38  ;;  %v4016_v45 = vld [vmem:[%s6623_s3 + $0x4] ss:$8 sps:$4 sm:$0xff]   ;;  %v4024_v41 = vld [vmem:[%s6623_s3 + $0xe0] ss:$8 sps:$4 sm:$0xff]  }
 0x310   :  { %v1741_v30 = vpop.f32.mrf.mxu0  ;;  %2734 = vmatprep.subr.bf16.mxu1 %v4007_v3  ;;  %v4027_v61 = vld [vmem:[%s6623_s3 + $0xd0] ss:$8 sps:$4 sm:$0xff]  }
 0x311   :  { %v1742_v15 = vadd.f32 %v1741_v30, %v5483_v23  ;;  %v1904_v8 = vmax.f32 %v1740_v11, 0.0  ;;  %v1977_v31 = vpack.c.bf16 %v1903_v63, %v1901_v5  ;;  %v4019_v30 = vld [vmem:[%s6623_s3 + $0xf4] ss:$8 sps:$4 sm:$0xff]   ;;  %v4021_v11 = vld [vmem:[%s6623_s3 + $0xf0] ss:$8 sps:$4 sm:$0xff]  }
 0x312   :  { %v1743_v28 = vpop.f32.mrf.mxu0 }
 0x313   :  { %v1744_v46 = vadd.f32 %v1743_v28, %v5468_v26  ;;  %v1905_v25 = vmax.f32 %v1742_v15, 0.0  ;;  %2735 = vmatpush1.bf16.msra.mxu1 %v4009_v36  ;;  %v4022_v28 = vld [vmem:[%s6623_s3 + $0xe4] ss:$8 sps:$4 sm:$0xff]  }
 0x314   :  { %v1745_v0 = vpop.f32.mrf.mxu0 }
 0x315   :  { %v1906_v12 = vmax.f32 %v1744_v46, 0.0  ;;  %v1746_v20 = vadd.f32 %v1745_v0, %v5483_v23  ;;  %v4025_v46 = vld [vmem:[%s6623_s3 + $0xd4] ss:$8 sps:$4 sm:$0xff]   ;;  %v4028_v0 = vld [vmem:[%s6623_s3 + $0xc4] ss:$8 sps:$4 sm:$0xff]  }
 0x317   :  { %v1978_v35 = vpack.c.bf16 %v1906_v12, %v1904_v8  ;;  %v1907_v60 = vmax.f32 %v1746_v20, 0.0  ;;  %v4030_v12 = vld [vmem:[%s6623_s3 + $0xc0] ss:$8 sps:$4 sm:$0xff]   ;;  %v4031_v20 = vld [vmem:[%s6623_s3 + $0xb4] ss:$8 sps:$4 sm:$0xff]  }
 0x319   :  { %v5786_v24 = vmax.bf16 %v1978_v35, %v1976_v42  ;;  %v1979_v62 = vpack.c.bf16 %v1907_v60, %v1905_v25  ;;  %v4033_v42 = vld [vmem:[%s6623_s3 + $0xb0] ss:$8 sps:$4 sm:$0xff]   ;;  %v4034_v25 = vld [vmem:[%s6623_s3 + $0xa4] ss:$8 sps:$4 sm:$0xff]  }
 0x31a   :  { %v5803_v44 = vpop.f32.mrf.mxu0 }
 0x31b   :  { %v2015_v6 = vmax.bf16 %v1979_v62, %v1977_v31  ;;  %2088 = vrot.lane.b32.xlu0 %v5786_v24, %s4187_s0  ;;  %v4036_v31 = vld [vmem:[%s6623_s3 + $0xa0] ss:$8 sps:$4 sm:$0xff]   ;;  %v4037_v62 = vld [vmem:[%s6623_s3 + $0x94] ss:$8 sps:$4 sm:$0xff]  }
 0x31c   :  { %v5816_v59 = vpop.f32.mrf.mxu0 }
 0x31d   :  { %2090 = vrot.lane.b32.xlu1 %v2015_v6, %s4187_s0 }
 0x31e   :  { %v1753_v54 = vpop.f32.mrf.mxu0 }
 0x31f   :  { %v1754_v32 = vadd.f32 %v1753_v54, %v5468_v26 }
 0x320   :  { %v5831_v22 = vpop.f32.mrf.mxu0 }
 0x322   :  { %v1759_v47 = vpop.f32.mrf.mxu0 }
 0x323   :  { %v1760_v55 = vadd.f32 %v1759_v47, %v5468_v26 }
 0x324   :  { %v5845_v13 = vpop.f32.mrf.mxu0 }
 0x326   :  { %v1763_v40 = vpop.f32.mrf.mxu0 }
 0x327   :  { %v1764_v17 = vadd.f32 %v1763_v40, %v5468_v26 }
 0x328   :  { %v639_v39 = vpop.permute.xlu0 %638  ;;  %v1765_v7 = vpop.f32.mrf.mxu0 }
 0x329   :  { %v767_v29 = vmax.bf16 %v639_v39, %v5649_v50  ;;  %v4010_v50 = vld [vmem:[%s6623_s3 + $0x24] ss:$8 sps:$4 sm:$0xff]   ;;  %v1914_v38 = vmax.f32 %v1764_v17, 0.0  ;;  %v1766_v3 = vadd.f32 %v1765_v7, %v5483_v23 }
 0x32a   :  { %2736 = vmatprep.subr.bf16.mxu1 %v4010_v50  ;;  %v1910_v50 = vmax.f32 %v1754_v32, 0.0 }
 0x32b   :  { %v3708_v37 = vcombine.low %v766_v1, %v767_v29  ;;  %2737 = vmatpush1.bf16.msra.mxu1 %v4012_v52  ;;  %v4042_v1 = vld [vmem:[%s6623_s3 + $0x80] ss:$8 sps:$4 sm:$0xff]   ;;  %v1750_v29 = vadd.f32 %v5803_v44, %v5468_v26  ;;  %v1756_v52 = vadd.f32 %v5831_v22, %v5483_v23  ;;  %v1762_v44 = vadd.f32 %v5845_v13, %v5483_v23 }
 0x32c   :  { %2738 = vmatprep.subr.bf16.mxu1 %v4013_v57  ;;  %v1029_v63 = vpop.permute.xlu0 %1028  ;;  %v1912_v57 = vmax.f32 %v1760_v55, 0.0 }
 0x32d   :  { %3756 = vmatprep.mubr.msk.bf16.mxu0 %vm1096_vm0, %v3708_v37  ;;  %v1237_v37 = vsel %vm1181_vm1, %v1180_v10, %v1029_v63  ;;  %v1913_v13 = vmax.f32 %v1762_v44, 0.0 }
 0x32e   :  { %v5856_v18 = vpop.f32.mrf.mxu0  ;;  %v1982_v40 = vpack.c.bf16 %v1914_v38, %v1912_v57 }
 0x32f   :  { %2739 = vmatpush1.bf16.msra.mxu1 %v4015_v51  ;;  %v1908_v51 = vmax.f32 %v1750_v29, 0.0 }
 0x330   :  { %2740 = vmatprep.subr.bf16.mxu1 %v4016_v45  ;;  %v5864_v15 = vpop.f32.mrf.mxu0  ;;  %v2057_v35 = vpop.permute.xlu0 %2056 }
 0x332   :  { %v5875_v8 = vpop.f32.mrf.mxu0 }
 0x333   :  { %2741 = vmatpush1.bf16.msra.mxu1 %v4018_v49  ;;  %v1752_v49 = vadd.f32 %v5816_v59, %v5483_v23 }
 0x334   :  { %2742 = vmatprep.subr.bf16.mxu1 %v4019_v30  ;;  %v1775_v5 = vpop.f32.mrf.mxu0  ;;  %v2061_v6 = vpop.permute.xlu0 %2060  ;;  %v1915_v30 = vmax.f32 %v1766_v3, 0.0 }
 0x335   :  { %v1909_v59 = vmax.f32 %v1752_v49, 0.0 }
 0x337   :  { %2743 = vmatpush2.bf16.msra.mxu1 %v4021_v11 }
 0x338   :  { %2744 = vmatprep.subr.bf16.mxu1 %v4022_v28  ;;  %v5889_v60 = vpop.f32.mrf.mxu0  ;;  %v2065_v54 = vpop.permute.xlu0 %2064 }
 0x339   :  { %v1780_v17 = vadd.f32 %v5889_v60, %v5468_v26 }
 0x33a   :  { %v1781_v33 = vpop.f32.mrf.mxu0 }
 0x33b   :  { %2745 = vmatpush2.bf16.msra.mxu1 %v4024_v41  ;;  %v1980_v41 = vpack.c.bf16 %v1910_v50, %v1908_v51  ;;  %v1782_v63 = vadd.f32 %v1781_v33, %v5483_v23 }
 0x33c   :  { %2746 = vmatprep.subr.bf16.mxu1 %v4025_v46  ;;  %v1783_v39 = vpop.f32.mrf.mxu0  ;;  %v1911_v46 = vmax.f32 %v1756_v52, 0.0 }
 0x33d   :  { %v1921_v10 = vmax.f32 %v1782_v63, 0.0 }
 0x33e   :  { %v1785_v47 = vpop.f32.mrf.mxu0  ;;  %v1981_v33 = vpack.c.bf16 %v1911_v46, %v1909_v59 }
 0x33f   :  { %2747 = vmatpush2.bf16.msra.mxu1 %v4027_v61  ;;  %v1786_v11 = vadd.f32 %v1785_v47, %v5483_v23  ;;  %v2069_v61 = vpop.permute.xlu0 %2068 }
 0x340   :  { %2748 = vmatprep.subr.bf16.mxu1 %v4028_v0  ;;  %v1776_v0 = vadd.f32 %v1775_v5, %v5483_v23 }
 0x342   :  { %v1789_v28 = vpop.f32.mrf.mxu0  ;;  %v1919_v19 = vmax.f32 %v1776_v0, 0.0 }
 0x343   :  { %2749 = vmatpush2.bf16.msra.mxu1 %v4030_v12  ;;  %v5950_v32 = vpop.permute.xlu0 %2072  ;;  %v1790_v51 = vadd.f32 %v1789_v28, %v5468_v26 }
 0x344   :  { %2750 = vmatprep.subr.bf16.mxu1 %v4031_v20  ;;  %v5931_v20 = vmax.bf16 %v1982_v40, %v1980_v41  ;;  %v1791_v5 = vpop.f32.mrf.mxu0 }
 0x345   :  { %v1924_v0 = vmax.f32 %v1790_v51, 0.0 }
 0x347   :  { %2751 = vmatpush2.bf16.msra.mxu1 %v4033_v42  ;;  %v1983_v42 = vpack.c.bf16 %v1915_v30, %v1913_v13  ;;  %v2077_v50 = vpop.permute.xlu0 %2076 }
 0x348   :  { %2752 = vmatprep.subr.bf16.mxu1 %v4034_v25  ;;  %v1772_v25 = vadd.f32 %v5864_v15, %v5483_v23 }
 0x349   :  { %v2017_v15 = vmax.bf16 %v1983_v42, %v1981_v33 }
 0x34a   :  { %v1917_v55 = vmax.f32 %v1772_v25, 0.0 }
 0x34b   :  { %2753 = vmatpush2.bf16.msra.mxu1 %v4036_v31  ;;  %v1923_v31 = vmax.f32 %v1786_v11, 0.0  ;;  %v2081_v63 = vpop.permute.xlu0 %2080 }
 0x34c   :  { %2754 = vmatprep.subr.bf16.mxu1 %v4037_v62 }
 0x34d   :  { %v1987_v60 = vpack.c.bf16 %v1923_v31, %v1921_v10 }
 0x34f   :  { %2755 = vmatpush2.bf16.msra.mxu1 %v4039_v56  ;;  %v1774_v56 = vadd.f32 %v5875_v8, %v5468_v26 }
 0x350   :  { %2756 = vmatprep.subr.bf16.mxu1 %v4040_v27  ;;  %v1793_v27 = vpop.f32.mrf.mxu0 }
 0x351   :  { %v1918_v29 = vmax.f32 %v1774_v56, 0.0  ;;  %v1794_v44 = vadd.f32 %v1793_v27, %v5468_v26 }
 0x353   :  { %2757 = vmatpush2.bf16.msra.mxu1 %v4042_v1  ;;  %v1926_v46 = vmax.f32 %v1794_v44, 0.0  ;;  %v4043_v44 = vld [vmem:[%s6623_s3 + $0x170] ss:$8 sps:$4 sm:$0xff]  }
 0x35c   :  { %v1090_v14 = vpop.permute.xlu1 %1089 }
 0x35d   :  { %v1321_v36 = vsel %vm1238_vm2, %v1237_v37, %v1090_v14  ;;  %v1985_v37 = vpack.c.bf16 %v1919_v19, %v1917_v55  ;;  %v1920_v14 = vmax.f32 %v1780_v17, 0.0 }
 0x35e   :  { %1818 = vmatmul.mubr.bf16.gmra.mxu0 %v1321_v36  ;;  %v1795_v36 = vpop.f32.mrf.mxu0 }
 0x35f   :  { %v1796_v49 = vadd.f32 %v1795_v36, %v5483_v23 }
 0x360   :  { %v2059_v45 = vpop.permute.xlu1 %2058 }
 0x361   :  { %v2110_v7 = vsel %vm2108_vm3, %v2057_v35, %v2059_v45  ;;  %v1784_v35 = vadd.f32 %v1783_v39, %v5468_v26  ;;  %v1927_v59 = vmax.f32 %v1796_v49, 0.0  ;;  %v4048_v49 = vld [vmem:[%s6623_s3 + $0x164] ss:$8 sps:$4 sm:$0xff]  }
 0x362   :  { %v5925_v22 = vmax.bf16 %v2110_v7, %v5524_v48  ;;  %v1792_v7 = vadd.f32 %v1791_v5, %v5483_v23  ;;  %v1988_v5 = vpack.c.bf16 %v1926_v46, %v1924_v0 }
 0x363   :  { %v1922_v39 = vmax.f32 %v1784_v35, 0.0 }
 0x364   :  { %v2063_v12 = vpop.permute.xlu1 %2062  ;;  %2161 = vrot.lane.b32.xlu0 %v5925_v22, %s4188_s1  ;;  %v1925_v35 = vmax.f32 %v1792_v7, 0.0 }
 0x365   :  { %v2111_v48 = vsel %vm2108_vm3, %v2061_v6, %v2063_v12  ;;  %v1986_v3 = vpack.c.bf16 %v1922_v39, %v1920_v14 }
 0x366   :  { %v5938_v62 = vmax.bf16 %v2111_v48, %v5565_v4  ;;  %v1770_v4 = vadd.f32 %v5856_v18, %v5468_v26  ;;  %v1989_v10 = vpack.c.bf16 %v1927_v59, %v1925_v35 }
 0x368   :  { %v2067_v6 = vpop.permute.xlu1 %2066  ;;  %2092 = vrot.lane.b32.xlu0 %v5931_v20, %s4187_s0  ;;  %2182 = vrot.lane.b32.xlu1 %v5938_v62, %s4189_s24  ;;  %v1916_v18 = vmax.f32 %v1770_v4, 0.0 }
 0x369   :  { %v2112_v8 = vsel %vm2108_vm3, %v2065_v54, %v2067_v6  ;;  %v2019_v54 = vmax.bf16 %v1987_v60, %v1985_v37 }
 0x36a   :  { %v5954_v1 = vmax.bf16 %v2112_v8, %v5688_v9  ;;  %v1984_v52 = vpack.c.bf16 %v1918_v29, %v1916_v18 }
 0x36c   :  { %v2071_v38 = vpop.permute.xlu1 %2070  ;;  %2094 = vrot.lane.b32.xlu1 %v2017_v15, %s4187_s0  ;;  %2203 = vrot.lane.b32.xlu0 %v5954_v1, %s4190_s25  ;;  %v5963_v47 = vmax.bf16 %v1986_v3, %v1984_v52 }
 0x36d   :  { %v2113_v40 = vsel %vm2108_vm3, %v2069_v61, %v2071_v38 }
 0x36e   :  { %v5977_v61 = vmax.bf16 %v2113_v40, %v5695_v53 }
 0x370   :  { %v2075_v57 = vpop.permute.xlu1 %2074  ;;  %2163 = vrot.lane.b32.xlu1 %v5938_v62, %s4188_s1  ;;  %2098 = vrot.lane.b32.xlu0 %v2019_v54, %s4187_s0 }
 0x371   :  { %v1799_v9 = vpop.f32.mrf.mxu0  ;;  %v2114_v8 = vsel %vm2108_vm3, %v5950_v32, %v2075_v57 }
 0x372   :  { %v1800_v30 = vadd.f32 %v1799_v9, %v5468_v26  ;;  %v5993_v27 = vmax.bf16 %v2114_v8, %v5704_v58 }
 0x373   :  { %v1801_v45 = vpop.f32.mrf.mxu0 }
 0x374   :  { %v2079_v11 = vpop.permute.xlu1 %2078  ;;  %2096 = vrot.lane.b32.xlu1 %v5963_v47, %s4187_s0  ;;  %2184 = vrot.lane.b32.xlu0 %v5954_v1, %s4189_s24  ;;  %v1802_v28 = vadd.f32 %v1801_v45, %v5483_v23  ;;  %v1928_v42 = vmax.f32 %v1800_v30, 0.0 }
 0x375   :  { %v1803_v41 = vpop.f32.mrf.mxu0  ;;  %v2085_v17 = vpop.permute.xlu0 %2084  ;;  %v2115_v29 = vsel %vm2108_vm3, %v2077_v50, %v2079_v11  ;;  %v4046_v11 = vld [vmem:[%s6623_s3 + $0x160] ss:$8 sps:$4 sm:$0xff]  }
 0x376   :  { %v1804_v13 = vadd.f32 %v1803_v41, %v5468_v26  ;;  %v1929_v33 = vmax.f32 %v1802_v28, 0.0  ;;  %v6003_v32 = vmax.bf16 %v2115_v29, %v5709_v21  ;;  %v2420_v29 = vld [vmem:[%s6623_s3 + $0x1a0] sm:$0x33] }
 0x377   :  { %v1805_v12 = vpop.f32.mrf.mxu0 }
 0x378   :  { %v1930_v48 = vmax.f32 %v1804_v13, 0.0  ;;  %v1806_v25 = vadd.f32 %v1805_v12, %v5483_v23  ;;  %v2083_v31 = vpop.permute.xlu1 %2082  ;;  %2205 = vrot.lane.b32.xlu1 %v5977_v61, %s4190_s25  ;;  %v4049_v13 = vld [vmem:[%s6623_s3 + $0x150] ss:$8 sps:$4 sm:$0xff]  }
 0x379   :  { %v2053_v55 = vpop.permute.xlu0 %2052  ;;  %v2116_v58 = vsel %vm2108_vm3, %v2081_v63, %v2083_v31  ;;  %v4054_v63 = vld [vmem:[%s6623_s3 + $0x144] ss:$8 sps:$4 sm:$0xff]   ;;  %v4055_v31 = vld [vmem:[%s6623_s3 + $0x130] ss:$8 sps:$4 sm:$0xff]  }
 0x37a   :  { %v1990_v56 = vpack.c.bf16 %v1930_v48, %v1928_v42  ;;  %v1931_v19 = vmax.f32 %v1806_v25, 0.0  ;;  %v6013_v37 = vmax.bf16 %v2116_v58, %v5713_v43  ;;  %v4057_v25 = vld [vmem:[%s6623_s3 + $0x134] ss:$8 sps:$4 sm:$0xff]  }
 0x37c   :  { %v5982_v6 = vmax.bf16 %v1990_v56, %v1988_v5  ;;  %v1991_v53 = vpack.c.bf16 %v1931_v19, %v1929_v33  ;;  %v2087_v15 = vpop.permute.xlu1 %2086 }
 0x37d   :  { %v2117_v21 = vsel %vm2108_vm3, %v2085_v17, %v2087_v15  ;;  %v4058_v17 = vld [vmem:[%s6623_s3 + $0x120] ss:$8 sps:$4 sm:$0xff]  }
 0x37e   :  { %v2021_v4 = vmax.bf16 %v1991_v53, %v1989_v10  ;;  %2100 = vrot.lane.b32.xlu0 %v5982_v6, %s4187_s0  ;;  %v6023_v14 = vmax.bf16 %v2117_v21, %v5765_v34  ;;  %v4045_v34 = vld [vmem:[%s6623_s3 + $0x174] ss:$8 sps:$4 sm:$0xff]   ;;  %v4064_v21 = vld [vmem:[%s6623_s3 + $0x100] ss:$8 sps:$4 sm:$0xff]  }
 0x37f   :  { %2859 = vmatprep.subr.bf16.mxu1 %v4045_v34  ;;  %v4063_v10 = vld [vmem:[%s6623_s3 + $0x114] ss:$8 sps:$4 sm:$0xff]  }
 0x380   :  { %2102 = vrot.lane.b32.xlu1 %v2021_v4, %s4187_s0  ;;  %v2055_v39 = vpop.permute.xlu1 %2054  ;;  %v4061_v4 = vld [vmem:[%s6623_s3 + $0x110] ss:$8 sps:$4 sm:$0xff]  }
 0x381   :  { %v2109_v60 = vsel %vm2108_vm3, %v2053_v55, %v2055_v39  ;;  %v4066_v55 = vld [vmem:[%s6623_s3 + $0x104] ss:$8 sps:$4 sm:$0xff]  }
 0x382   :  { %2165 = vrot.lane.b32.xlu0 %v5954_v1, %s4188_s1  ;;  %v2137_v50 = vmax.bf16 %v2109_v60, %v5497_v16 }
 0x384   :  { %2186 = vrot.lane.b32.xlu1 %v5977_v61, %s4189_s24 }
 0x386   :  { %2207 = vrot.lane.b32.xlu0 %v5993_v27, %s4190_s25 }
 0x388   :  { %2167 = vrot.lane.b32.xlu1 %v5977_v61, %s4188_s1 }
 0x38a   :  { %2188 = vrot.lane.b32.xlu0 %v5993_v27, %s4189_s24 }
 0x38c   :  { %2209 = vrot.lane.b32.xlu1 %v6003_v32, %s4190_s25 }
 0x38d   :  { %v2089_v43 = vpop.permute.xlu0 %2088 }
 0x38e   :  { %2169 = vrot.lane.b32.xlu0 %v5993_v27, %s4188_s1 }
 0x38f   :  { %v2091_v38 = vpop.permute.xlu1 %2090 }
 0x390   :  { %2190 = vrot.lane.b32.xlu1 %v6003_v32, %s4189_s24  ;;  %v2118_v18 = vsel %vm2108_vm3, %v2089_v43, %v2091_v38  ;;  %v3810_v43 = vcombine.high %v2420_v29, %v2420_v29 }
 0x391   :  { %v6033_v3 = vmax.bf16 %v2118_v18, %v5786_v24  ;;  %v3809_v18 = vcombine.low %v2420_v29, %v2420_v29 }
 0x392   :  { %2211 = vrot.lane.b32.xlu0 %v6013_v37, %s4190_s25 }
 0x394   :  { %2171 = vrot.lane.b32.xlu1 %v6003_v32, %s4188_s1 }
 0x396   :  { %2192 = vrot.lane.b32.xlu0 %v6013_v37, %s4189_s24 }
 0x398   :  { %2213 = vrot.lane.b32.xlu1 %v6023_v14, %s4190_s25 }
 0x39a   :  { %2173 = vrot.lane.b32.xlu0 %v6013_v37, %s4188_s1 }
 0x39c   :  { %2194 = vrot.lane.b32.xlu1 %v6023_v14, %s4189_s24 }
 0x39e   :  { %2215 = vrot.lane.b32.xlu0 %v6033_v3, %s4190_s25 }
 0x3a0   :  { %2175 = vrot.lane.b32.xlu1 %v6023_v14, %s4188_s1 }
 0x3a2   :  { %2196 = vrot.lane.b32.xlu0 %v6033_v3, %s4189_s24 }
 0x3a6   :  { %2177 = vrot.lane.b32.xlu0 %v6033_v3, %s4188_s1 }
 0x3d6   :  { %v2162_v24 = vpop.permute.xlu0 %2161 }
 0x3d7   :  { %v2247_v40 = vsel %vm2244_vm6, %v2137_v50, %v2162_v24 }
 0x3da   :  { %v2183_v54 = vpop.permute.xlu1 %2182  ;;  %v2093_v36 = vpop.permute.xlu0 %2092 }
 0x3db   :  { %v2287_v52 = vsel %vm2285_vm4, %v2162_v24, %v2183_v54  ;;  %v2721_v54 = vsel %vm2719_vm7, %v3809_v18, 0 }
 0x3de   :  { %v2095_v57 = vpop.permute.xlu1 %2094  ;;  %v6050_v9 = vpop.permute.xlu0 %2203 }
 0x3df   :  { %v2119_v51 = vsel %vm2108_vm3, %v2093_v36, %v2095_v57  ;;  %v2308_v45 = vsel %vm2306_vm5, %v2287_v52, %v6050_v9  ;;  %v4071_v36 = vld [vmem:[%s6623_s3 + $0x194] ss:$8 sps:$4 sm:$0xff]  }
 0x3e0   :  { %v6062_v16 = vmax.bf16 %v2119_v51, %v5931_v20  ;;  %2758 = vmatprep.mubr.bf16.mxu1 %v2308_v45  ;;  %v4051_v20 = vld [vmem:[%s6623_s3 + $0x154] ss:$8 sps:$4 sm:$0xff]   ;;  %v4069_v51 = vld [vmem:[%s6623_s3 + $0x190] ss:$8 sps:$4 sm:$0xff]  }
 0x3e1   :  { %2759 = vmatmul.mubr.bf16.vlgmr.msra.gmra.mxu1 %v2247_v40 }
 0x3e2   :  { %v2164_v30 = vpop.permute.xlu1 %2163  ;;  %2217 = vrot.lane.b32.xlu1 %v6062_v16, %s4190_s25  ;;  %v2099_v7 = vpop.permute.xlu0 %2098  ;;  %2860 = vmatpush1.bf16.msra.mxu1 %v4043_v44 }
 0x3e3   :  { %2861 = vmatprep.subr.bf16.mxu1 %v4048_v49  ;;  %v2251_v48 = vsel %vm2244_vm6, %v5925_v22, %v2164_v30  ;;  %v4060_v22 = vld [vmem:[%s6623_s3 + $0x124] ss:$8 sps:$4 sm:$0xff]  }
 0x3e4   :  { %v4074_v49 = vld [vmem:[%s6623_s3 + $0x184] ss:$8 sps:$4 sm:$0xff]  }
 0x3e6   :  { %v2097_v41 = vpop.permute.xlu1 %2096  ;;  %2198 = vrot.lane.b32.xlu1 %v6062_v16, %s4189_s24  ;;  %2862 = vmatpush1.bf16.msra.mxu1 %v4046_v11  ;;  %v2185_v28 = vpop.permute.xlu0 %2184 }
 0x3e7   :  { %v2120_v46 = vsel %vm2108_vm3, %v2097_v41, %v2099_v7  ;;  %2863 = vmatprep.subr.bf16.mxu1 %v4051_v20  ;;  %v2289_v12 = vsel %vm2285_vm4, %v2164_v30, %v2185_v28  ;;  %v4072_v30 = vld [vmem:[%s6623_s3 + $0x180] ss:$8 sps:$4 sm:$0xff]  }
 0x3e8   :  { %v6080_v0 = vmax.bf16 %v2120_v46, %v5963_v47  ;;  %v4052_v47 = vld [vmem:[%s6623_s3 + $0x140] ss:$8 sps:$4 sm:$0xff]   ;;  %s4192_s3 = smov 48  }
 0x3ea   :  { %v6086_v59 = vpop.permute.xlu1 %2205  ;;  %2179 = vrot.lane.b32.xlu1 %v6062_v16, %s4188_s1  ;;  %2219 = vrot.lane.b32.xlu0 %v6080_v0, %s4190_s25 }
 0x3eb   :  { %v2311_v42 = vsel %vm2306_vm5, %v2289_v12, %v6086_v59  ;;  %2864 = vmatpush1.bf16.msra.mxu1 %v4049_v13  ;;  %v1809_v12 = vpop.f32.mrf.mxu0 }
 0x3ec   :  { %2768 = vmatprep.mubr.bf16.mxu1 %v2311_v42  ;;  %2865 = vmatprep.subr.bf16.mxu1 %v4054_v63 }
 0x3ed   :  { %2769 = vmatmul.mubr.bf16.gmra.mxu1 %v2251_v48 }
 0x3ee   :  { %2200 = vrot.lane.b32.xlu0 %v6080_v0, %s4189_s24 }
 0x3ef   :  { %2866 = vmatpush1.bf16.msra.mxu1 %v4052_v47  ;;  %v1811_v47 = vpop.f32.mrf.mxu0 }
 0x3f0   :  { %v2101_v35 = vpop.permute.xlu0 %2100  ;;  %2867 = vmatprep.subr.bf16.mxu1 %v4057_v25 }
 0x3f1   :  { %v1813_v48 = vpop.f32.mrf.mxu0 }
 0x3f2   :  { %v2103_v5 = vpop.permute.xlu1 %2102  ;;  %2224 = vrot.lane.b32.xlu0 %v5977_v61, %s4191_s4 }
 0x3f3   :  { %v2121_v33 = vsel %vm2108_vm3, %v2101_v35, %v2103_v5  ;;  %2868 = vmatpush1.bf16.msra.mxu1 %v4055_v31  ;;  %v1815_v35 = vpop.f32.mrf.mxu0  ;;  %v1810_v5 = vadd.f32 %v1809_v12, %v5468_v26 }
 0x3f4   :  { %v6114_v56 = vmax.bf16 %v2121_v33, %v5982_v6  ;;  %v2166_v19 = vpop.permute.xlu0 %2165  ;;  %2869 = vmatprep.subr.bf16.mxu1 %v4060_v22  ;;  %v1814_v22 = vadd.f32 %v1813_v48, %v5468_v26 }
 0x3f5   :  { %v2255_v60 = vsel %vm2244_vm6, %v5938_v62, %v2166_v19 }
 0x3f6   :  { %v2187_v53 = vpop.permute.xlu1 %2186  ;;  %2221 = vrot.lane.b32.xlu1 %v6114_v56, %s4190_s25  ;;  %2228 = vrot.lane.b32.xlu0 %v6003_v32, %s4191_s4 }
 0x3f7   :  { %v2291_v15 = vsel %vm2285_vm4, %v2166_v19, %v2187_v53  ;;  %2870 = vmatpush1.bf16.msra.mxu1 %v4058_v17  ;;  %v1812_v17 = vadd.f32 %v1811_v47, %v5483_v23  ;;  %v1934_v53 = vmax.f32 %v1814_v22, 0.0 }
 0x3f8   :  { %v6127_v6 = vpop.permute.xlu0 %2207  ;;  %2871 = vmatprep.subr.bf16.mxu1 %v4063_v10 }
 0x3f9   :  { %v2314_v8 = vsel %vm2306_vm5, %v2291_v15, %v6127_v6 }
 0x3fa   :  { %v2168_v39 = vpop.permute.xlu1 %2167  ;;  %2226 = vrot.lane.b32.xlu1 %v5993_v27, %s4191_s4  ;;  %2778 = vmatprep.mubr.bf16.mxu1 %v2314_v8 }
 0x3fb   :  { %2779 = vmatmul.mubr.bf16.gmra.mxu1 %v2255_v60  ;;  %v2259_v52 = vsel %vm2244_vm6, %v5954_v1, %v2168_v39 }
 0x3fc   :  { %v2189_v58 = vpop.permute.xlu0 %2188  ;;  %2872 = vmatpush1.bf16.msra.mxu1 %v4061_v4  ;;  %v1932_v4 = vmax.f32 %v1810_v5, 0.0 }
 0x3fd   :  { %v2293_v38 = vsel %vm2285_vm4, %v2168_v39, %v2189_v58  ;;  %2873 = vmatprep.subr.bf16.mxu1 %v4066_v55  ;;  %v1933_v58 = vmax.f32 %v1812_v17, 0.0 }
 0x3fe   :  { %v6148_v34 = vpop.permute.xlu1 %2209  ;;  %2230 = vrot.lane.b32.xlu1 %v6013_v37, %s4191_s4 }
 0x3ff   :  { %v2317_v62 = vsel %vm2306_vm5, %v2293_v38, %v6148_v34 }
 0x400   :  { %2788 = vmatprep.mubr.bf16.mxu1 %v2317_v62  ;;  %v2170_v24 = vpop.permute.xlu0 %2169  ;;  %2874 = vmatpush1.bf16.msra.mxu1 %v4064_v21  ;;  %v1992_v21 = vpack.c.bf16 %v1934_v53, %v1932_v4 }
 0x401   :  { %3811 = vmatprep.subr.msk.bf16.mxu1 %vm2719_vm7, %v3810_v43  ;;  %v2263_v20 = vsel %vm2244_vm6, %v5977_v61, %v2170_v24 }
 0x402   :  { %v2191_v50 = vpop.permute.xlu1 %2190 }
 0x403   :  { %v2295_v57 = vsel %vm2285_vm4, %v2170_v24, %v2191_v50  ;;  %2789 = vmatmul.mubr.bf16.gmra.mxu1 %v2259_v52 }
 0x404   :  { %v6160_v44 = vpop.permute.xlu0 %2211  ;;  %2886 = vmatpush2.bf16.msra.mxu1 %v2721_v54 }
 0x405   :  { %v2320_v45 = vsel %vm2306_vm5, %v2295_v57, %v6160_v44  ;;  %2887 = vmatprep.subr.bf16.mxu1 %v4071_v36 }
 0x406   :  { %v2172_v40 = vpop.permute.xlu1 %2171  ;;  %2798 = vmatprep.mubr.bf16.mxu1 %v2320_v45 }
 0x407   :  { %v2267_v42 = vsel %vm2244_vm6, %v5993_v27, %v2172_v40  ;;  %v1816_v27 = vadd.f32 %v1815_v35, %v5483_v23 }
 0x408   :  { %v2193_v1 = vpop.permute.xlu0 %2192  ;;  %2888 = vmatpush2.bf16.msra.mxu1 %v4069_v51 }
 0x409   :  { %v2297_v7 = vsel %vm2285_vm4, %v2172_v40, %v2193_v1  ;;  %2889 = vmatprep.subr.bf16.mxu1 %v4074_v49  ;;  %v1935_v55 = vmax.f32 %v1816_v27, 0.0 }
 0x40a   :  { %v6174_v11 = vpop.permute.xlu1 %2213 }
 0x40b   :  { %2799 = vmatmul.mubr.bf16.gmra.mxu1 %v2263_v20  ;;  %v2323_v41 = vsel %vm2306_vm5, %v2297_v7, %v6174_v11  ;;  %v1993_v62 = vpack.c.bf16 %v1935_v55, %v1933_v58 }
 0x40c   :  { %2808 = vmatprep.mubr.bf16.mxu1 %v2323_v41  ;;  %v2174_v46 = vpop.permute.xlu0 %2173  ;;  %2890 = vmatpush2.bf16.msra.mxu1 %v4072_v30 }
 0x40d   :  { %v2271_v25 = vsel %vm2244_vm6, %v6003_v32, %v2174_v46 }
 0x40e   :  { %v2195_v28 = vpop.permute.xlu1 %2194 }
 0x40f   :  { %v2299_v13 = vsel %vm2285_vm4, %v2174_v46, %v2195_v28 }
 0x410   :  { %v6181_v63 = vpop.permute.xlu0 %2215 }
 0x411   :  { %v2326_v61 = vsel %vm2306_vm5, %v2299_v13, %v6181_v63 }
 0x413   :  { %2809 = vmatmul.mubr.bf16.gmra.mxu1 %v2267_v42 }
 0x414   :  { %2818 = vmatprep.mubr.bf16.mxu1 %v2326_v61 }
 0x41b   :  { %2819 = vmatmul.mubr.bf16.gmra.mxu1 %v2271_v25 }
 0x41e   :  { %v1819_v31 = vpop.f32.mrf.mxu0 }
 0x41f   :  { %v1820_v19 = vadd.f32 %v1819_v31, %v5468_v26 }
 0x420   :  { %v1821_v33 = vpop.f32.mrf.mxu0 }
 0x421   :  { %v1822_v15 = vadd.f32 %v1821_v33, %v5483_v23  ;;  %v1936_v39 = vmax.f32 %v1820_v19, 0.0 }
 0x422   :  { %v1823_v10 = vpop.f32.mrf.mxu0 }
 0x423   :  { %v1824_v32 = vadd.f32 %v1823_v10, %v5468_v26  ;;  %v1937_v38 = vmax.f32 %v1822_v15, 0.0  ;;  %v2176_v26 = vpop.permute.xlu1 %2175 }
 0x424   :  { %v1825_v8 = vpop.f32.mrf.mxu0  ;;  %v2275_v51 = vsel %vm2244_vm6, %v6013_v37, %v2176_v26 }
 0x425   :  { %v1938_v60 = vmax.f32 %v1824_v32, 0.0  ;;  %v1826_v29 = vadd.f32 %v1825_v8, %v5483_v23  ;;  %v2197_v23 = vpop.permute.xlu0 %2196 }
 0x426   :  { %v2301_v50 = vsel %vm2285_vm4, %v2176_v26, %v2197_v23 }
 0x427   :  { %v1994_v43 = vpack.c.bf16 %v1938_v60, %v1936_v39  ;;  %v1939_v18 = vmax.f32 %v1826_v29, 0.0 }
 0x429   :  { %v2022_v24 = vmax.bf16 %v1994_v43, %v1992_v21  ;;  %v1995_v54 = vpack.c.bf16 %v1939_v18, %v1937_v38 }
 0x42b   :  { %v2023_v36 = vmax.bf16 %v1995_v54, %v1993_v62  ;;  %2104 = vrot.lane.b32.xlu0 %v2022_v24, %s4187_s0 }
 0x42d   :  { %2106 = vrot.lane.b32.xlu1 %v2023_v36, %s4187_s0 }
 0x42f   :  { %2232 = vrot.lane.b32.xlu0 %v6023_v14, %s4191_s4 }
 0x431   :  { %2234 = vrot.lane.b32.xlu1 %v6033_v3, %s4191_s4 }
 0x433   :  { %2236 = vrot.lane.b32.xlu0 %v6062_v16, %s4191_s4  ;;  %v2178_v16 = vpop.permute.xlu0 %2177 }
 0x434   :  { %v2279_v40 = vsel %vm2244_vm6, %v6023_v14, %v2178_v16 }
 0x435   :  { %2238 = vrot.lane.b32.xlu1 %v6080_v0, %s4191_s4 }
 0x437   :  { %2240 = vrot.lane.b32.xlu0 %v6114_v56, %s4191_s4 }
 0x454   :  { %v6210_v52 = vpop.permute.xlu1 %2217 }
 0x455   :  { %v2329_v57 = vsel %vm2306_vm5, %v2301_v50, %v6210_v52 }
 0x456   :  { %2828 = vmatprep.mubr.bf16.mxu1 %v2329_v57 }
 0x457   :  { %2829 = vmatmul.mubr.bf16.gmra.mxu1 %v2275_v51 }
 0x458   :  { %v2199_v45 = vpop.permute.xlu1 %2198 }
 0x459   :  { %v2303_v0 = vsel %vm2285_vm4, %v2178_v16, %v2199_v45 }
 0x45c   :  { %v2220_v49 = vpop.permute.xlu0 %2219  ;;  %v2180_v1 = vpop.permute.xlu1 %2179 }
 0x45d   :  { %v2332_v56 = vsel %vm2306_vm5, %v2303_v0, %v2220_v49  ;;  %v2283_v41 = vsel %vm2244_vm6, %v6033_v3, %v2180_v1 }
 0x45e   :  { %2838 = vmatprep.mubr.bf16.mxu1 %v2332_v56 }
 0x45f   :  { %2839 = vmatmul.mubr.bf16.gmra.mxu1 %v2279_v40 }
 0x460   :  { %v2201_v30 = vpop.permute.xlu0 %2200 }
 0x461   :  { %v2305_v7 = vsel %vm2285_vm4, %v2180_v1, %v2201_v30 }
 0x464   :  { %v2225_v46 = vpop.permute.xlu0 %2224 }
 0x465   :  { %v2339_v14 = vsel %vm2337_vm9, %v6050_v9, %v2225_v46 }
 0x468   :  { %v6221_v20 = vpop.permute.xlu1 %2221  ;;  %v2229_v12 = vpop.permute.xlu0 %2228 }
 0x469   :  { %v2335_v37 = vsel %vm2306_vm5, %v2305_v7, %v6221_v20  ;;  %v2345_v3 = vsel %vm2337_vm9, %v6127_v6, %v2229_v12 }
 0x46a   :  { %2848 = vmatprep.mubr.bf16.mxu1 %v2335_v37  ;;  %v2421_v37 = vld [vmem:[#allocation5] sm:$0x3] }
 0x46b   :  { %2849 = vmatmul.mubr.bf16.gmra.mxu1 %v2283_v41 }
 0x46c   :  { %3812 = vmatprep.mubr.msk.bf16.mxu1 %vm2698_vm8, %v2225_v46  ;;  %v2227_v28 = vpop.permute.xlu1 %2226  ;;  %v6651_v46 = vsub.s32 0, %v5457_v2 }
 0x46d   :  { %v2342_v13 = vsel %vm2337_vm9, %v6086_v59, %v2227_v28 }
 0x470   :  { %v2231_v42 = vpop.permute.xlu1 %2230 }
 0x471   :  { %v2348_v9 = vsel %vm2337_vm9, %v6148_v34, %v2231_v42 }
 0x473   :  { %2892 = vmatmul.mubr.bf16.vlgmr.msra.gmra.mxu1 %v2339_v14  ;;  %v6324_v14 = vrot.slane %v2421_v37, %v6651_v46 }
 0x474   :  { %3813 = vmatprep.mubr.msk.bf16.mxu1 %vm2698_vm8, %v2227_v28 }
 0x47b   :  { %2902 = vmatmul.mubr.bf16.gmra.mxu1 %v2342_v13  ;;  %v6652_v13 = vsub.s32 1, %v5457_v2 }
 0x47c   :  { %3814 = vmatprep.mubr.msk.bf16.mxu1 %vm2698_vm8, %v2229_v12 }
 0x47d   :  { %v6330_v12 = vrot.slane %v2421_v37, %v6652_v13 }
 0x483   :  { %2912 = vmatmul.mubr.bf16.gmra.mxu1 %v2345_v3 }
 0x484   :  { %3815 = vmatprep.mubr.msk.bf16.mxu1 %vm2698_vm8, %v2231_v42 }
 0x48b   :  { %2922 = vmatmul.mubr.bf16.gmra.mxu1 %v2348_v9 }
 0x49d   :  { %v2105_v61 = vpop.permute.xlu0 %2104 }
 0x49f   :  { %v2107_v47 = vpop.permute.xlu1 %2106 }
 0x4a0   :  { %v2122_v48 = vsel %vm2108_vm3, %v2105_v61, %v2107_v47 }
 0x4a1   :  { %v2150_v59 = vmax.bf16 %v2122_v48, %v2022_v24  ;;  %v2233_v25 = vpop.permute.xlu0 %2232  ;;  %v2760_v22 = vpop.f32.mrf.mxu1 }
 0x4a2   :  { %3816 = vmatprep.mubr.msk.bf16.mxu1 %vm2698_vm8, %v2233_v25  ;;  %v2351_v35 = vsel %vm2337_vm9, %v6160_v44, %v2233_v25  ;;  %v2761_v42 = vadd.f32 %v2760_v22, %v6324_v14 }
 0x4a3   :  { %v2235_v6 = vpop.permute.xlu1 %2234  ;;  %2242 = vrot.lane.b32.xlu1 %v2150_v59, %s4191_s4  ;;  %2932 = vmatmul.mubr.bf16.gmra.mxu1 %v2351_v35  ;;  %v2762_v5 = vpop.f32.mrf.mxu1 }
 0x4a4   :  { %3817 = vmatprep.mubr.msk.bf16.mxu1 %vm2698_vm8, %v2235_v6  ;;  %v2354_v34 = vsel %vm2337_vm9, %v6174_v11, %v2235_v6  ;;  %v2763_v61 = vadd.f32 %v2762_v5, %v6330_v12 }
 0x4a5   :  { %v2237_v31 = vpop.permute.xlu0 %2236  ;;  %v2764_v44 = vpop.f32.mrf.mxu1 }
 0x4a6   :  { %v2357_v33 = vsel %vm2337_vm9, %v6181_v63, %v2237_v31  ;;  %v2765_v59 = vadd.f32 %v2764_v44, %v6324_v14 }
 0x4a7   :  { %v2239_v27 = vpop.permute.xlu1 %2238  ;;  %v2766_v19 = vpop.f32.mrf.mxu1 }
 0x4a8   :  { %v2360_v17 = vsel %vm2337_vm9, %v6210_v52, %v2239_v27  ;;  %v2767_v6 = vadd.f32 %v2766_v19, %v6330_v12 }
 0x4a9   :  { %v2241_v10 = vpop.permute.xlu0 %2240 }
 0x4aa   :  { %v2363_v15 = vsel %vm2337_vm9, %v2220_v49, %v2241_v10 }
 0x4ab   :  { %2942 = vmatmul.mubr.bf16.gmra.mxu1 %v2354_v34 }
 0x4ac   :  { %3818 = vmatprep.mubr.msk.bf16.mxu1 %vm2698_vm8, %v2237_v31 }
 0x4ad   :  { %v2770_v11 = vpop.f32.mrf.mxu1 }
 0x4ae   :  { %v2771_v2 = vadd.f32 %v2770_v11, %v6324_v14 }
 0x4af   :  { %v2772_v53 = vpop.f32.mrf.mxu1 }
 0x4b0   :  { %v2773_v22 = vadd.f32 %v2772_v53, %v6330_v12 }
 0x4b1   :  { %v6255_v32 = vpop.f32.mrf.mxu1 }
 0x4b2   :  { %v2775_v44 = vadd.f32 %v6255_v32, %v6324_v14 }
 0x4b3   :  { %2952 = vmatmul.mubr.bf16.gmra.mxu1 %v2357_v33  ;;  %v6257_v63 = vpop.f32.mrf.mxu1 }
 0x4b4   :  { %3819 = vmatprep.mubr.msk.bf16.mxu1 %vm2698_vm8, %v2239_v27  ;;  %v2777_v11 = vadd.f32 %v6257_v63, %v6330_v12 }
 0x4bb   :  { %2962 = vmatmul.mubr.bf16.gmra.mxu1 %v2360_v17  ;;  %v6259_v4 = vpop.f32.mrf.mxu1 }
 0x4bc   :  { %3820 = vmatprep.mubr.msk.bf16.mxu1 %vm2698_vm8, %v2241_v10 }
 0x4bd   :  { %v6261_v8 = vpop.f32.mrf.mxu1 }
 0x4be   :  { %v2783_v32 = vadd.f32 %v6261_v8, %v6330_v12 }
 0x4bf   :  { %v6263_v55 = vpop.f32.mrf.mxu1 }
 0x4c1   :  { %v6265_v39 = vpop.f32.mrf.mxu1 }
 0x4c3   :  { %2972 = vmatmul.mubr.bf16.gmra.mxu1 %v2363_v15  ;;  %v6267_v60 = vpop.f32.mrf.mxu1 }
 0x4c5   :  { %v6269_v29 = vpop.f32.mrf.mxu1 }
 0x4c7   :  { %v6271_v58 = vpop.f32.mrf.mxu1 }
 0x4c9   :  { %v6273_v21 = vpop.f32.mrf.mxu1 }
 0x4cb   :  { %v6275_v38 = vpop.f32.mrf.mxu1 }
 0x4cd   :  { %v6277_v43 = vpop.f32.mrf.mxu1 }
 0x4cf   :  { %v6279_v18 = vpop.f32.mrf.mxu1 }
 0x4d1   :  { %v6281_v62 = vpop.f32.mrf.mxu1 }
 0x4d3   :  { %v6283_v24 = vpop.f32.mrf.mxu1 }
 0x4d5   :  { %v6285_v54 = vpop.f32.mrf.mxu1 }
 0x4d7   :  { %v6287_v36 = vpop.f32.mrf.mxu1 }
 0x4d9   :  { %v6289_v26 = vpop.f32.mrf.mxu1 }
 0x4db   :  { %v6291_v23 = vpop.f32.mrf.mxu1 }
 0x4dd   :  { %v6293_v50 = vpop.f32.mrf.mxu1 }
 0x4df   :  { %v6295_v52 = vpop.f32.mrf.mxu1 }
 0x4e1   :  { %v6297_v57 = vpop.f32.mrf.mxu1 }
 0x515   :  { %v2243_v51 = vpop.permute.xlu1 %2242 }
 0x516   :  { %3821 = vmatprep.mubr.msk.bf16.mxu1 %vm2698_vm8, %v2243_v51  ;;  %v2366_v16 = vsel %vm2337_vm9, %v6221_v20, %v2243_v51 }
 0x517   :  { %v6302_v45 = vpop.f32.mrf.mxu1  ;;  %2982 = vmatmul.mubr.bf16.gmra.mxu1 %v2366_v16 }
 0x519   :  { %v6304_v0 = vpop.f32.mrf.mxu1 }
 0x51b   :  { %v6306_v49 = vpop.f32.mrf.mxu1 }
 0x51d   :  { %v6308_v56 = vpop.f32.mrf.mxu1 }
 0x51f   :  { %v6310_v40 = vpop.f32.mrf.mxu1 }
 0x521   :  { %v6312_v1 = vpop.f32.mrf.mxu1 }
 0x523   :  { %v6314_v30 = vpop.f32.mrf.mxu1 }
 0x525   :  { %v6316_v7 = vpop.f32.mrf.mxu1 }
 0x52b   :  { %v6318_v41 = vpop.f32.mrf.mxu1 }
 0x52d   :  { %v6320_v20 = vpop.f32.mrf.mxu1 }
 0x52f   :  { %v6326_v28 = vpop.f32.mrf.mxu1 }
 0x531   :  { %v6332_v3 = vpop.f32.mrf.mxu1 }
 0x533   :  { %v2893_v9 = vpop.f32.mrf.mxu1 }
 0x534   :  { %v2894_v47 = vadd.f32 %v2893_v9, %v2761_v42 }
 0x535   :  { %v2895_v48 = vpop.f32.mrf.mxu1 }
 0x536   :  { %v2896_v25 = vadd.f32 %v2895_v48, %v2763_v61  ;;  %v2992_v33 = vmax.f32 %v2894_v47, 0.0 }
 0x537   :  { %v2897_v35 = vpop.f32.mrf.mxu1 }
 0x538   :  { %v2898_v34 = vadd.f32 %v2897_v35, %v2765_v59  ;;  %v2993_v15 = vmax.f32 %v2896_v25, 0.0  ;;  %v2781_v59 = vadd.f32 %v6259_v4, %v6324_v14 }
 0x539   :  { %v2899_v31 = vpop.f32.mrf.mxu1 }
 0x53a   :  { %v2994_v27 = vmax.f32 %v2898_v34, 0.0  ;;  %v2900_v17 = vadd.f32 %v2899_v31, %v2767_v6  ;;  %v2785_v31 = vadd.f32 %v6263_v55, %v6324_v14  ;;  %v2791_v55 = vadd.f32 %v6267_v60, %v6324_v14 }
 0x53b   :  { %v2903_v10 = vpop.f32.mrf.mxu1 }
 0x53c   :  { %v3032_v5 = vpack.c.bf16 %v2994_v27, %v2992_v33  ;;  %v2995_v51 = vmax.f32 %v2900_v17, 0.0  ;;  %v2904_v16 = vadd.f32 %v2903_v10, %v2771_v2  ;;  %v2787_v17 = vadd.f32 %v6265_v39, %v6330_v12 }
 0x53d   :  { %v2905_v37 = vpop.f32.mrf.mxu1  ;;  %v2793_v39 = vadd.f32 %v6269_v29, %v6330_v12 }
 0x53e   :  { %v6342_v46 = vpack.c.bf16 %v2995_v51, %v2993_v15  ;;  %v2906_v19 = vadd.f32 %v2905_v37, %v2773_v22  ;;  %v2996_v61 = vmax.f32 %v2904_v16, 0.0 }
 0x53f   :  { %v2907_v13 = vpop.f32.mrf.mxu1 }
 0x540   :  { %v2908_v42 = vadd.f32 %v2907_v13, %v2775_v44  ;;  %v2997_v25 = vmax.f32 %v2906_v19, 0.0 }
 0x541   :  { %v2909_v9 = vpop.f32.mrf.mxu1 }
 0x542   :  { %v2998_v53 = vmax.f32 %v2908_v42, 0.0  ;;  %v2910_v47 = vadd.f32 %v2909_v9, %v2777_v11  ;;  %v2795_v11 = vadd.f32 %v6271_v58, %v6324_v14 }
 0x543   :  { %v2913_v48 = vpop.f32.mrf.mxu1 }
 0x544   :  { %v3034_v35 = vpack.c.bf16 %v2998_v53, %v2996_v61  ;;  %v2999_v6 = vmax.f32 %v2910_v47, 0.0  ;;  %v2914_v33 = vadd.f32 %v2913_v48, %v2781_v59  ;;  %v2797_v53 = vadd.f32 %v6273_v21, %v6330_v12 }
 0x545   :  { %v2915_v34 = vpop.f32.mrf.mxu1  ;;  %v2801_v21 = vadd.f32 %v6275_v38, %v6324_v14  ;;  %v2811_v38 = vadd.f32 %v6283_v24, %v6324_v14 }
 0x546   :  { %v6352_v63 = vmax.bf16 %v3034_v35, %v3032_v5  ;;  %v6354_v2 = vpack.c.bf16 %v2999_v6, %v2997_v25  ;;  %v2916_v22 = vadd.f32 %v2915_v34, %v2783_v32  ;;  %v3000_v8 = vmax.f32 %v2914_v33, 0.0 }
 0x547   :  { %v2917_v27 = vpop.f32.mrf.mxu1 }
 0x548   :  { %v3053_v4 = vmax.bf16 %v6354_v2, %v6342_v46  ;;  %v2918_v10 = vadd.f32 %v2917_v27, %v2785_v31  ;;  %v3001_v5 = vmax.f32 %v2916_v22, 0.0  ;;  %v2805_v22 = vadd.f32 %v6279_v18, %v6324_v14  ;;  %v4090_v46 = vld [vmem:[%s6625_s5] sm:$0xff]  }
 0x549   :  { %v2919_v15 = vpop.f32.mrf.mxu1  ;;  %v2813_v18 = vadd.f32 %v6285_v54, %v6330_v12  ;;  %v4193_v2 = vmov 0  }
 0x54a   :  { %v3002_v51 = vmax.f32 %v2918_v10, 0.0  ;;  %v2920_v16 = vadd.f32 %v2919_v15, %v2787_v17  ;;  %v2803_v17 = vadd.f32 %v6277_v43, %v6330_v12 }
 0x54b   :  { %v2923_v37 = vpop.f32.mrf.mxu1 }
 0x54c   :  { %v3036_v44 = vpack.c.bf16 %v3002_v51, %v3000_v8  ;;  %v3003_v19 = vmax.f32 %v2920_v16, 0.0  ;;  %v2924_v9 = vadd.f32 %v2923_v37, %v2791_v55  ;;  %v2807_v8 = vadd.f32 %v6281_v62, %v6330_v12 }
 0x54d   :  { %v2925_v13 = vpop.f32.mrf.mxu1  ;;  %v2815_v62 = vadd.f32 %v6287_v36, %v6324_v14  ;;  %v2823_v36 = vadd.f32 %v6293_v50, %v6330_v12 }
 0x54e   :  { %v3037_v42 = vpack.c.bf16 %v3003_v19, %v3001_v5  ;;  %v2926_v47 = vadd.f32 %v2925_v13, %v2793_v39  ;;  %v3004_v60 = vmax.f32 %v2924_v9, 0.0 }
 0x54f   :  { %v2927_v61 = vpop.f32.mrf.mxu1 }
 0x550   :  { %v2928_v48 = vadd.f32 %v2927_v61, %v2795_v11  ;;  %v3005_v6 = vmax.f32 %v2926_v47, 0.0 }
 0x551   :  { %v2929_v59 = vpop.f32.mrf.mxu1 }
 0x552   :  { %v3006_v25 = vmax.f32 %v2928_v48, 0.0  ;;  %v2930_v35 = vadd.f32 %v2929_v59, %v2797_v53  ;;  %v2817_v53 = vadd.f32 %v6289_v26, %v6330_v12  ;;  %v2825_v26 = vadd.f32 %v6295_v52, %v6324_v14 }
 0x554   :  { %v3038_v32 = vpack.c.bf16 %v3006_v25, %v3004_v60  ;;  %v3007_v34 = vmax.f32 %v2930_v35, 0.0 }
 0x556   :  { %v6368_v31 = vmax.bf16 %v3038_v32, %v3036_v44  ;;  %v3039_v29 = vpack.c.bf16 %v3007_v34, %v3005_v6  ;;  %v2821_v6 = vadd.f32 %v6291_v23, %v6324_v14 }
 0x558   :  { %v3055_v33 = vmax.bf16 %v3039_v29, %v3037_v42  ;;  %3076 = vrot.lane.b32.xlu0 %v6368_v31, %s4192_s3 }
 0x55a   :  { %3078 = vrot.lane.b32.xlu1 %v3055_v33, %s4192_s3 }
 0x563   :  { %v2933_v58 = vpop.f32.mrf.mxu1 }
 0x564   :  { %v2934_v10 = vadd.f32 %v2933_v58, %v2801_v21 }
 0x565   :  { %v2935_v27 = vpop.f32.mrf.mxu1 }
 0x566   :  { %v2936_v51 = vadd.f32 %v2935_v27, %v2803_v17  ;;  %v3008_v55 = vmax.f32 %v2934_v10, 0.0  ;;  %v2827_v17 = vadd.f32 %v6297_v57, %v6330_v12 }
 0x567   :  { %v2937_v15 = vpop.f32.mrf.mxu1 }
 0x568   :  { %v2938_v16 = vadd.f32 %v2937_v15, %v2805_v22  ;;  %v3009_v13 = vmax.f32 %v2936_v51, 0.0 }
 0x569   :  { %v2939_v37 = vpop.f32.mrf.mxu1 }
 0x56a   :  { %v3010_v5 = vmax.f32 %v2938_v16, 0.0  ;;  %v2940_v44 = vadd.f32 %v2939_v37, %v2807_v8  ;;  %v2831_v16 = vadd.f32 %v6302_v45, %v6324_v14  ;;  %v4075_v45 = vld [vmem:[%s6625_s5 + $0x78] sm:$0xff]  }
 0x56b   :  { %v2943_v19 = vpop.f32.mrf.mxu1  ;;  %3867 = vmatprep.subr.bf16.mxu1 %v4075_v45 }
 0x56c   :  { %v3040_v43 = vpack.c.bf16 %v3010_v5, %v3008_v55  ;;  %v3011_v39 = vmax.f32 %v2940_v44, 0.0  ;;  %v2944_v9 = vadd.f32 %v2943_v19, %v2811_v38  ;;  %v2833_v44 = vadd.f32 %v6304_v0, %v6330_v12 }
 0x56d   :  { %v2945_v11 = vpop.f32.mrf.mxu1  ;;  %v2835_v19 = vadd.f32 %v6306_v49, %v6324_v14 }
 0x56e   :  { %v3041_v42 = vpack.c.bf16 %v3011_v39, %v3009_v13  ;;  %v2946_v47 = vadd.f32 %v2945_v11, %v2813_v18  ;;  %v3012_v24 = vmax.f32 %v2944_v9, 0.0  ;;  %v2837_v39 = vadd.f32 %v6308_v56, %v6330_v12 }
 0x56f   :  { %v2947_v61 = vpop.f32.mrf.mxu1  ;;  %v2841_v56 = vadd.f32 %v6310_v40, %v6324_v14 }
 0x570   :  { %v2948_v48 = vadd.f32 %v2947_v61, %v2815_v62  ;;  %v3013_v54 = vmax.f32 %v2946_v47, 0.0  ;;  %v4076_v62 = vld [vmem:[%s6625_s5 + $0x38] sm:$0xff]  }
 0x571   :  { %v2949_v59 = vpop.f32.mrf.mxu1  ;;  %3868 = vmatpush3.bf16.msra.mxu1 %v4076_v62  ;;  %v4085_v62 = vld [vmem:[%s6625_s5 + $0x50] sm:$0xff]  }
 0x572   :  { %v3014_v60 = vmax.f32 %v2948_v48, 0.0  ;;  %v2950_v25 = vadd.f32 %v2949_v59, %v2817_v53  ;;  %v2843_v59 = vadd.f32 %v6312_v1, %v6330_v12 }
 0x573   :  { %v2953_v35 = vpop.f32.mrf.mxu1 }
 0x574   :  { %v3042_v32 = vpack.c.bf16 %v3014_v60, %v3012_v24  ;;  %v3015_v34 = vmax.f32 %v2950_v25, 0.0  ;;  %v2954_v21 = vadd.f32 %v2953_v35, %v2821_v6  ;;  %v2845_v60 = vadd.f32 %v6314_v30, %v6324_v14 }
 0x575   :  { %v2955_v29 = vpop.f32.mrf.mxu1 }
 0x576   :  { %v6395_v33 = vmax.bf16 %v3042_v32, %v3040_v43  ;;  %v3043_v58 = vpack.c.bf16 %v3015_v34, %v3013_v54  ;;  %v2956_v23 = vadd.f32 %v2955_v29, %v2823_v36  ;;  %v3016_v50 = vmax.f32 %v2954_v21, 0.0 }
 0x577   :  { %v2957_v27 = vpop.f32.mrf.mxu1  ;;  %v2847_v32 = vadd.f32 %v6316_v7, %v6330_v12  ;;  %v2851_v7 = vadd.f32 %v6318_v41, %v6324_v14  ;;  %v2857_v41 = vadd.f32 %v6332_v3, %v6330_v12  ;;  %v4082_v3 = vld [vmem:[%s6625_s5 + $0x20] sm:$0xff]  }
 0x578   :  { %v3057_v22 = vmax.bf16 %v3043_v58, %v3041_v42  ;;  %v2958_v10 = vadd.f32 %v2957_v27, %v2825_v26  ;;  %3080 = vrot.lane.b32.xlu0 %v6395_v33, %s4192_s3  ;;  %v3017_v37 = vmax.f32 %v2956_v23, 0.0  ;;  %v4077_v23 = vld [vmem:[%s6625_s5 + $0x70] sm:$0xff]  }
 0x579   :  { %v2959_v15 = vpop.f32.mrf.mxu1  ;;  %3869 = vmatprep.subr.bf16.mxu1 %v4077_v23  ;;  %v4091_v23 = vld [vmem:[%s6625_s5 + $0xb8] sm:$0xff]  }
 0x57a   :  { %v3018_v8 = vmax.f32 %v2958_v10, 0.0  ;;  %v2960_v51 = vadd.f32 %v2959_v15, %v2827_v17  ;;  %3082 = vrot.lane.b32.xlu1 %v3057_v22, %s4192_s3  ;;  %v4078_v15 = vld [vmem:[%s6625_s5 + $0x30] sm:$0xff]  }
 0x57b   :  { %v2963_v52 = vpop.f32.mrf.mxu1  ;;  %3870 = vmatpush3.bf16.msra.mxu1 %v4078_v15 }
 0x57c   :  { %v3044_v55 = vpack.c.bf16 %v3018_v8, %v3016_v50  ;;  %v3019_v5 = vmax.f32 %v2960_v51, 0.0  ;;  %v2964_v13 = vadd.f32 %v2963_v52, %v2831_v16  ;;  %v2853_v50 = vadd.f32 %v6320_v20, %v6330_v12  ;;  %v4080_v20 = vld [vmem:[%s6625_s5 + $0x28] sm:$0xff]   ;;  %v4081_v12 = vld [vmem:[%s6625_s5 + $0x60] sm:$0xff]  }
 0x57d   :  { %v2965_v57 = vpop.f32.mrf.mxu1  ;;  %v2855_v8 = vadd.f32 %v6326_v28, %v6324_v14 }
 0x57e   :  { %v3045_v38 = vpack.c.bf16 %v3019_v5, %v3017_v37  ;;  %v2966_v11 = vadd.f32 %v2965_v57, %v2833_v44  ;;  %v3020_v42 = vmax.f32 %v2964_v13, 0.0 }
 0x57f   :  { %v2967_v43 = vpop.f32.mrf.mxu1 }
 0x580   :  { %v2968_v18 = vadd.f32 %v2967_v43, %v2835_v19  ;;  %v3021_v53 = vmax.f32 %v2966_v11, 0.0  ;;  %v4084_v11 = vld [vmem:[%s6625_s5 + $0x18] sm:$0xff]  }
 0x581   :  { %v2969_v0 = vpop.f32.mrf.mxu1 }
 0x582   :  { %v3022_v9 = vmax.f32 %v2968_v18, 0.0  ;;  %v2970_v49 = vadd.f32 %v2969_v0, %v2837_v39  ;;  %v4083_v39 = vld [vmem:[%s6625_s5 + $0x58] sm:$0xff]  }
 0x583   :  { %v2973_v61 = vpop.f32.mrf.mxu1 }
 0x584   :  { %v3046_v47 = vpack.c.bf16 %v3022_v9, %v3020_v42  ;;  %v3023_v48 = vmax.f32 %v2970_v49, 0.0  ;;  %v2974_v6 = vadd.f32 %v2973_v61, %v2841_v56  ;;  %v4086_v9 = vld [vmem:[%s6625_s5 + $0x10] sm:$0xff]   ;;  %v4087_v49 = vld [vmem:[%s6625_s5 + $0x48] sm:$0xff]  }
 0x585   :  { %v2975_v24 = vpop.f32.mrf.mxu1  ;;  %v4088_v56 = vld [vmem:[%s6625_s5 + $0x8] sm:$0xff]  }
 0x586   :  { %v6422_v25 = vmax.bf16 %v3046_v47, %v3044_v55  ;;  %v3047_v35 = vpack.c.bf16 %v3023_v48, %v3021_v53  ;;  %v2976_v40 = vadd.f32 %v2975_v24, %v2843_v59  ;;  %v3024_v1 = vmax.f32 %v2974_v6, 0.0  ;;  %v4079_v55 = vld [vmem:[%s6625_s5 + $0x68] sm:$0xff]   ;;  %v4089_v48 = vld [vmem:[%s6625_s5 + $0x40] sm:$0xff]  }
 0x587   :  { %v2977_v54 = vpop.f32.mrf.mxu1  ;;  %3871 = vmatprep.subr.bf16.mxu1 %v4079_v55  ;;  %v4195_v6 = vmov 0.0   ;;  %v4105_v55 = vld [vmem:[%s6627_s7 + $0x10] sm:$0xff]  }
 0x588   :  { %v3059_v34 = vmax.bf16 %v3047_v35, %v3045_v38  ;;  %v2978_v36 = vadd.f32 %v2977_v54, %v2845_v60  ;;  %3084 = vrot.lane.b32.xlu0 %v6422_v25, %s4192_s3  ;;  %v3025_v30 = vmax.f32 %v2976_v40, 0.0  ;;  %3872 = vmatpush3.bf16.msra.mxu1 %v4080_v20  ;;  %v4101_v54 = vld [vmem:[%s6627_s7 + $0x30] sm:$0xff]   ;;  %v4107_v20 = vld [vmem:[%s6627_s7] sm:$0xff]  }
 0x589   :  { %v2979_v29 = vpop.f32.mrf.mxu1  ;;  %3873 = vmatprep.subr.bf16.mxu1 %v4081_v12  ;;  %3907 = vmatprep.subr.bf16.mxu0 %v4195_v6  ;;  %v4112_v12 = vld [vmem:[%s6629_s9 + $0x18] sm:$0xff]  }
 0x58a   :  { %v3026_v26 = vmax.f32 %v2978_v36, 0.0  ;;  %v2980_v58 = vadd.f32 %v2979_v29, %v2847_v32  ;;  %3086 = vrot.lane.b32.xlu1 %v3059_v34, %s4192_s3  ;;  %v4103_v32 = vld [vmem:[%s6627_s7 + $0x20] sm:$0xff]   ;;  %3923 = vmatprep.mubr.msk.bf16.mxu0 %vm4196_vm13, %v4195_v6 }
 0x58c   :  { %v3048_v21 = vpack.c.bf16 %v3026_v26, %v3024_v1  ;;  %v3027_v27 = vmax.f32 %v2980_v58, 0.0  ;;  %3874 = vmatpush3.bf16.msra.mxu1 %v4082_v3  ;;  %v4104_v1 = vld [vmem:[%s6627_s7 + $0x18] sm:$0xff]  }
 0x58d   :  { %3875 = vmatprep.subr.bf16.mxu1 %v4083_v39 }
 0x58e   :  { %v3049_v17 = vpack.c.bf16 %v3027_v27, %v3025_v30 }
 0x590   :  { %3876 = vmatpush3.bf16.msra.mxu1 %v4084_v11 }
 0x591   :  { %3877 = vmatprep.subr.bf16.mxu1 %v4085_v62 }
 0x594   :  { %3878 = vmatpush3.bf16.msra.mxu1 %v4086_v9 }
 0x595   :  { %3879 = vmatprep.subr.bf16.mxu1 %v4087_v49 }
 0x598   :  { %3880 = vmatpush3.bf16.msra.mxu1 %v4088_v56 }
 0x599   :  { %3881 = vmatprep.subr.bf16.mxu1 %v4089_v48 }
 0x59c   :  { %3882 = vmatpush3.bf16.msra.mxu1 %v4090_v46  ;;  %v4114_v46 = vld [vmem:[%s6629_s9 + $0x8] sm:$0xff]  }
 0x59d   :  { %3384 = vmatprep.subr.bf16.mxu1 %v4193_v2 }
 0x5ca   :  { %v3077_v0 = vpop.permute.xlu0 %3076 }
 0x5cc   :  { %v3079_v18 = vpop.permute.xlu1 %3078 }
 0x5cd   :  { %v3094_v42 = vsel %vm3092_vm10, %v3077_v0, %v3079_v18  ;;  %v3822_v18 = vld [vmem:[%s6626_s6] ss:$0 sm:$0xff] }
 0x5ce   :  { %v3104_v61 = vmax.bf16 %v3094_v42, %v6368_v31 }
 0x5d7   :  { %v2983_v22 = vpop.f32.mrf.mxu1 }
 0x5d8   :  { %v2984_v51 = vadd.f32 %v2983_v22, %v2851_v7 }
 0x5d9   :  { %v2985_v10 = vpop.f32.mrf.mxu1 }
 0x5da   :  { %v2986_v16 = vadd.f32 %v2985_v10, %v2853_v50  ;;  %v3028_v57 = vmax.f32 %v2984_v51, 0.0  ;;  %v4092_v50 = vld [vmem:[%s6625_s5 + $0xb0] sm:$0xff]   ;;  %v4096_v51 = vld [vmem:[%s6625_s5 + $0x98] sm:$0xff]  }
 0x5db   :  { %v2987_v52 = vpop.f32.mrf.mxu1 }
 0x5dc   :  { %v2988_v37 = vadd.f32 %v2987_v52, %v2855_v8  ;;  %v3029_v44 = vmax.f32 %v2986_v16, 0.0  ;;  %v4094_v8 = vld [vmem:[%s6625_s5 + $0xa0] sm:$0xff]   ;;  %v4097_v52 = vld [vmem:[%s6625_s5 + $0x90] sm:$0xff]  }
 0x5dd   :  { %v2989_v5 = vpop.f32.mrf.mxu1  ;;  %v4099_v16 = vld [vmem:[%s6625_s5 + $0x80] sm:$0xff]  }
 0x5de   :  { %v3030_v14 = vmax.f32 %v2988_v37, 0.0  ;;  %v2990_v28 = vadd.f32 %v2989_v5, %v2857_v41  ;;  %v4098_v41 = vld [vmem:[%s6625_s5 + $0x88] sm:$0xff]   ;;  %v4100_v37 = vld [vmem:[%s6625_s5 + $0xc0] sm:$0xff]  }
 0x5df   :  { %v4106_v5 = vld [vmem:[%s6627_s7 + $0x8] sm:$0xff]  }
 0x5e0   :  { %v3050_v19 = vpack.c.bf16 %v3030_v14, %v3028_v57  ;;  %v3031_v38 = vmax.f32 %v2990_v28, 0.0  ;;  %v4108_v28 = vld [vmem:[%s6629_s9 + $0x38] sm:$0xff]  }
 0x5e2   :  { %v6455_v13 = vmax.bf16 %v3050_v19, %v3048_v21  ;;  %v3051_v43 = vpack.c.bf16 %v3031_v38, %v3029_v44  ;;  %v4109_v44 = vld [vmem:[%s6629_s9 + $0x30] sm:$0xff]   ;;  %v4110_v19 = vld [vmem:[%s6629_s9 + $0x28] sm:$0xff]   ;;  %v4111_v38 = vld [vmem:[%s6629_s9 + $0x20] sm:$0xff]  }
 0x5e4   :  { %v3061_v45 = vmax.bf16 %v3051_v43, %v3049_v17  ;;  %3088 = vrot.lane.b32.xlu0 %v6455_v13, %s4192_s3 }
 0x5e6   :  { %3090 = vrot.lane.b32.xlu1 %v3061_v45, %s4192_s3 }
 0x5e8   :  { %3072 = vrot.lane.b32.xlu0 %v6352_v63, %s4192_s3 }
 0x5ea   :  { %3074 = vrot.lane.b32.xlu1 %v3053_v4, %s4192_s3  ;;  %v3081_v53 = vpop.permute.xlu0 %3080 }
 0x5ec   :  { %v3083_v47 = vpop.permute.xlu1 %3082  ;;  %3109 = vrot.lane.b32.xlu0 %v3104_v61, %s4191_s4  ;;  %s4194_s4 = smov 112  }
 0x5ed   :  { %v3095_v31 = vsel %vm3092_vm10, %v3081_v53, %v3083_v47 }
 0x5ee   :  { %v3105_v59 = vmax.bf16 %v3095_v31, %v6395_v33  ;;  %v4095_v33 = vld [vmem:[%s6627_s7 + $0x38] sm:$0xff]  }
 0x5ef   :  { %3908 = vmatpush3.bf16.msra.mxu0 %v4095_v33 }
 0x5f0   :  { %3112 = vrot.lane.b32.xlu1 %v3105_v59, %s4186_s23  ;;  %3909 = vmatprep.subr.bf16.mxu0 %v4195_v6  ;;  %v4113_v59 = vld [vmem:[%s6629_s9 + $0x10] sm:$0xff]  }
 0x5f3   :  { %3910 = vmatpush3.bf16.msra.mxu0 %v4101_v54 }
 0x5f4   :  { %3911 = vmatprep.subr.bf16.mxu0 %v4195_v6 }
 0x5fa   :  { %v3085_v4 = vpop.permute.xlu0 %3084 }
 0x5fc   :  { %v3087_v24 = vpop.permute.xlu1 %3086 }
 0x5fd   :  { %v3096_v60 = vsel %vm3092_vm10, %v3085_v4, %v3087_v24  ;;  %v3849_v4 = vld [vmem:[%s6628_s8] ss:$0 sm:$0xff]  ;;  %s4197_s8 = smov [#allocation7]  }
 0x5fe   :  { %v3106_v35 = vmax.bf16 %v3096_v60, %v6422_v25  ;;  %v4102_v25 = vld [vmem:[%s6627_s7 + $0x28] sm:$0xff]  }
 0x5ff   :  { %3912 = vmatpush3.bf16.msra.mxu0 %v4102_v25 }
 0x600   :  { %3115 = vrot.lane.b32.xlu0 %v3106_v35, %s4194_s4  ;;  %3913 = vmatprep.subr.bf16.mxu0 %v4195_v6 }
 0x603   :  { %3914 = vmatpush3.bf16.msra.mxu0 %v4103_v32 }
 0x604   :  { %3915 = vmatprep.subr.bf16.mxu0 %v4195_v6 }
 0x607   :  { %3916 = vmatpush3.bf16.msra.mxu0 %v4104_v1 }
 0x608   :  { %3917 = vmatprep.subr.bf16.mxu0 %v4195_v6 }
 0x60b   :  { %3918 = vmatpush3.bf16.msra.mxu0 %v4105_v55 }
 0x60c   :  { %3919 = vmatprep.subr.bf16.mxu0 %v4195_v6 }
 0x60f   :  { %3920 = vmatpush3.bf16.msra.mxu0 %v4106_v5 }
 0x610   :  { %3921 = vmatprep.subr.bf16.mxu0 %v4195_v6 }
 0x613   :  { %3922 = vmatpush3.bf16.msra.mxu0 %v4107_v20 }
 0x656   :  { %v3089_v34 = vpop.permute.xlu0 %3088 }
 0x658   :  { %v3091_v40 = vpop.permute.xlu1 %3090 }
 0x659   :  { %v3097_v36 = vsel %vm3092_vm10, %v3089_v34, %v3091_v40 }
 0x65a   :  { %v3107_v29 = vmax.bf16 %v3097_v36, %v6455_v13  ;;  %v3073_v26 = vpop.permute.xlu0 %3072 }
 0x65c   :  { %3118 = vrot.lane.b32.xlu1 %v3107_v29, %s4184_s30  ;;  %v3075_v58 = vpop.permute.xlu1 %3074 }
 0x65d   :  { %v3093_v30 = vsel %vm3092_vm10, %v3073_v26, %v3075_v58 }
 0x65e   :  { %v3110_v21 = vpop.permute.xlu0 %3109  ;;  %v3103_v17 = vmax.bf16 %v3093_v30, %v6352_v63  ;;  %v4093_v63 = vld [vmem:[%s6625_s5 + $0xa8] sm:$0xff]  }
 0x660   :  { %v3122_v15 = vsel %vm2337_vm9, %v3103_v17, %v3110_v21 }
 0x662   :  { %v3113_v27 = vpop.permute.xlu1 %3112 }
 0x663   :  { %v3125_v22 = vsel %vm1096_vm0, %v3110_v21, %v3113_v27 }
 0x672   :  { %v3116_v7 = vpop.permute.xlu0 %3115 }
 0x673   :  { %v3128_v10 = vsel %vm3126_vm11, %v3125_v22, %v3116_v7 }
 0x674   :  { %3375 = vmatprep.mubr.bf16.mxu1 %v3128_v10 }
 0x675   :  { %3376 = vmatmul.mubr.bf16.vlgmr.msra.gmra.mxu1 %v3122_v15 }
 0x676   :  { %3385 = vmatpush1.bf16.msra.mxu1 %v4091_v23 }
 0x677   :  { %3386 = vmatprep.subr.bf16.mxu1 %v4193_v2 }
 0x67a   :  { %3387 = vmatpush1.bf16.msra.mxu1 %v4092_v50 }
 0x67b   :  { %3388 = vmatprep.subr.bf16.mxu1 %v4193_v2 }
 0x67e   :  { %3389 = vmatpush1.bf16.msra.mxu1 %v4093_v63 }
 0x67f   :  { %3390 = vmatprep.subr.bf16.mxu1 %v4193_v2 }
 0x682   :  { %3391 = vmatpush1.bf16.msra.mxu1 %v4094_v8 }
 0x683   :  { %3392 = vmatprep.subr.bf16.mxu1 %v4193_v2 }
 0x686   :  { %3393 = vmatpush1.bf16.msra.mxu1 %v4096_v51 }
 0x687   :  { %3394 = vmatprep.subr.bf16.mxu1 %v4193_v2 }
 0x68a   :  { %3395 = vmatpush1.bf16.msra.mxu1 %v4097_v52 }
 0x68b   :  { %3396 = vmatprep.subr.bf16.mxu1 %v4193_v2 }
 0x68e   :  { %3397 = vmatpush1.bf16.msra.mxu1 %v4098_v41 }
 0x68f   :  { %3398 = vmatprep.subr.bf16.mxu1 %v4193_v2 }
 0x692   :  { %3399 = vmatpush1.bf16.msra.mxu1 %v4099_v16 }
 0x693   :  { %3414 = vmatprep.subr.bf16.mxu1 %v4193_v2  ;;  %v4115_v2 = vld [vmem:[%s6629_s9] sm:$0xff]   ;;  %s3664_s9 = sshll.u32 %s4197_s8, 4  ;;  %s3665_s9 = int_to_ptr.vmem [resolvable:$true] %s3664_s9 }
 0x694   :  { %s4156_s1 = scalar_lea.vmem %s3665_s9, 256  ;;  %p4161_p11 = scmp.lt.s32.totalorder %s3665_s9, %s3665_s9 }
 0x695   :  { %p4157_p10 = scmp.ne.s32.totalorder %s3665_s9, %s4156_s1  ;;  %p4162_p12 = scmp.lt.s32.totalorder %s4156_s1, %s4156_s1 }
 0x696   :  { %3415 = vmatpush2.bf16.msra.mxu1 %v4100_v37 }
 0x697   :  { %3927 = vmatprep.subr.bf16.mxu1 %v4195_v6  ;;  %p4163_p13 = por %p4162_p12, %p4161_p11 }
 0x699   :  { %p4164_p0 = pnand %p4163_p13, %p4157_p10 }
 0x6ce   :  { %v3119_v57 = vpop.permute.xlu1 %3118 }
 0x6cf   :  { %v3131_v14 = vsel %vm1181_vm1, %v3116_v7, %v3119_v57  ;;  %3848 = vmatprep.mubr.msk.bf16.mxu1 %vm3340_vm12, %v3119_v57 }
 0x6d0   :  { %3417 = vmatmul.mubr.bf16.vlgmr.msra.gmra.mxu1 %v3131_v14 }
 0x6d1   :  { %3943 = vmatprep.mubr.msk.bf16.mxu1 %vm4196_vm13, %v4195_v6  ;;  %3928 = vmatpush3.bf16.msra.mxu1 %v4108_v28 }
 0x6d2   :  { %3929 = vmatprep.subr.bf16.mxu1 %v4195_v6 }
 0x6d5   :  { %3930 = vmatpush3.bf16.msra.mxu1 %v4109_v44 }
 0x6d6   :  { %3931 = vmatprep.subr.bf16.mxu1 %v4195_v6 }
 0x6d9   :  { %3932 = vmatpush3.bf16.msra.mxu1 %v4110_v19 }
 0x6da   :  { %3933 = vmatprep.subr.bf16.mxu1 %v4195_v6 }
 0x6dd   :  { %3934 = vmatpush3.bf16.msra.mxu1 %v4111_v38 }
 0x6de   :  { %3935 = vmatprep.subr.bf16.mxu1 %v4195_v6 }
 0x6e1   :  { %3936 = vmatpush3.bf16.msra.mxu1 %v4112_v12 }
 0x6e2   :  { %3937 = vmatprep.subr.bf16.mxu1 %v4195_v6 }
 0x6e5   :  { %3938 = vmatpush3.bf16.msra.mxu1 %v4113_v59 }
 0x6e6   :  { %3939 = vmatprep.subr.bf16.mxu1 %v4195_v6 }
 0x6e9   :  { %3940 = vmatpush3.bf16.msra.mxu1 %v4114_v46 }
 0x6ea   :  { %3941 = vmatprep.subr.bf16.mxu1 %v4195_v6  ;;  %v3858_v6 = vld [vmem:[%s6630_s10] ss:$0 sm:$0xff] }
 0x6ed   :  { %3942 = vmatpush3.bf16.msra.mxu1 %v4115_v2 }
 0x735   :  { %v3883_v3 = vpop.f32.mrf.mxu1 }
 0x737   :  { %v3884_v13 = vpop.f32.mrf.mxu1 }
 0x738   :  { %v3885_v11 = vadd.f32 %v3884_v13, %v3883_v3 }
 0x739   :  { %v3886_v43 = vpop.f32.mrf.mxu1 }
 0x73a   :  { %v3378_v0 = vadd.f32 %v3885_v11, %v3822_v18 }
 0x73b   :  { %v3887_v39 = vpop.f32.mrf.mxu1 }
 0x73c   :  { %v3888_v45 = vadd.f32 %v3887_v39, %v3886_v43 }
 0x73e   :  { %v3381_v49 = vadd.f32 %v3888_v45, %v3822_v18 }
 0x790   :  { %v3418_v62 = vpop.f32.mrf.mxu1 }
 0x791   :  { %v3419_v9 = vadd.f32 %v3418_v62, %v3378_v0 }
 0x792   :  { %v3420_v42 = vpop.f32.mrf.mxu1 }
 0x793   :  { %v3425_v47 = vmax.f32 %v3419_v9, 0.0 }
 0x794   :  { %v3421_v61 = vpop.f32.mrf.mxu1 }
 0x795   :  { %v3422_v56 = vadd.f32 %v3421_v61, %v3381_v49 }
 0x796   :  { %v3423_v53 = vpop.f32.mrf.mxu1 }
 0x797   :  { %v3426_v48 = vmax.f32 %v3422_v56, 0.0 }
 0x799   :  { %v3427_v31 = vpack.c.bf16 %v3426_v48, %v3425_v47 }
 0x79b   :  { %3924 = vmatmul.mubr.bf16.vlgmr.msra.gmra.mxu0 %v3427_v31 }
 0x85b   :  { %v3533_v24 = vpop.f32.mrf.mxu0 }
 0x85c   :  { %v3534_v35 = vadd.f32 %v3849_v4, %v3533_v24 }
 0x85d   :  { %v3925_v60 = vpop.f32.mrf.mxu0 }
 0x85e   :  { %v3540_v32 = vmax.f32 %v3534_v35, 0.0 }
 0x85f   :  { %v3536_v33 = vpop.f32.mrf.mxu0 }
 0x860   :  { %v3537_v54 = vadd.f32 %v3849_v4, %v3536_v33 }
 0x861   :  { %v3926_v25 = vpop.f32.mrf.mxu0 }
 0x862   :  { %v3541_v34 = vmax.f32 %v3537_v54, 0.0 }
 0x864   :  { %v3542_v40 = vpack.c.bf16 %v3541_v34, %v3540_v32 }
 0x866   :  { %3944 = vmatmul.mubr.bf16.vlgmr.msra.gmra.mxu1 %v3542_v40 }
 0x926   :  { %v3648_v36 = vpop.f32.mrf.mxu1 }
 0x927   :  { %v3649_v29 = vadd.f32 %v3858_v6, %v3648_v36 }
 0x928   :  { %v3945_v1 = vpop.f32.mrf.mxu1 }
 0x929   :  { %v3655_v26 = vmax.f32 %v3649_v29, 0.0 }
 0x92a   :  { %v3651_v58 = vpop.f32.mrf.mxu1 }
 0x92b   :  { %3657 = vst [vmem:[#allocation7] sm:$0xff] %v3655_v26  ;;  %v3652_v30 = vadd.f32 %v3858_v6, %v3651_v58 }
 0x92c   :  { %v3946_v21 = vpop.f32.mrf.mxu1 }
 0x92d   :  { %v3656_v27 = vmax.f32 %v3652_v30, 0.0 }
 0x92f   :  { %3658 = vst [vmem:[#allocation7 + $0x8] sm:$0xff] %v3656_v27 }
 0x930   :  { %4167 = shalt.err (!%p4164_p0)
}
 0x931   :  { %s4198_s10 = smov 128   ;;  %s4199_s28 = smov 8  }
 0x932   :  { %3670 = dma.vmem_to_hbm [thread:$0]  %s3665_s9, 256, %s6631_s11, [#allocation4], %s4198_s10, %s4198_s10, %s4199_s28  }
 0x933   :  { %4180 = dma.done.wait [#allocation4], 256  }
 0x934   :  { %4181 = vsyncadd [#allocation4], 4294967040 }
 0x935   :  { %3674 = vsyncpa [#allocation3], 1 }
 0x936   :  { %3675 = vsyncpa [#allocation6], 1 }
 0x937   :  { %3676 = vsyncpa [#allocation4], 1 }

</bundles_post_ra>
